<compile_context>
chip_gen: v5e
topology: v5e:2x2
jax: 0.10.0
libtpu: 0.0.40
codegen_flags: <defaults>
</compile_context>

<pallas_src>
import math

import jax
import jax.numpy as jnp
from jax import lax
from jax.experimental import pallas as pl
from jax.experimental.pallas import tpu as pltpu

NUM_HEADS = 2
LN_EPS = 1e-5


# --------------------------------------------------------------------------------------
# Parameter packing: 16 tiny tensors -> 2 flat f32 operands (2 DMAs per call).
# --------------------------------------------------------------------------------------
def _pack_rows(pieces):
    """Stack 2-D pieces along rows (each padded to a multiple of 8 sublanes).

    Returns (packed_array, {name: row_offset}); offsets are static Python ints, so the
    kernel can slice the packed operand with compile-time indices.
    """
    parts, offs, off = [], {}, 0
    for name, a in pieces:
        a = jnp.asarray(a, jnp.float32)
        pad = (-a.shape[0]) % 8
        if pad:
            a = jnp.pad(a, ((0, pad), (0, 0)))
        offs[name] = off
        parts.append(a)
        off += a.shape[0]
    return jnp.concatenate(parts, axis=0), offs


def _pack_params(p, C):
    w_q = p['in_proj_w'][0:C]            # (C, C)
    w_kv = p['in_proj_w'][C:3 * C]       # (2C, C)
    b_q = p['in_proj_b'][0:C]
    b_kv = p['in_proj_b'][C:3 * C]

    # Matrices (lane width = C) plus the row-oriented LN1 / q-bias params.
    w_all, w_off = _pack_rows([
        ('wq_t', w_q.T),                 # (C, C):  q  = x_ln_tm @ wq_t   (token-major)
        ('w_kv', w_kv),                  # (2C, C): kv = w_kv @ x_ln_cm   (channel-major)
        ('w_out', p['out_proj_w']),      # (C, C):  out = w_out @ ctx
        ('w1', p['w1']),                 # (C, C)
        ('w2', p['w2']),                 # (C, C)
        ('rows', jnp.stack([p['ln_w'], p['ln_b'], b_q], axis=0)),   # 3 x (1, C) rows
    ])
    # Column-oriented (rows, 1) params broadcast over lanes in the (C, S) layout.
    v_all, v_off = _pack_rows([
        ('ln_w', p['ln_w'].reshape(C, 1)),
        ('ln_b', p['ln_b'].reshape(C, 1)),
        ('b_kv', b_kv.reshape(2 * C, 1)),
        ('b_out', p['out_proj_b'].reshape(C, 1)),
        ('ln2_w', p['ln2_w'].reshape(C, 1)),
        ('ln2_b', p['ln2_b'].reshape(C, 1)),
        ('b1', p['b1'].reshape(C, 1)),
        ('b2', p['b2'].reshape(C, 1)),
    ])
    return w_all, w_off, v_all, v_off


# --------------------------------------------------------------------------------------
# Kernel
# --------------------------------------------------------------------------------------
def _make_kernel(C, heads, w_off, v_off):
    hd = C // heads
    scale = 1.0 / math.sqrt(hd)

    def kernel(x_cs_ref, x_sc_ref, w_ref, v_ref, o_ref):
        x_cs = x_cs_ref[0]            # (C, S)  channel-major (lane-dense tokens)
        x_sc = x_sc_ref[0]            # (S, C)  token-major (only feeds the Q matmul)

        # ---- packed parameter views (static slices of the two packed operands) ----
        wq_t = w_ref[w_off['wq_t']:w_off['wq_t'] + C, :]           # (C, C)
        w_kv = w_ref[w_off['w_kv']:w_off['w_kv'] + 2 * C, :]       # (2C, C)
        w_out = w_ref[w_off['w_out']:w_off['w_out'] + C, :]        # (C, C)
        w1 = w_ref[w_off['w1']:w_off['w1'] + C, :]                 # (C, C)
        w2 = w_ref[w_off['w2']:w_off['w2'] + C, :]                 # (C, C)
        r0 = w_off['rows']
        ln_w_row = w_ref[r0 + 0:r0 + 1, :]                         # (1, C)
        ln_b_row = w_ref[r0 + 1:r0 + 2, :]                         # (1, C)
        b_q_row = w_ref[r0 + 2:r0 + 3, :]                          # (1, C)

        def col(name, rows=C):
            o = v_off[name]
            return v_ref[o:o + rows, :]                            # (rows, 1)

        ln_w_col, ln_b_col = col('ln_w'), col('ln_b')
        b_kv = col('b_kv', 2 * C)
        b_out = col('b_out')
        ln2_w, ln2_b = col('ln2_w'), col('ln2_b')
        b1, b2 = col('b1'), col('b2')

        # ---- LayerNorm over channels, in each layout ----
        def ln_cm(t, w, b):           # t: (C, S); channels on sublanes (axis 0)
            mu = jnp.mean(t, axis=0, keepdims=True)
            var = jnp.mean(jnp.square(t - mu), axis=0, keepdims=True)
            return (t - mu) * lax.rsqrt(var + LN_EPS) * w + b

        def ln_tm(t, w, b):           # t: (S, C); channels on lanes (axis -1)
            mu = jnp.mean(t, axis=-1, keepdims=True)
            var = jnp.mean(jnp.square(t - mu), axis=-1, keepdims=True)
            return (t - mu) * lax.rsqrt(var + LN_EPS) * w + b

        x_ln_cm = ln_cm(x_cs, ln_w_col, ln_b_col)                  # (C, S)
        x_ln_tm = ln_tm(x_sc, ln_w_row, ln_b_row)                  # (S, C)

        # ---- fused projections ----
        # Q in token-major so the score matmul is a plain NN dot; 1/sqrt(hd) folded in.
        q = (jnp.dot(x_ln_tm, wq_t, preferred_element_type=jnp.float32)
             + b_q_row) * scale                                    # (S, C)
        kv = jnp.dot(w_kv, x_ln_cm,
                     preferred_element_type=jnp.float32) + b_kv    # (2C, S)
        k = kv[0:C]                                                # (C, S)
        v = kv[C:2 * C]                                            # (C, S)

        # ---- 2-head attention; ctx accumulated lane-dense in (C, S) ----
        row_id = lax.broadcasted_iota(jnp.int32, (C, 1), 0)
        ctx = None
        for h in range(heads):        # static Python unroll (heads == 2)
            lo, hi = h * hd, (h + 1) * hd
            head_rows = jnp.logical_and(row_id >= lo, row_id < hi)  # (C, 1)
            # Zero the other head's channels; the full-C contraction then equals the
            # per-head contraction (no sublane concat / transposed matmuls needed) and
            # the per-head ctx lands directly in its own rows of one (C, S) tile.
            k_h = jnp.where(head_rows, k, 0.0)                      # (C, S)
            v_h = jnp.where(head_rows, v, 0.0)                      # (C, S)
            s = jnp.dot(q, k_h, preferred_element_type=jnp.float32)  # (S, S)
            m = jnp.max(s, axis=-1, keepdims=True)
            e = jnp.exp(s - m)
            attn = e * pl.reciprocal(jnp.sum(e, axis=-1, keepdims=True), approx=True)
            c_h = lax.dot_general(v_h, attn, (((1,), (1,)), ((), ())),
                                  preferred_element_type=jnp.float32)  # (C, S)
            ctx = c_h if ctx is None else ctx + c_h

        # ---- fused out-projection + bias + residual 1 ----
        av = jnp.dot(w_out, ctx, preferred_element_type=jnp.float32) + b_out + x_cs

        # ---- feed-forward: LN -> Linear -> exact GELU -> Linear, + residual 2 ----
        h_ln = ln_cm(av, ln2_w, ln2_b)
        f1 = jnp.dot(w1, h_ln, preferred_element_type=jnp.float32) + b1
        g = 0.5 * f1 * (1.0 + lax.erf(f1 * (1.0 / math.sqrt(2.0))))  # exact GELU
        f2 = jnp.dot(w2, g, preferred_element_type=jnp.float32) + b2
        o_ref[0] = f2 + av                                          # lane-dense store

    return kernel


# --------------------------------------------------------------------------------------
# Wrapper
# --------------------------------------------------------------------------------------
def self_attention2(x, params, channels, size, heads=NUM_HEADS):
    B = x.shape[0]
    C, S = channels, size * size
    assert C % heads == 0

    x_cs = x.reshape(B, C, S).astype(jnp.float32)      # NCHW flattened: channel-major
    x_sc = jnp.swapaxes(x_cs, 1, 2)                    # token-major copy for the Q path

    w_all, w_off, v_all, v_off = _pack_params(params, C)
    kernel = _make_kernel(C, heads, w_off, v_off)

    out_cs = pl.pallas_call(
        kernel,
        out_shape=jax.ShapeDtypeStruct((B, C, S), jnp.float32),
        grid=(B,),
        in_specs=[
            pl.BlockSpec((1, C, S), lambda b: (b, 0, 0)),
            pl.BlockSpec((1, S, C), lambda b: (b, 0, 0)),
            pl.BlockSpec(w_all.shape, lambda b: (0, 0)),
            pl.BlockSpec(v_all.shape, lambda b: (0, 0)),
        ],
        out_specs=pl.BlockSpec((1, C, S), lambda b: (b, 0, 0)),
        compiler_params=pltpu.CompilerParams(dimension_semantics=("parallel",)),
    )(x_cs, x_sc, w_all, v_all)

    # (B, C, S) is already NCHW up to a reshape — no output transpose needed.
    return out_cs.reshape(B, C, size, size)


# --------------------------------------------------------------------------------------
# Parameters / reference
# --------------------------------------------------------------------------------------
def init_params(key, channels):
    ks = jax.random.split(key, 8)

    def w(k, shape, scale=0.1):
        return (scale * jax.random.normal(k, shape)).astype(jnp.float32)

    return dict(
        ln_w=jnp.ones((channels,), jnp.float32),
        ln_b=jnp.zeros((channels,), jnp.float32),
        in_proj_w=w(ks[0], (3 * channels, channels)),
        in_proj_b=w(ks[1], (3 * channels,)),
        out_proj_w=w(ks[2], (channels, channels)),
        out_proj_b=w(ks[3], (channels,)),
        ln2_w=jnp.ones((channels,), jnp.float32),
        ln2_b=jnp.zeros((channels,), jnp.float32),
        w1=w(ks[4], (channels, channels)),
        b1=w(ks[5], (channels,)),
        w2=w(ks[6], (channels, channels)),
        b2=w(ks[7], (channels,)),
    )


def _reference(x, params, channels, size, heads=NUM_HEADS):
    """Pure-JAX reference matching PyTorch SelfAttention2 semantics."""
    B = x.shape[0]
    C, S, hd = channels, size * size, channels // heads
    xs = jnp.transpose(x.reshape(B, C, S), (0, 2, 1)).astype(jnp.float32)

    def ln(v, w, b):
        mu = v.mean(-1, keepdims=True)
        var = ((v - mu) ** 2).mean(-1, keepdims=True)
        return (v - mu) / jnp.sqrt(var + LN_EPS) * w + b

    x_ln = ln(xs, params['ln_w'], params['ln_b'])
    Wq, Wk, Wv = jnp.split(params['in_proj_w'], 3, axis=0)
    bq, bk, bv = jnp.split(params['in_proj_b'], 3)
    q, k, v = x_ln @ Wq.T + bq, x_ln @ Wk.T + bk, x_ln @ Wv.T + bv

    def split(t):
        return t.reshape(B, S, heads, hd).transpose(0, 2, 1, 3)

    qh, kh, vh = split(q), split(k), split(v)
    sc = jnp.einsum('bhqd,bhkd->bhqk', qh, kh) / jnp.sqrt(hd)
    a = jax.nn.softmax(sc, axis=-1)
    ctx = jnp.einsum('bhqk,bhkd->bhqd', a, vh).transpose(0, 2, 1, 3).reshape(B, S, C)
    av = ctx @ params['out_proj_w'].T + params['out_proj_b'] + xs
    h = ln(av, params['ln2_w'], params['ln2_b']) @ params['w1'].T + params['b1']
    g = 0.5 * h * (1.0 + lax.erf(h / jnp.sqrt(2.0)))
    out = g @ params['w2'].T + params['b2'] + av
    return jnp.transpose(out, (0, 2, 1)).reshape(B, C, size, size)


if __name__ == "__main__":
    channels, size, batch = 4, 16, 2
    key = jax.random.PRNGKey(0)
    kx, kp = jax.random.split(key)
    x = jax.random.normal(kx, (batch, channels, size, size), dtype=jnp.float32)
    params = init_params(kp, channels)

    out = self_attention2(x, params, channels, size)
    out = jax.block_until_ready(out)

    ref = _reference(x, params, channels, size)
    assert out.shape == (batch, channels, size, size)
    assert bool(jnp.all(jnp.isfinite(out)))
    # 1e-3 tolerance: approx EUP reciprocal in the softmax + TPU matmul rounding.
    assert bool(jnp.allclose(out, ref, rtol=1e-3, atol=1e-3)), "mismatch vs JAX reference"
    print("KERNEL_OK")
</pallas_src>

<mosaic_0001>
module attributes {stable_mosaic.version = 11 : i64} {
  func.func @kernel(%arg0: i32, %arg1: memref<1x4x256xf32, #tpu.memory_space<vmem>>, %arg2: memref<1x256x4xf32, #tpu.memory_space<vmem>>, %arg3: memref<48x4xf32, #tpu.memory_space<vmem>>, %arg4: memref<64x1xf32, #tpu.memory_space<vmem>>, %arg5: memref<1x4x256xf32, #tpu.memory_space<vmem>>) attributes {dimension_semantics = [#tpu.dimension_semantics<parallel>], iteration_bounds = array<i64: 2>, scalar_prefetch = 0 : i64, scratch_operands = 0 : i64, tpu.core_type = #tpu.core_type<tc>, window_params = [{transform_indices = @transform_0, window_bounds = array<i64: 1, 4, 256>}, {transform_indices = @transform_1, window_bounds = array<i64: 1, 256, 4>}, {pipeline_mode = #tpu.pipeline_mode<synchronous>, transform_indices = @transform_2, window_bounds = array<i64: 48, 4>}, {pipeline_mode = #tpu.pipeline_mode<synchronous>, transform_indices = @transform_3, window_bounds = array<i64: 64, 1>}, {transform_indices = @transform_4, window_bounds = array<i64: 1, 4, 256>}]} {
    %c0 = arith.constant 0 : index
    %c0_0 = arith.constant 0 : index
    %c0_1 = arith.constant 0 : index
    %0 = vector.load %arg1[%c0, %c0_0, %c0_1] : memref<1x4x256xf32, #tpu.memory_space<vmem>>, vector<1x4x256xf32>
    %1 = vector.shape_cast %0 : vector<1x4x256xf32> to vector<4x256xf32>
    %c0_2 = arith.constant 0 : index
    %c0_3 = arith.constant 0 : index
    %c0_4 = arith.constant 0 : index
    %2 = vector.load %arg2[%c0_2, %c0_3, %c0_4] : memref<1x256x4xf32, #tpu.memory_space<vmem>>, vector<1x256x4xf32>
    %3 = vector.shape_cast %2 : vector<1x256x4xf32> to vector<256x4xf32>
    %c0_5 = arith.constant 0 : index
    %c0_6 = arith.constant 0 : index
    %4 = vector.load %arg3[%c0_5, %c0_6] : memref<48x4xf32, #tpu.memory_space<vmem>>, vector<4x4xf32>
    %c8 = arith.constant 8 : index
    %c0_7 = arith.constant 0 : index
    %5 = vector.load %arg3[%c8, %c0_7] : memref<48x4xf32, #tpu.memory_space<vmem>>, vector<8x4xf32>
    %c16 = arith.constant 16 : index
    %c0_8 = arith.constant 0 : index
    %6 = vector.load %arg3[%c16, %c0_8] : memref<48x4xf32, #tpu.memory_space<vmem>>, vector<4x4xf32>
    %c24 = arith.constant 24 : index
    %c0_9 = arith.constant 0 : index
    %7 = vector.load %arg3[%c24, %c0_9] : memref<48x4xf32, #tpu.memory_space<vmem>>, vector<4x4xf32>
    %c32 = arith.constant 32 : index
    %c0_10 = arith.constant 0 : index
    %8 = vector.load %arg3[%c32, %c0_10] : memref<48x4xf32, #tpu.memory_space<vmem>>, vector<4x4xf32>
    %c40 = arith.constant 40 : index
    %c0_11 = arith.constant 0 : index
    %9 = vector.load %arg3[%c40, %c0_11] : memref<48x4xf32, #tpu.memory_space<vmem>>, vector<1x4xf32>
    %c41 = arith.constant 41 : index
    %c0_12 = arith.constant 0 : index
    %10 = vector.load %arg3[%c41, %c0_12] : memref<48x4xf32, #tpu.memory_space<vmem>>, vector<1x4xf32>
    %c42 = arith.constant 42 : index
    %c0_13 = arith.constant 0 : index
    %11 = vector.load %arg3[%c42, %c0_13] : memref<48x4xf32, #tpu.memory_space<vmem>>, vector<1x4xf32>
    %c0_14 = arith.constant 0 : index
    %c0_15 = arith.constant 0 : index
    %12 = vector.load %arg4[%c0_14, %c0_15] : memref<64x1xf32, #tpu.memory_space<vmem>>, vector<4x1xf32>
    %c8_16 = arith.constant 8 : index
    %c0_17 = arith.constant 0 : index
    %13 = vector.load %arg4[%c8_16, %c0_17] : memref<64x1xf32, #tpu.memory_space<vmem>>, vector<4x1xf32>
    %c16_18 = arith.constant 16 : index
    %c0_19 = arith.constant 0 : index
    %14 = vector.load %arg4[%c16_18, %c0_19] : memref<64x1xf32, #tpu.memory_space<vmem>>, vector<8x1xf32>
    %c24_20 = arith.constant 24 : index
    %c0_21 = arith.constant 0 : index
    %15 = vector.load %arg4[%c24_20, %c0_21] : memref<64x1xf32, #tpu.memory_space<vmem>>, vector<4x1xf32>
    %c32_22 = arith.constant 32 : index
    %c0_23 = arith.constant 0 : index
    %16 = vector.load %arg4[%c32_22, %c0_23] : memref<64x1xf32, #tpu.memory_space<vmem>>, vector<4x1xf32>
    %c40_24 = arith.constant 40 : index
    %c0_25 = arith.constant 0 : index
    %17 = vector.load %arg4[%c40_24, %c0_25] : memref<64x1xf32, #tpu.memory_space<vmem>>, vector<4x1xf32>
    %c48 = arith.constant 48 : index
    %c0_26 = arith.constant 0 : index
    %18 = vector.load %arg4[%c48, %c0_26] : memref<64x1xf32, #tpu.memory_space<vmem>>, vector<4x1xf32>
    %c56 = arith.constant 56 : index
    %c0_27 = arith.constant 0 : index
    %19 = vector.load %arg4[%c56, %c0_27] : memref<64x1xf32, #tpu.memory_space<vmem>>, vector<4x1xf32>
    %cst = arith.constant dense<0.000000e+00> : vector<256xf32>
    %20 = vector.multi_reduction <add>, %1, %cst [0] : vector<4x256xf32> to vector<256xf32>
    %21 = vector.shape_cast %20 : vector<256xf32> to vector<1x256xf32>
    %cst_28 = arith.constant 4.000000e+00 : f32
    %22 = vector.broadcast %cst_28 : f32 to vector<1x256xf32>
    %23 = arith.divf %21, %22 : vector<1x256xf32>
    %24 = vector.broadcast %23 : vector<1x256xf32> to vector<4x256xf32>
    %25 = arith.subf %1, %24 : vector<4x256xf32>
    %26 = arith.mulf %25, %25 : vector<4x256xf32>
    %cst_29 = arith.constant dense<0.000000e+00> : vector<256xf32>
    %27 = vector.multi_reduction <add>, %26, %cst_29 [0] : vector<4x256xf32> to vector<256xf32>
    %28 = vector.shape_cast %27 : vector<256xf32> to vector<1x256xf32>
    %cst_30 = arith.constant 4.000000e+00 : f32
    %29 = vector.broadcast %cst_30 : f32 to vector<1x256xf32>
    %30 = arith.divf %28, %29 : vector<1x256xf32>
    %31 = vector.broadcast %23 : vector<1x256xf32> to vector<4x256xf32>
    %32 = arith.subf %1, %31 : vector<4x256xf32>
    %cst_31 = arith.constant 9.99999974E-6 : f32
    %33 = vector.broadcast %cst_31 : f32 to vector<1x256xf32>
    %34 = arith.addf %30, %33 : vector<1x256xf32>
    %35 = math.rsqrt %34 : vector<1x256xf32>
    %36 = vector.broadcast %35 : vector<1x256xf32> to vector<4x256xf32>
    %37 = arith.mulf %32, %36 : vector<4x256xf32>
    %38 = vector.broadcast %12 : vector<4x1xf32> to vector<4x256xf32>
    %39 = arith.mulf %37, %38 : vector<4x256xf32>
    %40 = vector.broadcast %13 : vector<4x1xf32> to vector<4x256xf32>
    %41 = arith.addf %39, %40 : vector<4x256xf32>
    %cst_32 = arith.constant dense<0.000000e+00> : vector<256xf32>
    %42 = vector.multi_reduction <add>, %3, %cst_32 [1] : vector<256x4xf32> to vector<256xf32>
    %43 = vector.shape_cast %42 : vector<256xf32> to vector<256x1xf32>
    %cst_33 = arith.constant 4.000000e+00 : f32
    %44 = vector.broadcast %cst_33 : f32 to vector<256x1xf32>
    %45 = arith.divf %43, %44 : vector<256x1xf32>
    %46 = vector.broadcast %45 : vector<256x1xf32> to vector<256x4xf32>
    %47 = arith.subf %3, %46 : vector<256x4xf32>
    %48 = arith.mulf %47, %47 : vector<256x4xf32>
    %cst_34 = arith.constant dense<0.000000e+00> : vector<256xf32>
    %49 = vector.multi_reduction <add>, %48, %cst_34 [1] : vector<256x4xf32> to vector<256xf32>
    %50 = vector.shape_cast %49 : vector<256xf32> to vector<256x1xf32>
    %cst_35 = arith.constant 4.000000e+00 : f32
    %51 = vector.broadcast %cst_35 : f32 to vector<256x1xf32>
    %52 = arith.divf %50, %51 : vector<256x1xf32>
    %53 = vector.broadcast %45 : vector<256x1xf32> to vector<256x4xf32>
    %54 = arith.subf %3, %53 : vector<256x4xf32>
    %cst_36 = arith.constant 9.99999974E-6 : f32
    %55 = vector.broadcast %cst_36 : f32 to vector<256x1xf32>
    %56 = arith.addf %52, %55 : vector<256x1xf32>
    %57 = math.rsqrt %56 : vector<256x1xf32>
    %58 = vector.broadcast %57 : vector<256x1xf32> to vector<256x4xf32>
    %59 = arith.mulf %54, %58 : vector<256x4xf32>
    %60 = vector.broadcast %9 : vector<1x4xf32> to vector<256x4xf32>
    %61 = arith.mulf %59, %60 : vector<256x4xf32>
    %62 = vector.broadcast %10 : vector<1x4xf32> to vector<256x4xf32>
    %63 = arith.addf %61, %62 : vector<256x4xf32>
    %cst_37 = arith.constant dense<0.000000e+00> : vector<256x4xf32>
    %64 = tpu.matmul %63, %4, %cst_37 {dimension_numbers = #tpu.dot_dimension_numbers<[1], [0], [0], [1], [0, 0, 1, 1], [], []>} : vector<256x4xf32>, vector<4x4xf32>, vector<256x4xf32> -> vector<256x4xf32>
    %65 = vector.broadcast %11 : vector<1x4xf32> to vector<256x4xf32>
    %66 = arith.addf %64, %65 : vector<256x4xf32>
    %cst_38 = arith.constant 0.707106769 : f32
    %67 = vector.broadcast %cst_38 : f32 to vector<256x4xf32>
    %68 = arith.mulf %66, %67 : vector<256x4xf32>
    %cst_39 = arith.constant dense<0.000000e+00> : vector<8x256xf32>
    %69 = tpu.matmul %5, %41, %cst_39 {dimension_numbers = #tpu.dot_dimension_numbers<[1], [0], [0], [1], [0, 0, 1, 1], [], []>} : vector<8x4xf32>, vector<4x256xf32>, vector<8x256xf32> -> vector<8x256xf32>
    %70 = vector.broadcast %14 : vector<8x1xf32> to vector<8x256xf32>
    %71 = arith.addf %69, %70 : vector<8x256xf32>
    %72 = vector.extract_strided_slice %71 {offsets = [0, 0], sizes = [4, 256], strides = [1, 1]} : vector<8x256xf32> to vector<4x256xf32>
    %73 = vector.extract_strided_slice %71 {offsets = [4, 0], sizes = [4, 256], strides = [1, 1]} : vector<8x256xf32> to vector<4x256xf32>
    %74 = tpu.iota {dimensions = array<i32: 0>} : vector<4x1xi32>
    %c0_i32 = arith.constant 0 : i32
    %75 = vector.broadcast %c0_i32 : i32 to vector<4x1xi32>
    %76 = arith.cmpi sge, %74, %75 : vector<4x1xi32>
    %c2_i32 = arith.constant 2 : i32
    %77 = vector.broadcast %c2_i32 : i32 to vector<4x1xi32>
    %78 = arith.cmpi slt, %74, %77 : vector<4x1xi32>
    %79 = arith.andi %76, %78 : vector<4x1xi1>
    %cst_40 = arith.constant 0.000000e+00 : f32
    %80 = vector.shape_cast %79 : vector<4x1xi1> to vector<4x1xi1>
    %81 = vector.broadcast %80 : vector<4x1xi1> to vector<4x256xi1>
    %82 = vector.broadcast %cst_40 : f32 to vector<4x256xf32>
    %83 = arith.select %81, %72, %82 : vector<4x256xi1>, vector<4x256xf32>
    %cst_41 = arith.constant 0.000000e+00 : f32
    %84 = vector.shape_cast %79 : vector<4x1xi1> to vector<4x1xi1>
    %85 = vector.broadcast %84 : vector<4x1xi1> to vector<4x256xi1>
    %86 = vector.broadcast %cst_41 : f32 to vector<4x256xf32>
    %87 = arith.select %85, %73, %86 : vector<4x256xi1>, vector<4x256xf32>
    %cst_42 = arith.constant dense<0.000000e+00> : vector<256x256xf32>
    %88 = tpu.matmul %68, %83, %cst_42 {dimension_numbers = #tpu.dot_dimension_numbers<[1], [0], [0], [1], [0, 0, 1, 1], [], []>} : vector<256x4xf32>, vector<4x256xf32>, vector<256x256xf32> -> vector<256x256xf32>
    %cst_43 = arith.constant dense<0xFF800000> : vector<256xf32>
    %89 = vector.multi_reduction <maximumf>, %88, %cst_43 [1] : vector<256x256xf32> to vector<256xf32>
    %90 = vector.shape_cast %89 : vector<256xf32> to vector<256x1xf32>
    %91 = vector.broadcast %90 : vector<256x1xf32> to vector<256x256xf32>
    %92 = arith.subf %88, %91 : vector<256x256xf32>
    %93 = math.exp %92 : vector<256x256xf32>
    %cst_44 = arith.constant dense<0.000000e+00> : vector<256xf32>
    %94 = vector.multi_reduction <add>, %93, %cst_44 [1] : vector<256x256xf32> to vector<256xf32>
    %95 = vector.shape_cast %94 : vector<256xf32> to vector<256x1xf32>
    %96 = tpu.reciprocal %95 {approx = true} : vector<256x1xf32> -> vector<256x1xf32>
    %97 = vector.broadcast %96 : vector<256x1xf32> to vector<256x256xf32>
    %98 = arith.mulf %93, %97 : vector<256x256xf32>
    %cst_45 = arith.constant dense<0.000000e+00> : vector<4x256xf32>
    %99 = tpu.matmul %87, %98, %cst_45 {dimension_numbers = #tpu.dot_dimension_numbers<[1], [1], [0], [0], [0, 0, 1, 0], [], []>} : vector<4x256xf32>, vector<256x256xf32>, vector<4x256xf32> -> vector<4x256xf32>
    %c2_i32_46 = arith.constant 2 : i32
    %100 = vector.broadcast %c2_i32_46 : i32 to vector<4x1xi32>
    %101 = arith.cmpi sge, %74, %100 : vector<4x1xi32>
    %c4_i32 = arith.constant 4 : i32
    %102 = vector.broadcast %c4_i32 : i32 to vector<4x1xi32>
    %103 = arith.cmpi slt, %74, %102 : vector<4x1xi32>
    %104 = arith.andi %101, %103 : vector<4x1xi1>
    %cst_47 = arith.constant 0.000000e+00 : f32
    %105 = vector.shape_cast %104 : vector<4x1xi1> to vector<4x1xi1>
    %106 = vector.broadcast %105 : vector<4x1xi1> to vector<4x256xi1>
    %107 = vector.broadcast %cst_47 : f32 to vector<4x256xf32>
    %108 = arith.select %106, %72, %107 : vector<4x256xi1>, vector<4x256xf32>
    %cst_48 = arith.constant 0.000000e+00 : f32
    %109 = vector.shape_cast %104 : vector<4x1xi1> to vector<4x1xi1>
    %110 = vector.broadcast %109 : vector<4x1xi1> to vector<4x256xi1>
    %111 = vector.broadcast %cst_48 : f32 to vector<4x256xf32>
    %112 = arith.select %110, %73, %111 : vector<4x256xi1>, vector<4x256xf32>
    %cst_49 = arith.constant dense<0.000000e+00> : vector<256x256xf32>
    %113 = tpu.matmul %68, %108, %cst_49 {dimension_numbers = #tpu.dot_dimension_numbers<[1], [0], [0], [1], [0, 0, 1, 1], [], []>} : vector<256x4xf32>, vector<4x256xf32>, vector<256x256xf32> -> vector<256x256xf32>
    %cst_50 = arith.constant dense<0xFF800000> : vector<256xf32>
    %114 = vector.multi_reduction <maximumf>, %113, %cst_50 [1] : vector<256x256xf32> to vector<256xf32>
    %115 = vector.shape_cast %114 : vector<256xf32> to vector<256x1xf32>
    %116 = vector.broadcast %115 : vector<256x1xf32> to vector<256x256xf32>
    %117 = arith.subf %113, %116 : vector<256x256xf32>
    %118 = math.exp %117 : vector<256x256xf32>
    %cst_51 = arith.constant dense<0.000000e+00> : vector<256xf32>
    %119 = vector.multi_reduction <add>, %118, %cst_51 [1] : vector<256x256xf32> to vector<256xf32>
    %120 = vector.shape_cast %119 : vector<256xf32> to vector<256x1xf32>
    %121 = tpu.reciprocal %120 {approx = true} : vector<256x1xf32> -> vector<256x1xf32>
    %122 = vector.broadcast %121 : vector<256x1xf32> to vector<256x256xf32>
    %123 = arith.mulf %118, %122 : vector<256x256xf32>
    %cst_52 = arith.constant dense<0.000000e+00> : vector<4x256xf32>
    %124 = tpu.matmul %112, %123, %cst_52 {dimension_numbers = #tpu.dot_dimension_numbers<[1], [1], [0], [0], [0, 0, 1, 0], [], []>} : vector<4x256xf32>, vector<256x256xf32>, vector<4x256xf32> -> vector<4x256xf32>
    %125 = arith.addf %99, %124 : vector<4x256xf32>
    %cst_53 = arith.constant dense<0.000000e+00> : vector<4x256xf32>
    %126 = tpu.matmul %6, %125, %cst_53 {dimension_numbers = #tpu.dot_dimension_numbers<[1], [0], [0], [1], [0, 0, 1, 1], [], []>} : vector<4x4xf32>, vector<4x256xf32>, vector<4x256xf32> -> vector<4x256xf32>
    %127 = vector.broadcast %15 : vector<4x1xf32> to vector<4x256xf32>
    %128 = arith.addf %126, %127 : vector<4x256xf32>
    %129 = arith.addf %128, %1 : vector<4x256xf32>
    %cst_54 = arith.constant dense<0.000000e+00> : vector<256xf32>
    %130 = vector.multi_reduction <add>, %129, %cst_54 [0] : vector<4x256xf32> to vector<256xf32>
    %131 = vector.shape_cast %130 : vector<256xf32> to vector<1x256xf32>
    %cst_55 = arith.constant 4.000000e+00 : f32
    %132 = vector.broadcast %cst_55 : f32 to vector<1x256xf32>
    %133 = arith.divf %131, %132 : vector<1x256xf32>
    %134 = vector.broadcast %133 : vector<1x256xf32> to vector<4x256xf32>
    %135 = arith.subf %129, %134 : vector<4x256xf32>
    %136 = arith.mulf %135, %135 : vector<4x256xf32>
    %cst_56 = arith.constant dense<0.000000e+00> : vector<256xf32>
    %137 = vector.multi_reduction <add>, %136, %cst_56 [0] : vector<4x256xf32> to vector<256xf32>
    %138 = vector.shape_cast %137 : vector<256xf32> to vector<1x256xf32>
    %cst_57 = arith.constant 4.000000e+00 : f32
    %139 = vector.broadcast %cst_57 : f32 to vector<1x256xf32>
    %140 = arith.divf %138, %139 : vector<1x256xf32>
    %141 = vector.broadcast %133 : vector<1x256xf32> to vector<4x256xf32>
    %142 = arith.subf %129, %141 : vector<4x256xf32>
    %cst_58 = arith.constant 9.99999974E-6 : f32
    %143 = vector.broadcast %cst_58 : f32 to vector<1x256xf32>
    %144 = arith.addf %140, %143 : vector<1x256xf32>
    %145 = math.rsqrt %144 : vector<1x256xf32>
    %146 = vector.broadcast %145 : vector<1x256xf32> to vector<4x256xf32>
    %147 = arith.mulf %142, %146 : vector<4x256xf32>
    %148 = vector.broadcast %16 : vector<4x1xf32> to vector<4x256xf32>
    %149 = arith.mulf %147, %148 : vector<4x256xf32>
    %150 = vector.broadcast %17 : vector<4x1xf32> to vector<4x256xf32>
    %151 = arith.addf %149, %150 : vector<4x256xf32>
    %cst_59 = arith.constant dense<0.000000e+00> : vector<4x256xf32>
    %152 = tpu.matmul %7, %151, %cst_59 {dimension_numbers = #tpu.dot_dimension_numbers<[1], [0], [0], [1], [0, 0, 1, 1], [], []>} : vector<4x4xf32>, vector<4x256xf32>, vector<4x256xf32> -> vector<4x256xf32>
    %153 = vector.broadcast %18 : vector<4x1xf32> to vector<4x256xf32>
    %154 = arith.addf %152, %153 : vector<4x256xf32>
    %cst_60 = arith.constant 5.000000e-01 : f32
    %155 = vector.broadcast %cst_60 : f32 to vector<4x256xf32>
    %156 = arith.mulf %155, %154 : vector<4x256xf32>
    %cst_61 = arith.constant 0.707106769 : f32
    %157 = vector.broadcast %cst_61 : f32 to vector<4x256xf32>
    %158 = arith.mulf %154, %157 : vector<4x256xf32>
    %159 = math.erf %158 : vector<4x256xf32>
    %cst_62 = arith.constant 1.000000e+00 : f32
    %160 = vector.broadcast %cst_62 : f32 to vector<4x256xf32>
    %161 = arith.addf %160, %159 : vector<4x256xf32>
    %162 = arith.mulf %156, %161 : vector<4x256xf32>
    %cst_63 = arith.constant dense<0.000000e+00> : vector<4x256xf32>
    %163 = tpu.matmul %8, %162, %cst_63 {dimension_numbers = #tpu.dot_dimension_numbers<[1], [0], [0], [1], [0, 0, 1, 1], [], []>} : vector<4x4xf32>, vector<4x256xf32>, vector<4x256xf32> -> vector<4x256xf32>
    %164 = vector.broadcast %19 : vector<4x1xf32> to vector<4x256xf32>
    %165 = arith.addf %163, %164 : vector<4x256xf32>
    %166 = arith.addf %165, %129 : vector<4x256xf32>
    %c0_64 = arith.constant 0 : index
    %c0_65 = arith.constant 0 : index
    %c0_66 = arith.constant 0 : index
    %167 = vector.load %arg5[%c0_64, %c0_65, %c0_66] : memref<1x4x256xf32, #tpu.memory_space<vmem>>, vector<1x4x256xf32>
    %168 = vector.shape_cast %167 : vector<1x4x256xf32> to vector<4x256xf32>
    %169 = vector.shape_cast %166 : vector<4x256xf32> to vector<1x4x256xf32>
    tpu.vector_store %arg5[%c0_64, %c0_65, %c0_66], %169 {strides = array<i32>} : memref<1x4x256xf32, #tpu.memory_space<vmem>>, vector<1x4x256xf32>,
    return
  }
  func.func @transform_0(%arg0: i32) -> (i32, i32, i32) {
    %c0_i32 = arith.constant 0 : i32
    %c0_i32_0 = arith.constant 0 : i32
    %c0_i32_1 = arith.constant 0 : i32
    return %arg0, %c0_i32, %c0_i32_0 : i32, i32, i32
  }
  func.func @transform_1(%arg0: i32) -> (i32, i32, i32) {
    %c0_i32 = arith.constant 0 : i32
    %c0_i32_0 = arith.constant 0 : i32
    %c0_i32_1 = arith.constant 0 : i32
    return %arg0, %c0_i32, %c0_i32_0 : i32, i32, i32
  }
  func.func @transform_2(%arg0: i32) -> (i32, i32) {
    %c0_i32 = arith.constant 0 : i32
    %c0_i32_0 = arith.constant 0 : i32
    %c0_i32_1 = arith.constant 0 : i32
    return %c0_i32, %c0_i32_0 : i32, i32
  }
  func.func @transform_3(%arg0: i32) -> (i32, i32) {
    %c0_i32 = arith.constant 0 : i32
    %c0_i32_0 = arith.constant 0 : i32
    %c0_i32_1 = arith.constant 0 : i32
    return %c0_i32, %c0_i32_0 : i32, i32
  }
  func.func @transform_4(%arg0: i32) -> (i32, i32, i32) {
    %c0_i32 = arith.constant 0 : i32
    %c0_i32_0 = arith.constant 0 : i32
    %c0_i32_1 = arith.constant 0 : i32
    return %arg0, %c0_i32, %c0_i32_0 : i32, i32, i32
  }
}

</mosaic_0001>

<bundles_post_ra>
// kernel: tpu_custom_call.1
= control target key start
LH: loop header
LB: loop body
LE: loop exit
PB: predicated region body
PF: predicated region fallthrough
CT: control target
= control target key end

     0   :  { %9 = vsyncpa [#allocation3], 0  ;;  %s7116_s0 = inlined_call_operand.vmem [shape: f32[2,4,256], index: 0, kind: input, shape index: {}]   ;;  %s7117_s1 = inlined_call_operand.vmem [shape: f32[2,256,4], index: 1, kind: input, shape index: {}]   ;;  %s7118_s2 = inlined_call_operand.vmem [shape: f32[48,4], index: 2, kind: input, shape index: {}]   ;;  %s7119_s3 = inlined_call_operand.vmem [shape: f32[64,1], index: 3, kind: input, shape index: {}]   ;;  %s7120_s4 = inlined_call_operand.hbm [shape: f32[2,4,256], index: 4, kind: output, shape index: {}]  }
   0x1   :  { %11 = vsyncpa [#allocation3 + $0x1], 0  ;;  %s4392_s15 = smov 0   ;;  %s4394_s16 = smov 0  }
   0x2   :  { %s4396_s17 = smov 0   ;;  %s4398_s18 = smov 0  }
   0x3 LB: > { %s4413_s19 = sadd.s32 4294967295, %s4362_s18   ;;  %s3577_s20 = sadd.s32 4294967294, %s4362_s18   ;;  %s4362_s18 = sphi %s4398_s18, %s7649_s18   ;;  %s4358_s17 = sphi %s4396_s17, %s7648_s17   ;;  %s4354_s16 = sphi %s4394_s16, %s7647_s16   ;;  %s4350_s15 = sphi %s4392_s15, %s7646_s15  }
   0x4   : > { %s4417_s21 = sadd.s32 1, %s4362_s18   ;;  %s118_s22 = sadd.s32 1, %s4358_s17 }
   0x5   : > { %s115_s23 = ssub.s32 %s4362_s18, %s4417_s21  ;;  %p128_p0 = scmp.ne.s32.totalorder %s4358_s17, %s4354_s16 }
   0x6   : > { %p116_p1 = scmp.eq.s32.totalorder %s115_s23, 0  ;;  %p129_p2 = scmp.eq.s32.totalorder %s4413_s19, 1 }
   0x7   : > { %p134_p3 = scmp.ne.s32.totalorder %s4354_s16, %s4350_s15  ;;  %p135_p4 = scmp.eq.s32.totalorder %s3577_s20, 1 }
   0x8   : > { %s4428_s24 = scalar_select %p116_p1, %s4358_s17, %s118_s22  }
   0x9   : > { %p4430_p5 = por %p129_p2, %p128_p0  ;;  %p4434_p6 = por %p135_p4, %p134_p3 }
   0xa   : > { %p3580_p7 = scmp.ge.s32.totalorder %s4362_s18, 1  ;;  %p175_p8 = scmp.lt.s32.totalorder %s4362_s18, 3 }
   0xc   : > { %p176_p9 = pnand %p3580_p7, %p175_p8 }
   0xe   : > { %179 = sbr.rel (%p176_p9) target bundleno = 2064 (0x810), region = 36 }
  0x13   : > { %p206_p10 = scmp.lt.s32.totalorder %s4413_s19, 1  ;;  %vm372_vm0 = vcmask 31744   ;;  %v4364_v38 = vmov 4.0   ;;  %vm271_vm2 = vcmask 1043456   ;;  %s203_s12 = sand.u32 1, %s4354_s16  }
  0x14   : > { %3836 = vrcp.f32 %v4364_v38  ;;  %s3784_s14 = sshll.u32 %s4413_s19, 3  ;;  %s4320_s8 = scalar_lea.hbm %s7120_s4, 16 }
  0x15   : > { %s4442_s27 = scalar_select %p206_p10, %s4413_s19, 1 }
  0x16   : > { %s3501_s23 = scalar_lea.hbm %s7120_s4, %s3784_s14  ;;  %s3490_s19 = scalar_lea.sflag [#allocation3], %s203_s12 }
  0x17   : > { %s3783_s28 = sshll.u32 %s4442_s27, 8  ;;  %s3782_s10 = sshll.u32 %s4442_s27, 3 }
  0x18   : > { %s4448_s5 = scalar_lea.vmem %s7117_s1, %s3783_s28  ;;  %s210_s13 = scalar_lea.vmem %s7116_s0, %s3782_s10 }
  0x19   : > { %v4451_v0 = vld [vmem:[%s4448_s5 + $0xc0] sm:$0xff]  ;;  %v4454_v1 = vld [vmem:[%s4448_s5 + $0xb8] sm:$0xff]  ;;  %v4457_v2 = vld [vmem:[%s4448_s5 + $0xc8] sm:$0xff]  ;;  %s3505_s29 = sshll.u32 %s3501_s23, 4  ;;  %s3506_s29 = int_to_ptr.hbm [resolvable:$true] %s3505_s29 }
  0x1a   : > { %v445_v3 = vsel %vm372_vm0, %v4451_v0, 0.0  ;;  %v442_v4 = vsel %vm372_vm0, %v4454_v1, 0.0  ;;  %v448_v5 = vsel %vm372_vm0, %v4457_v2, 0.0  ;;  %v4466_v6 = vld [vmem:[%s4448_s5 + $0x8] sm:$0xff]  ;;  %v4469_v7 = vld [vmem:[%s4448_s5] sm:$0xff]  ;;  %v4472_v8 = vld [vmem:[%s4448_s5 + $0x10] sm:$0xff]  ;;  %v3837_v39 = vpop.eup %3836 }
  0x1b   : > { %446 = vadd.xlane.f32.xlu1 %v445_v3  ;;  %443 = vadd.xlane.f32.xlu0 %v442_v4  ;;  %v376_v9 = vsel %vm372_vm0, %v4466_v6, 0.0  ;;  %v373_v10 = vsel %vm372_vm0, %v4469_v7, 0.0  ;;  %v379_v11 = vsel %vm372_vm0, %v4472_v8, 0.0  ;;  %v4481_v12 = vld [vmem:[%s4448_s5 + $0xd0] sm:$0xff]  ;;  %v4484_v13 = vld [vmem:[%s4448_s5 + $0xa8] sm:$0xff]  ;;  %v4487_v14 = vld [vmem:[%s4448_s5 + $0x18] sm:$0xff]  ;;  %vm291_vm1 = vweird.f32 %v3837_v39 }
  0x1c   : > { %449 = vadd.xlane.f32.xlu2 %v448_v5  ;;  %v451_v15 = vsel %vm372_vm0, %v4481_v12, 0.0  ;;  %v436_v16 = vsel %vm372_vm0, %v4484_v13, 0.0  ;;  %v382_v17 = vsel %vm372_vm0, %v4487_v14, 0.0  ;;  %v4496_v18 = vld [vmem:[%s4448_s5 + $0xb0] sm:$0xff]  ;;  %v4499_v19 = vld [vmem:[%s4448_s5 + $0xd8] sm:$0xff]  ;;  %v4502_v20 = vld [vmem:[%s4448_s5 + $0x20] sm:$0xff] }
  0x1d   : > { %v439_v21 = vsel %vm372_vm0, %v4496_v18, 0.0  ;;  %v454_v22 = vsel %vm372_vm0, %v4499_v19, 0.0  ;;  %v385_v23 = vsel %vm372_vm0, %v4502_v20, 0.0  ;;  %v4511_v24 = vld [vmem:[%s4448_s5 + $0x28] sm:$0xff]  ;;  %v4517_v26 = vld [vmem:[%s4448_s5 + $0x40] sm:$0xff]  ;;  %v4526_v30 = vld [vmem:[%s4448_s5 + $0x30] sm:$0xff] }
  0x1e   : > { %v4514_v25 = vld [vmem:[%s4448_s5 + $0x48] sm:$0xff]  ;;  %v388_v27 = vsel %vm372_vm0, %v4511_v24, 0.0  ;;  %v397_v29 = vsel %vm372_vm0, %v4517_v26, 0.0  ;;  %v4529_v31 = vld [vmem:[%s4448_s5 + $0x50] sm:$0xff]  ;;  %v391_v32 = vsel %vm372_vm0, %v4526_v30, 0.0  ;;  %v4536_v34 = vld [vmem:[%s4448_s5 + $0x38] sm:$0xff] }
  0x1f   : > { %v400_v28 = vsel %vm372_vm0, %v4514_v25, 0.0  ;;  %v403_v33 = vsel %vm372_vm0, %v4529_v31, 0.0  ;;  %v394_v35 = vsel %vm372_vm0, %v4536_v34, 0.0  ;;  %v4541_v36 = vld [vmem:[%s4448_s5 + $0x58] sm:$0xff]  ;;  %v287_v40 = vmul.f32 4.0, %v3837_v39  ;;  %s4314_s30 = sshra.s32 %s3506_s29, 4  ;;  %s4315_s30 = int_to_ptr.hbm [resolvable:$true] %s4314_s30 }
  0x20   : > { %v406_v37 = vsel %vm372_vm0, %v4541_v36, 0.0  ;;  %p4321_p0 = scmp.lt.s32.totalorder %s4315_s30, %s7120_s4 }
  0x21   : > { %v288_v41 = vsub.f32 1.0, %v287_v40 }
  0x23   : > { %377 = vadd.xlane.f32.xlu1 %v376_v9  ;;  %374 = vadd.xlane.f32.xlu0 %v373_v10  ;;  %v289_v42 = vmul.f32 %v3837_v39, %v288_v41 }
  0x24   : > { %380 = vadd.xlane.f32.xlu2 %v379_v11 }
  0x25   : > { %v290_v43 = vadd.f32 %v3837_v39, %v289_v42 }
  0x27   : > { %v4545_v44 = vsel %vm291_vm1, %v3837_v39, %v290_v43 }
  0x28   : > { %7285 = vst [vmem:[#allocation5_spill] sm:$0xff] %v4545_v44 }
  0x2b   : > { %452 = vadd.xlane.f32.xlu1 %v451_v15  ;;  %437 = vadd.xlane.f32.xlu0 %v436_v16 }
  0x2c   : > { %383 = vadd.xlane.f32.xlu2 %v382_v17 }
  0x33   : > { %440 = vadd.xlane.f32.xlu0 %v439_v21  ;;  %455 = vadd.xlane.f32.xlu1 %v454_v22 }
  0x34   : > { %386 = vadd.xlane.f32.xlu2 %v385_v23 }
  0x3b   : > { %389 = vadd.xlane.f32.xlu1 %v388_v27  ;;  %401 = vadd.xlane.f32.xlu0 %v400_v28 }
  0x3c   : > { %398 = vadd.xlane.f32.xlu2 %v397_v29 }
  0x43   : > { %392 = vadd.xlane.f32.xlu1 %v391_v32 }
  0x44   : > { %404 = vadd.xlane.f32.xlu2 %v403_v33  ;;  %v4365_v33 = vmov 0  }
  0x45   : > { %3831 = vset.pattern.permute.xlu0 %v4365_v33  ;;  %3830 = vset.pattern.permute.xlu2 %v4365_v33 }
  0x46   : > { %3832 = vset.pattern.permute.xlu1 %v4365_v33 }
  0x4b   : > { %395 = vadd.xlane.f32.xlu1 %v394_v35 }
  0x53   : > { %407 = vadd.xlane.f32.xlu1 %v406_v37 }
  0x8e   : > { %v447_v45 = vpop.xlane.xlu1 %446  ;;  %v444_v46 = vpop.xlane.xlu0 %443 }
  0x8f   : > { %v492_v47 = vmul.f32 %v444_v46, %v4545_v44  ;;  %v450_v48 = vpop.xlane.xlu2 %449  ;;  %v493_v49 = vmul.f32 %v447_v45, %v4545_v44 }
  0x90   : > { %v494_v58 = vmul.f32 %v450_v48, %v4545_v44 }
  0x91   : > { %v4550_v50 = vsub.f32 %v4454_v1, %v492_v47  ;;  %v4555_v52 = vsub.f32 %v4451_v0, %v493_v49 }
  0x92   : > { %v4569_v63 = vsub.f32 %v4457_v2, %v494_v58 }
  0x93   : > { %v556_v51 = vmul.f32 %v4550_v50, %v4550_v50  ;;  %v557_v60 = vmul.f32 %v4555_v52, %v4555_v52 }
  0x94   : > { %v558_v11 = vmul.f32 %v4569_v63, %v4569_v63 }
  0x95   : > { %v634_v53 = vsel %vm372_vm0, %v556_v51, 0.0  ;;  %v637_v0 = vsel %vm372_vm0, %v557_v60, 0.0 }
  0x96   : > { %v378_v54 = vpop.xlane.xlu1 %377  ;;  %635 = vadd.xlane.f32.xlu0 %v634_v53  ;;  %v375_v55 = vpop.xlane.xlu0 %374 }
  0x97   : > { %v469_v56 = vmul.f32 %v375_v55, %v4545_v44  ;;  %v381_v57 = vpop.xlane.xlu2 %380  ;;  %v470_v61 = vmul.f32 %v378_v54, %v4545_v44 }
  0x98   : > { %v471_v15 = vmul.f32 %v381_v57, %v4545_v44 }
  0x99   : > { %v4561_v59 = vsub.f32 %v4469_v7, %v469_v56  ;;  %v4574_v3 = vsub.f32 %v4466_v6, %v470_v61  ;;  %v4638_v56 = vld [vmem:[%s4448_s5 + $0x60] sm:$0xff]  ;;  %v4645_v61 = vld [vmem:[%s4448_s5 + $0x70] sm:$0xff] }
  0x9a   : > { %v4594_v22 = vsub.f32 %v4472_v8, %v471_v15 }
  0x9b   : > { %v533_v62 = vmul.f32 %v4561_v59, %v4561_v59  ;;  %v534_v6 = vmul.f32 %v4574_v3, %v4574_v3 }
  0x9c   : > { %v535_v39 = vmul.f32 %v4594_v22, %v4594_v22 }
  0x9d   : > { %v565_v1 = vsel %vm372_vm0, %v533_v62, 0.0  ;;  %v568_v23 = vsel %vm372_vm0, %v534_v6, 0.0 }
  0x9e   : > { %v453_v4 = vpop.xlane.xlu1 %452  ;;  %638 = vadd.xlane.f32.xlu0 %v637_v0  ;;  %566 = vadd.xlane.f32.xlu2 %v565_v1  ;;  %v438_v5 = vpop.xlane.xlu0 %437  ;;  %v571_v46 = vsel %vm372_vm0, %v535_v39, 0.0  ;;  %v415_v0 = vsel %vm372_vm0, %v4645_v61, 0.0 }
  0x9f   : > { %v495_v7 = vmul.f32 %v453_v4, %v4545_v44  ;;  %v384_v9 = vpop.xlane.xlu2 %383  ;;  %v490_v2 = vmul.f32 %v438_v5, %v4545_v44 }
  0xa0   : > { %v472_v8 = vmul.f32 %v384_v9, %v4545_v44 }
  0xa1   : > { %v4578_v10 = vsub.f32 %v4481_v12, %v495_v7  ;;  %v4589_v17 = vsub.f32 %v4484_v13, %v490_v2  ;;  %v640_v12 = vsel %vm372_vm0, %v558_v11, 0.0  ;;  %v258_v11 = vld [vmem:[%s7119_s3 + $0x8] sm:$0xf] }
  0xa2   : > { %v4617_v43 = vsub.f32 %v4487_v14, %v472_v8 }
  0xa3   : > { %v559_v16 = vmul.f32 %v4578_v10, %v4578_v10  ;;  %v554_v38 = vmul.f32 %v4589_v17, %v4589_v17 }
  0xa4   : > { %v536_v48 = vmul.f32 %v4617_v43, %v4617_v43 }
  0xa5   : > { %v643_v21 = vsel %vm372_vm0, %v559_v16, 0.0 }
  0xa6   : > { %644 = vadd.xlane.f32.xlu1 %v643_v21  ;;  %641 = vadd.xlane.f32.xlu0 %v640_v12  ;;  %v441_v27 = vpop.xlane.xlu0 %440  ;;  %v456_v28 = vpop.xlane.xlu1 %455  ;;  %v574_v54 = vsel %vm372_vm0, %v536_v48, 0.0 }
  0xa7   : > { %569 = vadd.xlane.f32.xlu2 %v568_v23  ;;  %v491_v29 = vmul.f32 %v441_v27, %v4545_v44  ;;  %v387_v32 = vpop.xlane.xlu2 %386  ;;  %v496_v35 = vmul.f32 %v456_v28, %v4545_v44  ;;  %v4677_v28 = vld [vmem:[%s4448_s5 + $0x78] sm:$0xff] }
  0xa8   : > { %v473_v13 = vmul.f32 %v387_v32, %v4545_v44 }
  0xa9   : > { %v4602_v37 = vsub.f32 %v4496_v18, %v491_v29  ;;  %v4614_v42 = vsub.f32 %v4499_v19, %v496_v35  ;;  %v628_v18 = vsel %vm372_vm0, %v554_v38, 0.0  ;;  %v418_v29 = vsel %vm372_vm0, %v4677_v28, 0.0  ;;  %v4690_v38 = vld [vmem:[%s4448_s5 + $0x80] sm:$0xff] }
  0xaa   : > { %v4609_v40 = vsub.f32 %v4502_v20, %v473_v13 }
  0xab   : > { %v555_v41 = vmul.f32 %v4602_v37, %v4602_v37  ;;  %v560_v14 = vmul.f32 %v4614_v42, %v4614_v42 }
  0xac   : > { %v537_v19 = vmul.f32 %v4609_v40, %v4609_v40 }
  0xad   : > { %v631_v45 = vsel %vm372_vm0, %v555_v41, 0.0  ;;  %v646_v53 = vsel %vm372_vm0, %v560_v14, 0.0  ;;  %v4697_v41 = vld [vmem:[%s4448_s5 + $0x68] sm:$0xff] }
  0xae   : > { %629 = vadd.xlane.f32.xlu0 %v628_v18  ;;  %632 = vadd.xlane.f32.xlu1 %v631_v45  ;;  %v390_v20 = vpop.xlane.xlu1 %389  ;;  %v577_v51 = vsel %vm372_vm0, %v537_v19, 0.0  ;;  %v402_v33 = vpop.xlane.xlu0 %401  ;;  %v421_v18 = vsel %vm372_vm0, %v4690_v38, 0.0 }
  0xaf   : > { %572 = vadd.xlane.f32.xlu2 %v571_v46  ;;  %v474_v47 = vmul.f32 %v390_v20, %v4545_v44  ;;  %v399_v2 = vpop.xlane.xlu2 %398  ;;  %v478_v35 = vmul.f32 %v402_v33, %v4545_v44  ;;  %v412_v46 = vsel %vm372_vm0, %v4697_v41, 0.0  ;;  %v4711_v20 = vld [vmem:[%s210_s13] sm:$0xff]  ;;  %s3581_s13 = sshll.u32 %s203_s12, 3 }
  0xb0   : > { %v477_v15 = vmul.f32 %v399_v2, %v4545_v44  ;;  %266 = vst [vmem:[#allocation1] ss:$2 sm:$0xff] %v4711_v20  ;;  %s205_s27 = scalar_lea.vmem [#allocation2], %s3581_s13 }
  0xb1   : > { %v4630_v49 = vsub.f32 %v4511_v24, %v474_v47  ;;  %v409_v24 = vsel %vm372_vm0, %v4638_v56, 0.0  ;;  %v4715_v47 = vld [vmem:[%s4448_s5 + $0x88] sm:$0xff]  ;;  %s3503_s28 = sshll.u32 %s205_s27, 4  ;;  %s3504_s28 = int_to_ptr.vmem [resolvable:$true] %s3503_s28 }
  0xb2   : > { %v4669_v6 = vsub.f32 %v4517_v26, %v477_v15  ;;  %v424_v14 = vsel %vm372_vm0, %v4715_v47, 0.0 }
  0xb3   : > { %v538_v55 = vmul.f32 %v4630_v49, %v4630_v49 }
  0xb4   : > { %v541_v21 = vmul.f32 %v4669_v6, %v4669_v6 }
  0xb5   : > { %v580_v58 = vsel %vm372_vm0, %v538_v55, 0.0 }
  0xb6   : > { %575 = vadd.xlane.f32.xlu0 %v574_v54  ;;  %578 = vadd.xlane.f32.xlu1 %v577_v51  ;;  %v393_v57 = vpop.xlane.xlu1 %392  ;;  %v589_v12 = vsel %vm372_vm0, %v541_v21, 0.0 }
  0xb7   : > { %647 = vadd.xlane.f32.xlu2 %v646_v53  ;;  %v475_v60 = vmul.f32 %v393_v57, %v4545_v44  ;;  %v405_v23 = vpop.xlane.xlu2 %404  ;;  %v268_v51 = vld.sshfl [vmem:[#allocation1 + $0x8] sm:$0xff pattern:$0x75316420]  ;;  %v267_v55 = vld.sshfl [vmem:[#allocation1] sm:$0xff pattern:$0x75316420] }
  0xb8   : > { %v479_v27 = vmul.f32 %v405_v23, %v4545_v44  ;;  %v4724_v53 = vld [vmem:[%s4448_s5 + $0xe8] sm:$0xff]  ;;  %v279_v54 = vsel %vm271_vm2, %v268_v51, 0.0 }
  0xb9   : > { %v4648_v62 = vsub.f32 %v4526_v30, %v475_v60  ;;  %v257_v30 = vld [vmem:[%s7119_s3] sm:$0xf]  ;;  %v280_v57 = vrot.slane %v279_v54, 4  ;;  %v460_v60 = vsel %vm372_vm0, %v4724_v53, 0.0 }
  0xba   : > { %v4680_v26 = vsub.f32 %v4529_v31, %v479_v27  ;;  %v4693_v31 = vsub.f32 %v4514_v25, %v478_v35 }
  0xbb   : > { %v539_v5 = vmul.f32 %v4648_v62, %v4648_v62 }
  0xbc   : > { %v543_v32 = vmul.f32 %v4680_v26, %v4680_v26  ;;  %v542_v25 = vmul.f32 %v4693_v31, %v4693_v31 }
  0xbd   : > { %v583_v9 = vsel %vm372_vm0, %v539_v5, 0.0 }
  0xbe   : > { %581 = vadd.xlane.f32.xlu0 %v580_v58  ;;  %410 = vadd.xlane.f32.xlu1 %v409_v24  ;;  %v396_v1 = vpop.xlane.xlu1 %395  ;;  %v595_v13 = vsel %vm372_vm0, %v543_v32, 0.0  ;;  %v592_v19 = vsel %vm372_vm0, %v542_v25, 0.0  ;;  %v4728_v58 = vld [vmem:[%s4448_s5 + $0x90] sm:$0xff]  ;;  %v272_v24 = vsel %vm271_vm2, %v267_v55, 0.0 }
  0xbf   : > { %v476_v4 = vmul.f32 %v396_v1, %v4545_v44  ;;  %v281_v1 = vadd.f32 %v280_v57, %v279_v54 }
  0xc1   : > { %v4656_v7 = vsub.f32 %v4536_v34, %v476_v4  ;;  %v427_v4 = vsel %vm372_vm0, %v4728_v58, 0.0 }
  0xc3   : > { %v540_v34 = vmul.f32 %v4656_v7, %v4656_v7 }
  0xc5   : > { %v586_v16 = vsel %vm372_vm0, %v540_v34, 0.0 }
  0xc6   : > { %416 = vadd.xlane.f32.xlu1 %v415_v0  ;;  %v408_v8 = vpop.xlane.xlu1 %407  ;;  %v273_v0 = vrot.slane %v272_v24, 4 }
  0xc7   : > { %v480_v39 = vmul.f32 %v408_v8, %v4545_v44 }
  0xc8   : > { %v274_v5 = vadd.f32 %v273_v0, %v272_v24 }
  0xc9   : > { %v4705_v45 = vsub.f32 %v4541_v36, %v480_v39 }
  0xcb   : > { %7286 = vst [vmem:[#allocation6_spill] sm:$0xff] %v4705_v45  ;;  %v544_v36 = vmul.f32 %v4705_v45, %v4705_v45 }
  0xcd   : > { %v598_v48 = vsel %vm372_vm0, %v544_v36, 0.0 }
  0xce   : > { %584 = vadd.xlane.f32.xlu1 %v583_v9  ;;  %v282_v9 = vrot.slane %v281_v1, 2 }
  0xcf   : > { %354 = vperm.xlu2 %3830, %v257_v30   ;;  %v275_v30 = vrot.slane %v274_v5, 2 }
  0xd0   : > { %v283_v2 = vadd.f32 %v282_v9, %v281_v1 }
  0xd1   : > { %v276_v15 = vadd.f32 %v275_v30, %v274_v5 }
  0xd2   : > { %364 = vperm.xlu0 %3831, %v258_v11   ;;  %v249_v11 = vld [vmem:[%s7118_s2] sm:$0xf]  ;;  %v284_v34 = vrot.slane %v283_v2, 1 }
  0xd3   : > { %3786 = vmatpush.msk.msra.mxu2 %vm271_vm2, %v249_v11  ;;  %3586 = vmatpush.msk.msra.mxu0 %vm271_vm2, %v249_v11  ;;  %v277_v21 = vrot.slane %v276_v15, 1 }
  0xd4   : > { %3785 = vmatpush.msk.msra.mxu1 %vm271_vm2, %v249_v11  ;;  %3787 = vmatpush.msk.msra.mxu3 %vm271_vm2, %v249_v11 }
  0xd5   : > { %v278_v27 = vadd.f32 %v277_v21, %v276_v15 }
  0xd6   : > { %587 = vadd.xlane.f32.xlu1 %v586_v16 }
  0xd7   : > { %v293_v33 = vmul.f32 %v4545_v44, %v278_v27 }
  0xde   : > { %590 = vadd.xlane.f32.xlu1 %v589_v12  ;;  %v285_v12 = vadd.f32 %v284_v34, %v283_v2 }
  0xe6   : > { %419 = vadd.xlane.f32.xlu1 %v418_v29  ;;  %v294_v29 = vmul.f32 %v4545_v44, %v285_v12 }
  0xee   : > { %596 = vadd.xlane.f32.xlu1 %v595_v13  ;;  %v297_v13 = vrot.slane %v294_v29, 4 }
  0xf0   : > { %v298_v35 = vsel %vm271_vm2, %v293_v33, %v297_v13 }
  0xf1   : > { %v4747_v8 = vsub.f32 %v4711_v20, %v298_v35  ;;  %v4785_v35 = vld [vmem:[%s7118_s2 + $0x28] ss:$0 sm:$0xff] }
  0xf6   : > { %422 = vadd.xlane.f32.xlu1 %v421_v18 }
  0xf8   : > { %413 = vadd.xlane.f32.xlu2 %v412_v46 }
  0xfc   : > { %593 = vadd.xlane.f32.xlu0 %v592_v19  ;;  %v301_v19 = vmul.f32 %v4747_v8, %v4747_v8 }
  0xfe   : > { %425 = vadd.xlane.f32.xlu1 %v424_v14  ;;  %303 = vst [vmem:[#allocation1] ss:$2 sm:$0xff] %v301_v19 }
 0x100   : > { %599 = vadd.xlane.f32.xlu2 %v598_v48 }
 0x104   : > { %461 = vadd.xlane.f32.xlu0 %v460_v60 }
 0x105   : > { %v304_v19 = vld.sshfl [vmem:[#allocation1] sm:$0xff pattern:$0x75316420] }
 0x106   : > { %428 = vadd.xlane.f32.xlu1 %v427_v4 }
 0x109   : > { %v636_v16 = vpop.xlane.xlu0 %635 }
 0x10a   : > { %v684_v23 = vmul.f32 %v636_v16, %v4545_v44 }
 0x10c   : > { %v716_v32 = vadd.f32 1e-05, %v684_v23 }
 0x10e   : > { %3838 = vrsqrt.f32 %v716_v32  ;;  %vm961_vm4 = vweird.f32 %v716_v32 }
 0x111   : > { %v567_v39 = vpop.xlane.xlu2 %566  ;;  %v639_v18 = vpop.xlane.xlu0 %638 }
 0x112   : > { %v661_v46 = vmul.f32 %v567_v39, %v4545_v44  ;;  %v685_v25 = vmul.f32 %v639_v18, %v4545_v44 }
 0x114   : > { %v3839_v36 = vpop.eup %3838  ;;  %v4753_v14 = vadd.f32 1e-05, %v661_v46  ;;  %v4755_v48 = vadd.f32 1e-05, %v685_v25 }
 0x115   : > { %v956_v51 = vmul.f32 %v3839_v36, %v716_v32  ;;  %vm962_vm3 = vweird.f32 %v3839_v36 }
 0x116   : > { %3840 = vrsqrt.f32 %v4753_v14  ;;  %vm963_vm5 = vmor %vm961_vm4, %vm962_vm3  ;;  %vm731_vm6 = vweird.f32 %v4753_v14  ;;  %vm971_vm8 = vweird.f32 %v4755_v48 }
 0x117   : > { %v957_v54 = vmul.f32 %v3839_v36, %v956_v51  ;;  %3842 = vrsqrt.f32 %v4755_v48 }
 0x119   : > { %v958_v55 = vmul.f32 0.5, %v957_v54  ;;  %v645_v57 = vpop.xlane.xlu1 %644  ;;  %v642_v24 = vpop.xlane.xlu0 %641 }
 0x11a   : > { %v687_v60 = vmul.f32 %v645_v57, %v4545_v44  ;;  %v570_v0 = vpop.xlane.xlu2 %569  ;;  %v686_v1 = vmul.f32 %v642_v24, %v4545_v44 }
 0x11b   : > { %v959_v4 = vsub.f32 1.5, %v958_v55  ;;  %v662_v5 = vmul.f32 %v570_v0, %v4545_v44 }
 0x11c   : > { %v4762_v9 = vpop.eup %3840  ;;  %v4764_v30 = vadd.f32 1e-05, %v687_v60  ;;  %v4766_v2 = vadd.f32 1e-05, %v686_v1  ;;  %v4807_v1 = vld [vmem:[%s7118_s2 + $0x29] ss:$0 sm:$0xff] }
 0x11d   : > { %v4768_v11 = vpop.eup %3842  ;;  %v960_v15 = vmul.f32 %v3839_v36, %v959_v4  ;;  %v726_v34 = vmul.f32 %v4762_v9, %v4753_v14  ;;  %v4772_v16 = vadd.f32 1e-05, %v662_v5  ;;  %v308_v4 = vsel %vm271_vm2, %v304_v19, 0.0 }
 0x11e   : > { %v966_v21 = vmul.f32 %v4768_v11, %v4755_v48  ;;  %3844 = vrsqrt.f32 %v4764_v30  ;;  %vm732_vm7 = vweird.f32 %v4762_v9  ;;  %vm972_vm9 = vweird.f32 %v4768_v11 }
 0x11f   : > { %v727_v12 = vmul.f32 %v4762_v9, %v726_v34  ;;  %3846 = vrsqrt.f32 %v4772_v16  ;;  %v964_v27 = vsel %vm963_vm5, %v3839_v36, %v960_v15  ;;  %vm4834_vm10 = vmor %vm731_vm6, %vm732_vm7  ;;  %vm741_vm11 = vweird.f32 %v4772_v16 }
 0x120   : > { %v967_v23 = vmul.f32 %v4768_v11, %v966_v21  ;;  %3848 = vrsqrt.f32 %v4766_v2  ;;  %v1068_v32 = vmul.f32 %v964_v27, %v4550_v50  ;;  %v305_v21 = vld.sshfl [vmem:[#allocation1 + $0x8] sm:$0xff pattern:$0x75316420]  ;;  %vm981_vm12 = vweird.f32 %v4766_v2  ;;  %vm4866_vm14 = vmor %vm971_vm8, %vm972_vm9 }
 0x121   : > { %v728_v29 = vmul.f32 0.5, %v727_v12  ;;  %v633_v33 = vpop.xlane.xlu1 %632  ;;  %v630_v13 = vpop.xlane.xlu0 %629  ;;  %vm991_vm6 = vweird.f32 %v4764_v30 }
 0x122   : > { %v968_v39 = vmul.f32 0.5, %v967_v23  ;;  %v573_v18 = vpop.xlane.xlu2 %572  ;;  %v683_v46 = vmul.f32 %v633_v33, %v4545_v44  ;;  %v682_v25 = vmul.f32 %v630_v13, %v4545_v44  ;;  %v1101_v0 = vmul.f32 %v4785_v35, %v1068_v32 }
 0x123   : > { %v729_v51 = vsub.f32 1.5, %v728_v29  ;;  %v663_v36 = vmul.f32 %v573_v18, %v4545_v44  ;;  %v309_v33 = vrot.slane %v308_v4, 4 }
 0x124   : > { %v4790_v54 = vpop.eup %3844  ;;  %v4793_v50 = vadd.f32 1e-05, %v683_v46  ;;  %v4795_v55 = vadd.f32 1e-05, %v682_v25  ;;  %v969_v15 = vsub.f32 1.5, %v968_v39  ;;  %v1134_v32 = vadd.f32 %v4807_v1, %v1101_v0 }
 0x125   : > { %v4797_v57 = vpop.eup %3846  ;;  %v986_v24 = vmul.f32 %v4790_v54, %v4764_v30  ;;  %v4801_v60 = vadd.f32 1e-05, %v663_v36  ;;  %v730_v12 = vmul.f32 %v4762_v9, %v729_v51  ;;  %v4828_v46 = vsel %vm271_vm2, %v305_v21, 0.0 }
 0x126   : > { %v4810_v5 = vpop.eup %3848  ;;  %v736_v34 = vmul.f32 %v4797_v57, %v4772_v16  ;;  %3850 = vrsqrt.f32 %v4793_v50  ;;  %v970_v19 = vmul.f32 %v4768_v11, %v969_v15  ;;  %3610 = vmatmul.msk.f32.vlgmr.msra.gmra.mxu2 %vm372_vm0, %v1134_v32  ;;  %vm742_vm13 = vweird.f32 %v4797_v57 }
 0x127   : > { %v987_v23 = vmul.f32 %v4790_v54, %v986_v24  ;;  %v976_v27 = vmul.f32 %v4810_v5, %v4766_v2  ;;  %3852 = vrsqrt.f32 %v4801_v60  ;;  %vm982_vm15 = vweird.f32 %v4810_v5  ;;  %vm4902_vm4 = vmor %vm741_vm11, %vm742_vm13 }
 0x128   : > { %v737_v29 = vmul.f32 %v4797_v57, %v736_v34  ;;  %3854 = vrsqrt.f32 %v4795_v55  ;;  %v974_v48 = vsel %vm4866_vm14, %v4768_v11, %v970_v19  ;;  %vm751_vm1 = vweird.f32 %v4801_v60  ;;  %vm4919_vm7 = vmor %vm981_vm12, %vm982_vm15 }
 0x129   : > { %v977_v13 = vmul.f32 %v4810_v5, %v976_v27  ;;  %v579_v39 = vpop.xlane.xlu1 %578  ;;  %v576_v18 = vpop.xlane.xlu0 %575  ;;  %v988_v34 = vmul.f32 0.5, %v987_v23  ;;  %v734_v27 = vsel %vm4834_vm10, %v4762_v9, %v730_v12  ;;  %vm992_vm3 = vweird.f32 %v4790_v54 }
 0x12a   : > { %v738_v51 = vmul.f32 0.5, %v737_v29  ;;  %v648_v36 = vpop.xlane.xlu2 %647  ;;  %v665_v24 = vmul.f32 %v579_v39, %v4545_v44  ;;  %v664_v0 = vmul.f32 %v576_v18, %v4545_v44  ;;  %v4850_v29 = vadd.f32 %v309_v33, %v308_v4  ;;  %vm4990_vm15 = vmor %vm991_vm6, %vm992_vm3 }
 0x12b   : > { %v978_v21 = vmul.f32 0.5, %v977_v13  ;;  %v688_v14 = vmul.f32 %v648_v36, %v4545_v44  ;;  %v989_v36 = vsub.f32 1.5, %v988_v34  ;;  %vm941_vm5 = vweird.f32 %v4795_v55 }
 0x12c   : > { %v4847_v45 = vpop.eup %3850  ;;  %v739_v15 = vsub.f32 1.5, %v738_v51  ;;  %v4858_v32 = vadd.f32 1e-05, %v665_v24  ;;  %v4874_v25 = vadd.f32 1e-05, %v664_v0  ;;  %v1045_v51 = vmul.f32 %v734_v27, %v4561_v59 }
 0x12d   : > { %v4853_v18 = vpop.eup %3852  ;;  %v979_v23 = vsub.f32 1.5, %v978_v21  ;;  %v946_v13 = vmul.f32 %v4847_v45, %v4793_v50  ;;  %v4872_v33 = vadd.f32 1e-05, %v688_v14  ;;  %v4895_v4 = vmul.f32 %v4790_v54, %v989_v36 }
 0x12e   : > { %v4860_v9 = vpop.eup %3854  ;;  %v746_v12 = vmul.f32 %v4853_v18, %v4801_v60  ;;  %v740_v39 = vmul.f32 %v4797_v57, %v739_v15  ;;  %v1078_v19 = vmul.f32 %v4785_v35, %v1045_v51  ;;  %v1069_v15 = vmul.f32 %v974_v48, %v4555_v52 }
 0x12f   : > { %v947_v24 = vmul.f32 %v4847_v45, %v946_v13  ;;  %v936_v21 = vmul.f32 %v4860_v9, %v4795_v55  ;;  %3856 = vrsqrt.f32 %v4872_v33  ;;  %v980_v59 = vmul.f32 %v4810_v5, %v979_v23 }
 0x130   : > { %v747_v14 = vmul.f32 %v4853_v18, %v746_v12  ;;  %3858 = vrsqrt.f32 %v4858_v32  ;;  %v1111_v36 = vadd.f32 %v4807_v1, %v1078_v19  ;;  %v744_v16 = vsel %vm4902_vm4, %v4797_v57, %v740_v39 }
 0x131   : > { %v948_v0 = vmul.f32 0.5, %v947_v24  ;;  %v937_v34 = vmul.f32 %v4860_v9, %v936_v21  ;;  %v411_v27 = vpop.xlane.xlu1 %410  ;;  %v582_v13 = vpop.xlane.xlu0 %581  ;;  %3860 = vrsqrt.f32 %v4874_v25  ;;  %v1102_v21 = vmul.f32 %v4785_v35, %v1069_v15 }
 0x132   : > { %v748_v11 = vmul.f32 0.5, %v747_v14  ;;  %v481_v51 = vmul.f32 %v411_v27, %v4545_v44  ;;  %v666_v52 = vmul.f32 %v582_v13, %v4545_v44  ;;  %vm952_vm8 = vweird.f32 %v4847_v45  ;;  %3587 = vmatmul.msk.f32.vlgmr.msra.gmra.mxu0 %vm372_vm0, %v1111_v36 }
 0x133   : > { %v938_v12 = vmul.f32 0.5, %v937_v34  ;;  %v949_v14 = vsub.f32 1.5, %v948_v0  ;;  %v1135_v57 = vadd.f32 %v4807_v1, %v1102_v21  ;;  %v1046_v2 = vmul.f32 %v744_v16, %v4574_v3 }
 0x134   : > { %v749_v24 = vsub.f32 1.5, %v748_v11  ;;  %v4924_v27 = vadd.f32 1e-05, %v666_v52  ;;  %v4931_v39 = vsub.f32 %v4638_v56, %v481_v51  ;;  %v984_v0 = vsel %vm4919_vm7, %v4810_v5, %v980_v59 }
 0x135   : > { %v939_v34 = vsub.f32 1.5, %v938_v12  ;;  %v4926_v13 = vpop.eup %3856  ;;  %vm752_vm9 = vweird.f32 %v4853_v18  ;;  %vm942_vm10 = vweird.f32 %v4860_v9  ;;  %vm1001_vm11 = vweird.f32 %v4872_v33  ;;  %3611 = vmatmul.msk.f32.gmra.mxu2 %vm372_vm0, %v1135_v57 }
 0x136   : > { %v4937_v11 = vpop.eup %3858  ;;  %v750_v19 = vmul.f32 %v4853_v18, %v749_v24  ;;  %v996_v15 = vmul.f32 %v4926_v13, %v4872_v33  ;;  %3862 = vrsqrt.f32 %v4924_v27  ;;  %v1079_v56 = vmul.f32 %v4785_v35, %v1046_v2  ;;  %vm753_vm12 = vmor %vm751_vm1, %vm752_vm9 }
 0x137   : > { %v4944_v23 = vpop.eup %3860  ;;  %v766_v3 = vmul.f32 %v4937_v11, %v4858_v32  ;;  %v940_v5 = vmul.f32 %v4860_v9, %v939_v34  ;;  %v1070_v51 = vmul.f32 %v984_v0, %v4569_v63  ;;  %v950_v24 = vmul.f32 %v4847_v45, %v949_v14  ;;  %vm4973_vm13 = vmor %vm941_vm5, %vm942_vm10 }
 0x138   : > { %v997_v59 = vmul.f32 %v4926_v13, %v996_v15  ;;  %v756_v12 = vmul.f32 %v4944_v23, %v4874_v25  ;;  %v1112_v21 = vadd.f32 %v4807_v1, %v1079_v56  ;;  %v545_v16 = vmul.f32 %v4931_v39, %v4931_v39  ;;  %v5069_v56 = vld [vmem:[%s4448_s5 + $0xf0] sm:$0xff] }
 0x139   : > { %v4957_v52 = vpop.xlane.xlu1 %416  ;;  %v767_v36 = vmul.f32 %v4937_v11, %v766_v3  ;;  %v1103_v57 = vmul.f32 %v4785_v35, %v1070_v51  ;;  %v754_v63 = vsel %vm753_vm12, %v4853_v18, %v750_v19  ;;  %vm1002_vm14 = vweird.f32 %v4926_v13  ;;  %v5013_v51 = vld [vmem:[%s4448_s5 + $0xe0] sm:$0xff] }
 0x13a   : > { %v998_v48 = vmul.f32 0.5, %v997_v59  ;;  %v757_v34 = vmul.f32 %v4944_v23, %v756_v12  ;;  %v601_v2 = vsel %vm372_vm0, %v545_v16, 0.0  ;;  %v1047_v0 = vmul.f32 %v754_v63, %v4594_v22  ;;  %3588 = vmatmul.msk.f32.gmra.mxu0 %vm372_vm0, %v1112_v21  ;;  %vm5019_vm3 = vmor %vm1001_vm11, %vm1002_vm14 }
 0x13b   : > { %v768_v14 = vmul.f32 0.5, %v767_v36  ;;  %v1136_v19 = vadd.f32 %v4807_v1, %v1103_v57  ;;  %602 = vadd.xlane.f32.xlu2 %v601_v2  ;;  %v944_v55 = vsel %vm4973_vm13, %v4860_v9, %v940_v5  ;;  %vm951_vm1 = vweird.f32 %v4793_v50 }
 0x13c   : > { %v4980_v15 = vpop.eup %3862  ;;  %v999_v3 = vsub.f32 1.5, %v998_v48  ;;  %v758_v18 = vmul.f32 0.5, %v757_v34  ;;  %vm762_vm4 = vweird.f32 %v4944_v23  ;;  %v1080_v59 = vmul.f32 %v4785_v35, %v1047_v0  ;;  %vm5002_vm5 = vmor %vm951_vm1, %vm952_vm8 }
 0x13d   : > { %v776_v22 = vmul.f32 %v4980_v15, %v4924_v27  ;;  %v1066_v50 = vmul.f32 %v944_v55, %v4589_v17  ;;  %v994_v12 = vsel %vm4990_vm15, %v4790_v54, %v4895_v4  ;;  %v769_v21 = vsub.f32 1.5, %v768_v14  ;;  %3612 = vmatmul.msk.f32.gmra.mxu2 %vm372_vm0, %v1136_v19  ;;  %v5061_v19 = vld [vmem:[%s4448_s5 + $0x98] sm:$0xff] }
 0x13e   : > { %v1000_v30 = vmul.f32 %v4926_v13, %v999_v3  ;;  %v759_v5 = vsub.f32 1.5, %v758_v18  ;;  %vm761_vm6 = vweird.f32 %v4874_v25  ;;  %v1071_v17 = vmul.f32 %v994_v12, %v4578_v10 }
 0x13f   : > { %v7303_v54 = vrot.slane %v4828_v46, 4  ;;  %v777_v48 = vmul.f32 %v4980_v15, %v776_v22  ;;  %v1099_v33 = vmul.f32 %v4785_v35, %v1066_v50  ;;  %v954_v57 = vsel %vm5002_vm5, %v4847_v45, %v950_v24  ;;  %vm763_vm7 = vmor %vm761_vm6, %vm762_vm4 }
 0x140   : > { %v760_v16 = vmul.f32 %v4944_v23, %v759_v5  ;;  %v1113_v10 = vadd.f32 %v4807_v1, %v1080_v59  ;;  %v1104_v25 = vmul.f32 %v4785_v35, %v1071_v17  ;;  %v1067_v2 = vmul.f32 %v954_v57, %v4602_v37 }
 0x141   : > { %v317_v4 = vadd.f32 %v7303_v54, %v4828_v46  ;;  %v585_v34 = vpop.xlane.xlu1 %584  ;;  %v457_v46 = vsel %vm372_vm0, %v5013_v51, 0.0  ;;  %v1132_v60 = vadd.f32 %v4807_v1, %v1099_v33  ;;  %v1004_v45 = vsel %vm5019_vm3, %v4926_v13, %v1000_v30 }
 0x142   : > { %v667_v63 = vmul.f32 %v585_v34, %v4545_v44  ;;  %v764_v14 = vsel %vm763_vm7, %v4944_v23, %v760_v16  ;;  %v770_v24 = vmul.f32 %v4937_v11, %v769_v21  ;;  %vm772_vm8 = vweird.f32 %v4937_v11  ;;  %3589 = vmatmul.msk.f32.gmra.mxu0 %vm372_vm0, %v1113_v10 }
 0x143   : > { %v1048_v3 = vmul.f32 %v764_v14, %v4617_v43  ;;  %v778_v18 = vmul.f32 0.5, %v777_v48  ;;  %3608 = vmatmul.msk.f32.vlgmr.msra.gmra.mxu1 %vm372_vm0, %v1132_v60  ;;  %458 = vadd.xlane.f32.xlu2 %v457_v46  ;;  %v1072_v23 = vmul.f32 %v1004_v45, %v4614_v42  ;;  %vm771_vm9 = vweird.f32 %v4858_v32  ;;  %v5098_v46 = vld [vmem:[%s4448_s5 + $0xa0] sm:$0xff] }
 0x144   : > { %v5050_v0 = vadd.f32 1e-05, %v667_v63  ;;  %v1137_v37 = vadd.f32 %v4807_v1, %v1104_v25  ;;  %vm5063_vm10 = vmor %vm771_vm9, %vm772_vm8  ;;  %v1100_v55 = vmul.f32 %v4785_v35, %v1067_v2  ;;  %v311_v22 = vrot.slane %v4850_v29, 2 }
 0x145   : > { %v1081_v13 = vmul.f32 %v4785_v35, %v1048_v3  ;;  %v1105_v42 = vmul.f32 %v4785_v35, %v1072_v23  ;;  %v774_v32 = vsel %vm5063_vm10, %v4937_v11, %v770_v24  ;;  %v318_v59 = vrot.slane %v317_v4, 2 }
 0x146   : > { %3864 = vrsqrt.f32 %v5050_v0  ;;  %3613 = vmatmul.msk.f32.gmra.mxu2 %vm372_vm0, %v1137_v37  ;;  %v779_v9 = vsub.f32 1.5, %v778_v18  ;;  %v430_v30 = vsel %vm372_vm0, %v5061_v19, 0.0  ;;  %v463_v50 = vsel %vm372_vm0, %v5069_v56, 0.0 }
 0x147   : > { %v1114_v12 = vadd.f32 %v4807_v1, %v1081_v13  ;;  %v312_v21 = vadd.f32 %v311_v22, %v4850_v29  ;;  %v319_v17 = vadd.f32 %v318_v59, %v317_v4  ;;  %464 = vadd.xlane.f32.xlu0 %v463_v50  ;;  %vm781_vm11 = vweird.f32 %v4924_v27 }
 0x148   : > { %vm782_vm12 = vweird.f32 %v4980_v15  ;;  %v1133_v11 = vadd.f32 %v4807_v1, %v1100_v55  ;;  %v1049_v54 = vmul.f32 %v774_v32, %v4609_v40  ;;  %v1138_v48 = vadd.f32 %v4807_v1, %v1105_v42 }
 0x149   : > { %v588_v5 = vpop.xlane.xlu1 %587  ;;  %v313_v34 = vrot.slane %v312_v21, 1  ;;  %v320_v57 = vrot.slane %v319_v17, 1  ;;  %v780_v10 = vmul.f32 %v4980_v15, %v779_v9  ;;  %vm5092_vm13 = vmor %vm781_vm11, %vm782_vm12  ;;  %vm791_vm14 = vweird.f32 %v5050_v0  ;;  %v5122_v9 = vld [vmem:[%s4448_s5 + $0xf8] sm:$0xff]  ;;  %s4316_s5 = scalar_lea.hbm %s4315_s30, 8 }
 0x14a   : > { %v668_v36 = vmul.f32 %v588_v5, %v4545_v44  ;;  %3590 = vmatmul.msk.f32.gmra.mxu0 %vm372_vm0, %v1114_v12  ;;  %v1082_v63 = vmul.f32 %v4785_v35, %v1049_v54  ;;  %v433_v23 = vsel %vm372_vm0, %v5098_v46, 0.0  ;;  %p4317_p11 = scmp.ne.s32.totalorder %s4315_s30, %s4316_s5  ;;  %p4322_p1 = scmp.lt.s32.totalorder %s4320_s8, %s4316_s5 }
 0x14b   : > { %3609 = vmatmul.msk.f32.gmra.mxu1 %vm372_vm0, %v1133_v11  ;;  %431 = vadd.xlane.f32.xlu2 %v430_v30  ;;  %v314_v40 = vadd.f32 %v313_v34, %v312_v21  ;;  %v321_v4 = vadd.f32 %v320_v57, %v319_v17  ;;  %v784_v24 = vsel %vm5092_vm13, %v4980_v15, %v780_v10 }
 0x14c   : > { %v3865_v16 = vpop.eup %3864  ;;  %v700_v33 = vadd.f32 1e-05, %v668_v36  ;;  %v1050_v15 = vmul.f32 %v784_v24, %v4630_v49  ;;  %v466_v36 = vsel %vm372_vm0, %v5122_v9, 0.0  ;;  %p4318_p12 = pnand %p4317_p11, %p4430_p5  ;;  %p4323_p2 = por %p4322_p1, %p4321_p0 }
 0x14d   : > { %v786_v29 = vmul.f32 %v3865_v16, %v5050_v0  ;;  %v322_v60 = vmul.f32 %v314_v40, %v4545_v44  ;;  %v323_v14 = vmul.f32 %v321_v4, %v4545_v44  ;;  %vm792_vm15 = vweird.f32 %v3865_v16 }
 0x14e   : > { %3866 = vrsqrt.f32 %v700_v33  ;;  %3614 = vmatmul.msk.f32.gmra.mxu2 %vm372_vm0, %v1138_v48  ;;  %vm5113_vm1 = vmor %vm791_vm14, %vm792_vm15  ;;  %v1115_v0 = vadd.f32 %v4807_v1, %v1082_v63  ;;  %v1083_v5 = vmul.f32 %v4785_v35, %v1050_v15  ;;  %vm801_vm4 = vweird.f32 %v700_v33  ;;  %p4319_p13 = pneg %p4318_p12 }
 0x14f   : > { %v787_v25 = vmul.f32 %v3865_v16, %v786_v29  ;;  %v324_v3 = vadd.f32 1e-05, %v322_v60  ;;  %v5108_v18 = vadd.f32 1e-05, %v323_v14  ;;  %v4366_v63 = vmov 839922192  }
 0x150   : > { %v357_v60 = vunpack.c.l.s4 %v4366_v63  ;;  %p4324_p3 = pnand %p4323_p2, %p4319_p13 }
 0x151   : > { %v788_v2 = vmul.f32 0.5, %v787_v25  ;;  %v591_v45 = vpop.xlane.xlu1 %590  ;;  %3868 = vrsqrt.f32 %v324_v3  ;;  %vm332_vm6 = vweird.f32 %v324_v3  ;;  %vm342_vm8 = vweird.f32 %v5108_v18 }
 0x152   : > { %v669_v37 = vmul.f32 %v591_v45, %v4545_v44  ;;  %3870 = vrsqrt.f32 %v5108_v18  ;;  %3591 = vmatmul.msk.f32.gmra.mxu0 %vm372_vm0, %v1115_v0  ;;  %v355_v0 = vpop.permute.xlu2 %354 }
 0x153   : > { %v789_v13 = vsub.f32 1.5, %v788_v2  ;;  %434 = vadd.xlane.f32.xlu2 %v433_v23 }
 0x154   : > { %v3867_v43 = vpop.eup %3866  ;;  %v701_v42 = vadd.f32 1e-05, %v669_v37 }
 0x155   : > { %v790_v32 = vmul.f32 %v3865_v16, %v789_v13  ;;  %v796_v22 = vmul.f32 %v3867_v43, %v700_v33  ;;  %vm802_vm5 = vweird.f32 %v3867_v43  ;;  %v1116_v33 = vadd.f32 %v4807_v1, %v1083_v5 }
 0x156   : > { %3872 = vrsqrt.f32 %v701_v42  ;;  %vm5132_vm3 = vmor %vm801_vm4, %vm802_vm5  ;;  %vm811_vm10 = vweird.f32 %v701_v42 }
 0x157   : > { %v797_v59 = vmul.f32 %v3867_v43, %v796_v22  ;;  %v794_v30 = vsel %vm5113_vm1, %v3865_v16, %v790_v32  ;;  %v3869_v12 = vpop.eup %3868  ;;  %v358_v32 = vunpack.c.0.s8 %v357_v60 }
 0x158   : > { %v1051_v21 = vmul.f32 %v794_v30, %v4648_v62  ;;  %v3871_v17 = vpop.eup %3870  ;;  %v327_v54 = vmul.f32 %v3869_v12, %v324_v3  ;;  %vm333_vm7 = vweird.f32 %v3869_v12 }
 0x159   : > { %v798_v50 = vmul.f32 0.5, %v797_v59  ;;  %v5127_v49 = vpop.xlane.xlu1 %419  ;;  %v337_v16 = vmul.f32 %v3871_v17, %v5108_v18  ;;  %vm343_vm9 = vweird.f32 %v3871_v17  ;;  %vm5144_vm12 = vmor %vm332_vm6, %vm333_vm7 }
 0x15a   : > { %v328_v10 = vmul.f32 %v3869_v12, %v327_v54  ;;  %3592 = vmatmul.msk.f32.gmra.mxu0 %vm372_vm0, %v1116_v33  ;;  %v1084_v62 = vmul.f32 %v4785_v35, %v1051_v21  ;;  %vm344_vm13 = vmor %vm342_vm8, %vm343_vm9 }
 0x15b   : > { %v799_v11 = vsub.f32 1.5, %v798_v50  ;;  %467 = vadd.xlane.f32.xlu2 %v466_v36  ;;  %v338_v27 = vmul.f32 %v3871_v17, %v337_v16  ;;  %v365_v50 = vpop.permute.xlu0 %364 }
 0x15c   : > { %v3873_v48 = vpop.eup %3872  ;;  %v329_v40 = vmul.f32 0.5, %v328_v10  ;;  %v1117_v13 = vadd.f32 %v4807_v1, %v1084_v62  ;;  %v369_v34 = vperm.slane %v365_v50, %v358_v32 }
 0x15d   : > { %v800_v57 = vmul.f32 %v3867_v43, %v799_v11  ;;  %v806_v29 = vmul.f32 %v3873_v48, %v701_v42  ;;  %v339_v14 = vmul.f32 0.5, %v338_v27  ;;  %vm812_vm11 = vweird.f32 %v3873_v48 }
 0x15e   : > { %v330_v2 = vsub.f32 1.5, %v329_v40  ;;  %vm5151_vm14 = vmor %vm811_vm10, %vm812_vm11  ;;  %v359_v11 = vperm.slane %v355_v0, %v358_v32 }
 0x15f   : > { %v807_v4 = vmul.f32 %v3873_v48, %v806_v29  ;;  %v804_v25 = vsel %vm5132_vm3, %v3867_v43, %v800_v57  ;;  %v340_v37 = vsub.f32 1.5, %v339_v14  ;;  %v483_v29 = vmul.f32 %v4957_v52, %v4545_v44 }
 0x160   : > { %v1052_v55 = vmul.f32 %v804_v25, %v4656_v7  ;;  %v331_v18 = vmul.f32 %v3869_v12, %v330_v2 }
 0x161   : > { %v808_v45 = vmul.f32 0.5, %v807_v4  ;;  %v597_v24 = vpop.xlane.xlu1 %596  ;;  %v341_v42 = vmul.f32 %v3871_v17, %v340_v37  ;;  %v5185_v63 = vsub.f32 %v4645_v61, %v483_v29  ;;  %v484_v37 = vmul.f32 %v5127_v49, %v4545_v44 }
 0x162   : > { %v671_v43 = vmul.f32 %v597_v24, %v4545_v44  ;;  %v335_v30 = vsel %vm5144_vm12, %v3869_v12, %v331_v18  ;;  %3593 = vmatmul.msk.f32.gmra.mxu0 %vm372_vm0, %v1117_v13  ;;  %v1085_v7 = vmul.f32 %v4785_v35, %v1052_v55 }
 0x163   : > { %v809_v15 = vsub.f32 1.5, %v808_v45  ;;  %v345_v5 = vsel %vm344_vm13, %v3871_v17, %v341_v42  ;;  %v5203_v42 = vsub.f32 %v4677_v28, %v484_v37 }
 0x164   : > { %v5155_v59 = vadd.f32 1e-05, %v671_v43  ;;  %v348_v36 = vrot.slane %v345_v5, 4  ;;  %v1118_v12 = vadd.f32 %v4807_v1, %v1085_v7  ;;  %v547_v43 = vmul.f32 %v5185_v63, %v5185_v63 }
 0x165   : > { %v810_v3 = vmul.f32 %v3873_v48, %v809_v15 }
 0x166   : > { %v349_v54 = vsel %vm271_vm2, %v335_v30, %v348_v36  ;;  %3874 = vrsqrt.f32 %v5155_v59  ;;  %v607_v49 = vsel %vm372_vm0, %v547_v43, 0.0  ;;  %vm831_vm4 = vweird.f32 %v5155_v59 }
 0x167   : > { %v814_v21 = vsel %vm5151_vm14, %v3873_v48, %v810_v3  ;;  %v351_v33 = vmul.f32 %v349_v54, %v4747_v8 }
 0x168   : > { %v1053_v57 = vmul.f32 %v814_v21, %v4669_v6 }
 0x169   : > { %v423_v16 = vpop.xlane.xlu1 %422  ;;  %v361_v48 = vmul.f32 %v359_v11, %v351_v33 }
 0x16a   : > { %v485_v17 = vmul.f32 %v423_v16, %v4545_v44  ;;  %3594 = vmatmul.msk.f32.gmra.mxu0 %vm372_vm0, %v1118_v12  ;;  %v1086_v4 = vmul.f32 %v4785_v35, %v1053_v57 }
 0x16b   : > { %v414_v10 = vpop.xlane.xlu2 %413  ;;  %v371_v40 = vadd.f32 %v369_v34, %v361_v48 }
 0x16c   : > { %v5172_v27 = vsub.f32 %v4690_v38, %v485_v17  ;;  %v482_v62 = vmul.f32 %v414_v10, %v4545_v44  ;;  %v5182_v25 = vpop.eup %3874  ;;  %v1119_v45 = vadd.f32 %v4807_v1, %v1086_v4 }
 0x16d   : > { %1394 = vst [vmem:[#allocation1] ss:$2 sm:$0xff] %v371_v40  ;;  %v826_v2 = vmul.f32 %v5182_v25, %v5155_v59  ;;  %vm832_vm5 = vweird.f32 %v5182_v25 }
 0x16e   : > { %v5177_v8 = vsub.f32 %v4697_v41, %v482_v62  ;;  %v549_v6 = vmul.f32 %v5172_v27, %v5172_v27  ;;  %vm833_vm6 = vmor %vm831_vm4, %vm832_vm5 }
 0x16f   : > { %v594_v52 = vpop.xlane.xlu0 %593  ;;  %v827_v55 = vmul.f32 %v5182_v25, %v826_v2 }
 0x170   : > { %v670_v38 = vmul.f32 %v594_v52, %v4545_v44  ;;  %v613_v60 = vsel %vm372_vm0, %v549_v6, 0.0  ;;  %v546_v41 = vmul.f32 %v5177_v8, %v5177_v8 }
 0x171   : > { %v426_v14 = vpop.xlane.xlu1 %425  ;;  %614 = vadd.xlane.f32.xlu0 %v613_v60  ;;  %v828_v30 = vmul.f32 0.5, %v827_v55 }
 0x172   : > { %v702_v24 = vadd.f32 1e-05, %v670_v38  ;;  %v604_v23 = vsel %vm372_vm0, %v546_v41, 0.0  ;;  %3595 = vmatmul.msk.f32.gmra.mxu0 %vm372_vm0, %v1119_v45  ;;  %v486_v28 = vmul.f32 %v426_v14, %v4545_v44 }
 0x173   : > { %v600_v61 = vpop.xlane.xlu2 %599  ;;  %605 = vadd.xlane.f32.xlu1 %v604_v23  ;;  %v829_v54 = vsub.f32 1.5, %v828_v30  ;;  %v7316_v23 = vld [vmem:[#allocation6_spill] sm:$0xff] }
 0x174   : > { %3876 = vrsqrt.f32 %v702_v24  ;;  %v672_v13 = vmul.f32 %v600_v61, %v4545_v44  ;;  %v1395_v18 = vld.sshfl [vmem:[#allocation1] sm:$0xff pattern:$0x75316420]  ;;  %v1396_v15 = vld.sshfl [vmem:[#allocation1 + $0x8] sm:$0xff pattern:$0x75316420]  ;;  %vm821_vm15 = vweird.f32 %v702_v24  ;;  %v5223_v17 = vsub.f32 %v4715_v47, %v486_v28 }
 0x175   : > { %3619 = vmatpush.msk.msrb.mxu1 %vm271_vm2, %v1395_v18  ;;  %3621 = vmatpush.msk.msrb.mxu2 %vm271_vm2, %v1396_v15  ;;  %3204 = vst [vmem:[#allocation1] ss:$2 sm:$0xff] %v4711_v20  ;;  %v548_v20 = vmul.f32 %v5203_v42, %v5203_v42  ;;  %v830_v48 = vmul.f32 %v5182_v25, %v829_v54 }
 0x176   : > { %v704_v0 = vadd.f32 1e-05, %v672_v13  ;;  %v550_v40 = vmul.f32 %v5223_v17, %v5223_v17 }
 0x177   : > { %v462_v32 = vpop.xlane.xlu0 %461  ;;  %v610_v57 = vsel %vm372_vm0, %v548_v20, 0.0  ;;  %v834_v38 = vsel %vm833_vm6, %v5182_v25, %v830_v48 }
 0x178   : > { %3878 = vrsqrt.f32 %v704_v0  ;;  %v498_v50 = vmul.f32 %v462_v32, %v4545_v44  ;;  %v616_v60 = vsel %vm372_vm0, %v550_v40, 0.0  ;;  %vm841_vm7 = vweird.f32 %v704_v0 }
 0x179   : > { %v429_v22 = vpop.xlane.xlu1 %428  ;;  %v1055_v2 = vmul.f32 %v834_v38, %v4680_v26 }
 0x17a   : > { %v3877_v3 = vpop.eup %3876  ;;  %v487_v5 = vmul.f32 %v429_v22, %v4545_v44  ;;  %v5220_v16 = vsub.f32 %v4724_v53, %v498_v50 }
 0x17b   : > { %v816_v7 = vmul.f32 %v3877_v3, %v702_v24  ;;  %608 = vadd.xlane.f32.xlu1 %v607_v49  ;;  %vm822_vm1 = vweird.f32 %v3877_v3 }
 0x17c   : > { %v5213_v36 = vsub.f32 %v4728_v58, %v487_v5  ;;  %vm823_vm3 = vmor %vm821_vm15, %vm822_vm1  ;;  %v562_v53 = vmul.f32 %v5220_v16, %v5220_v16 }
 0x17d   : > { %v817_v21 = vmul.f32 %v3877_v3, %v816_v7 }
 0x17e   : > { %v3879_v11 = vpop.eup %3878  ;;  %v551_v34 = vmul.f32 %v5213_v36, %v5213_v36  ;;  %v652_v59 = vsel %vm372_vm0, %v562_v53, 0.0 }
 0x17f   : > { %v818_v33 = vmul.f32 0.5, %v817_v21  ;;  %v836_v12 = vmul.f32 %v3879_v11, %v704_v0  ;;  %vm842_vm8 = vweird.f32 %v3879_v11  ;;  %v250_v0 = vld [vmem:[%s7118_s2 + $0x8] sm:$0xff] }
 0x180   : > { %v619_v58 = vsel %vm372_vm0, %v551_v34, 0.0  ;;  %vm843_vm9 = vmor %vm841_vm7, %vm842_vm8  ;;  %3622 = vmatmul.msk.f32.vlgmr.msrb.gmra.mxu2 %vm372_vm0, %v250_v0  ;;  %3620 = vmatmul.msk.f32.vlgmr.msrb.gmra.mxu1 %vm372_vm0, %v250_v0 }
 0x181   : > { %v819_v10 = vsub.f32 1.5, %v818_v33  ;;  %v837_v29 = vmul.f32 %v3879_v11, %v836_v12  ;;  %620 = vadd.xlane.f32.xlu2 %v619_v58 }
 0x183   : > { %v820_v62 = vmul.f32 %v3877_v3, %v819_v10  ;;  %v838_v47 = vmul.f32 0.5, %v837_v29  ;;  %611 = vadd.xlane.f32.xlu1 %v610_v57 }
 0x185   : > { %v824_v4 = vsel %vm823_vm3, %v3877_v3, %v820_v62  ;;  %v839_v52 = vsub.f32 1.5, %v838_v47 }
 0x186   : > { %v1054_v6 = vmul.f32 %v824_v4, %v4693_v31  ;;  %v1088_v31 = vmul.f32 %v4785_v35, %v1055_v2 }
 0x187   : > { %v840_v45 = vmul.f32 %v3879_v11, %v839_v52 }
 0x188   : > { %v1087_v41 = vmul.f32 %v4785_v35, %v1054_v6  ;;  %v1121_v25 = vadd.f32 %v4807_v1, %v1088_v31  ;;  %v259_v6 = vld [vmem:[%s7119_s3 + $0x10] sm:$0xff] }
 0x189   : > { %653 = vadd.xlane.f32.xlu2 %v652_v59  ;;  %v844_v24 = vsel %vm843_vm9, %v3879_v11, %v840_v45 }
 0x18a   : > { %v1120_v14 = vadd.f32 %v4807_v1, %v1087_v41  ;;  %v1056_v61 = vmul.f32 %v844_v24, %v7316_v23 }
 0x18b   : > { %617 = vadd.xlane.f32.xlu1 %v616_v60 }
 0x18c   : > { %3596 = vmatmul.msk.f32.gmra.mxu0 %vm372_vm0, %v1120_v14  ;;  %v1089_v37 = vmul.f32 %v4785_v35, %v1056_v61 }
 0x18e   : > { %v1122_v13 = vadd.f32 %v4807_v1, %v1089_v37 }
 0x194   : > { %3597 = vmatmul.msk.f32.gmra.mxu0 %vm372_vm0, %v1121_v25 }
 0x19c   : > { %3598 = vmatmul.msk.f32.gmra.mxu0 %vm372_vm0, %v1122_v13 }
 0x1ae   : > { %v603_v26 = vpop.xlane.xlu2 %602 }
 0x1af   : > { %v673_v43 = vmul.f32 %v603_v26, %v4545_v44 }
 0x1b1   : > { %v705_v55 = vadd.f32 1e-05, %v673_v43 }
 0x1b3   : > { %3880 = vrsqrt.f32 %v705_v55  ;;  %vm851_vm11 = vweird.f32 %v705_v55 }
 0x1b6   : > { %v459_v18 = vpop.xlane.xlu2 %458 }
 0x1b7   : > { %v497_v15 = vmul.f32 %v459_v18, %v4545_v44 }
 0x1b9   : > { %v3881_v32 = vpop.eup %3880  ;;  %v5257_v49 = vsub.f32 %v5013_v51, %v497_v15 }
 0x1ba   : > { %v846_v22 = vmul.f32 %v3881_v32, %v705_v55  ;;  %v465_v5 = vpop.xlane.xlu0 %464  ;;  %vm852_vm10 = vweird.f32 %v3881_v32 }
 0x1bb   : > { %v561_v3 = vmul.f32 %v5257_v49, %v5257_v49  ;;  %v499_v21 = vmul.f32 %v465_v5, %v4545_v44  ;;  %vm853_vm12 = vmor %vm851_vm11, %vm852_vm10 }
 0x1bc   : > { %v847_v30 = vmul.f32 %v3881_v32, %v846_v22 }
 0x1bd   : > { %v649_v50 = vsel %vm372_vm0, %v561_v3, 0.0  ;;  %v5270_v33 = vsub.f32 %v5069_v56, %v499_v21 }
 0x1be   : > { %v848_v7 = vmul.f32 0.5, %v847_v30  ;;  %v432_v28 = vpop.xlane.xlu2 %431  ;;  %650 = vadd.xlane.f32.xlu0 %v649_v50 }
 0x1bf   : > { %v488_v20 = vmul.f32 %v432_v28, %v4545_v44  ;;  %v563_v53 = vmul.f32 %v5270_v33, %v5270_v33 }
 0x1c0   : > { %v849_v11 = vsub.f32 1.5, %v848_v7 }
 0x1c1   : > { %v5265_v51 = vsub.f32 %v5061_v19, %v488_v20 }
 0x1c2   : > { %v850_v54 = vmul.f32 %v3881_v32, %v849_v11 }
 0x1c3   : > { %v552_v34 = vmul.f32 %v5265_v51, %v5265_v51 }
 0x1c4   : > { %v854_v12 = vsel %vm853_vm12, %v3881_v32, %v850_v54  ;;  %v5317_v54 = vld [vmem:[%s7118_s2 + $0x28] ss:$0 sm:$0xff] }
 0x1c5   : > { %v622_v58 = vsel %vm372_vm0, %v552_v34, 0.0  ;;  %v1057_v57 = vmul.f32 %v854_v12, %v4931_v39  ;;  %v655_v39 = vsel %vm372_vm0, %v563_v53, 0.0 }
 0x1c6   : > { %v435_v10 = vpop.xlane.xlu2 %434  ;;  %623 = vadd.xlane.f32.xlu1 %v622_v58 }
 0x1c7   : > { %v489_v29 = vmul.f32 %v435_v10, %v4545_v44  ;;  %v1090_v19 = vmul.f32 %v4785_v35, %v1057_v57 }
 0x1c9   : > { %v5279_v48 = vsub.f32 %v5098_v46, %v489_v29  ;;  %v1123_v56 = vadd.f32 %v4807_v1, %v1090_v19 }
 0x1cb   : > { %3599 = vmatmul.msk.f32.gmra.mxu0 %vm372_vm0, %v1123_v56  ;;  %v553_v62 = vmul.f32 %v5279_v48, %v5279_v48 }
 0x1cd   : > { %v625_v47 = vsel %vm372_vm0, %v553_v62, 0.0 }
 0x1ce   : > { %v468_v40 = vpop.xlane.xlu2 %467  ;;  %626 = vadd.xlane.f32.xlu0 %v625_v47  ;;  %656 = vadd.xlane.f32.xlu1 %v655_v39 }
 0x1cf   : > { %v500_v35 = vmul.f32 %v468_v40, %v4545_v44 }
 0x1d1   : > { %v5289_v4 = vsub.f32 %v5122_v9, %v500_v35 }
 0x1d3   : > { %v564_v46 = vmul.f32 %v5289_v4, %v5289_v4 }
 0x1d5   : > { %v658_v59 = vsel %vm372_vm0, %v564_v46, 0.0 }
 0x1d6   : > { %659 = vadd.xlane.f32.xlu2 %v658_v59  ;;  %v5330_v59 = vld [vmem:[%s7118_s2 + $0x29] ss:$0 sm:$0xff] }
 0x1e2   : > { %1390 = vperm.xlu0 %3831, %v259_v6  }
 0x1e4   : > { %v615_v52 = vpop.xlane.xlu0 %614 }
 0x1e5   : > { %v677_v41 = vmul.f32 %v615_v52, %v4545_v44 }
 0x1e6   : > { %v606_v38 = vpop.xlane.xlu1 %605 }
 0x1e7   : > { %v674_v60 = vmul.f32 %v606_v38, %v4545_v44  ;;  %v5299_v9 = vadd.f32 1e-05, %v677_v41 }
 0x1e9   : > { %v706_v14 = vadd.f32 1e-05, %v674_v60  ;;  %vm891_vm7 = vweird.f32 %v5299_v9 }
 0x1eb   : > { %3882 = vrsqrt.f32 %v706_v14  ;;  %vm861_vm13 = vweird.f32 %v706_v14 }
 0x1ec   : > { %3884 = vrsqrt.f32 %v5299_v9 }
 0x1ee   : > { %v609_v2 = vpop.xlane.xlu1 %608 }
 0x1ef   : > { %v675_v45 = vmul.f32 %v609_v2, %v4545_v44 }
 0x1f1   : > { %v3883_v31 = vpop.eup %3882  ;;  %v707_v24 = vadd.f32 1e-05, %v675_v45 }
 0x1f2   : > { %v856_v25 = vmul.f32 %v3883_v31, %v706_v14  ;;  %vm862_vm14 = vweird.f32 %v3883_v31  ;;  %v5303_v26 = vpop.eup %3884 }
 0x1f3   : > { %3886 = vrsqrt.f32 %v707_v24  ;;  %vm863_vm15 = vmor %vm861_vm13, %vm862_vm14  ;;  %v886_v32 = vmul.f32 %v5303_v26, %v5299_v9  ;;  %vm871_vm4 = vweird.f32 %v707_v24  ;;  %vm892_vm8 = vweird.f32 %v5303_v26 }
 0x1f4   : > { %v857_v23 = vmul.f32 %v3883_v31, %v856_v25  ;;  %v621_v37 = vpop.xlane.xlu2 %620  ;;  %vm893_vm10 = vmor %vm891_vm7, %vm892_vm8 }
 0x1f5   : > { %v679_v18 = vmul.f32 %v621_v37, %v4545_v44  ;;  %v887_v28 = vmul.f32 %v5303_v26, %v886_v32  ;;  %v5348_v32 = vpop.f32.mrf.mxu0 }
 0x1f6   : > { %v858_v61 = vmul.f32 0.5, %v857_v23  ;;  %v612_v13 = vpop.xlane.xlu1 %611 }
 0x1f7   : > { %v676_v43 = vmul.f32 %v612_v13, %v4545_v44  ;;  %v5309_v50 = vadd.f32 1e-05, %v679_v18  ;;  %v888_v10 = vmul.f32 0.5, %v887_v28 }
 0x1f8   : > { %v859_v55 = vsub.f32 1.5, %v858_v61 }
 0x1f9   : > { %v3887_v0 = vpop.eup %3886  ;;  %v708_v15 = vadd.f32 1e-05, %v676_v43  ;;  %v889_v39 = vsub.f32 1.5, %v888_v10  ;;  %vm911_vm14 = vweird.f32 %v5309_v50 }
 0x1fa   : > { %v860_v22 = vmul.f32 %v3883_v31, %v859_v55  ;;  %v866_v3 = vmul.f32 %v3887_v0, %v707_v24  ;;  %vm872_vm1 = vweird.f32 %v3887_v0 }
 0x1fb   : > { %3888 = vrsqrt.f32 %v708_v15  ;;  %vm873_vm5 = vmor %vm871_vm4, %vm872_vm1  ;;  %vm881_vm3 = vweird.f32 %v708_v15  ;;  %v890_v6 = vmul.f32 %v5303_v26, %v889_v39 }
 0x1fc   : > { %v867_v30 = vmul.f32 %v3887_v0, %v866_v3  ;;  %v864_v5 = vsel %vm863_vm15, %v3883_v31, %v860_v22  ;;  %3890 = vrsqrt.f32 %v5309_v50 }
 0x1fd   : > { %v1058_v7 = vmul.f32 %v864_v5, %v5177_v8  ;;  %v894_v2 = vsel %vm893_vm10, %v5303_v26, %v890_v6  ;;  %v5353_v5 = vpop.f32.mrf.mxu2 }
 0x1fe   : > { %v868_v20 = vmul.f32 0.5, %v867_v30  ;;  %v618_v21 = vpop.xlane.xlu1 %617  ;;  %v1061_v61 = vmul.f32 %v894_v2, %v5172_v27  ;;  %v654_v30 = vpop.xlane.xlu2 %653 }
 0x1ff   : > { %v678_v11 = vmul.f32 %v618_v21, %v4545_v44  ;;  %v1091_v34 = vmul.f32 %v5317_v54, %v1058_v7  ;;  %v5357_v7 = vpop.f32.mrf.mxu0 }
 0x200   : > { %v869_v12 = vsub.f32 1.5, %v868_v20 }
 0x201   : > { %v3889_v58 = vpop.eup %3888  ;;  %v710_v57 = vadd.f32 1e-05, %v678_v11  ;;  %v1124_v8 = vadd.f32 %v4807_v1, %v1091_v34 }
 0x202   : > { %v870_v29 = vmul.f32 %v3887_v0, %v869_v12  ;;  %v876_v19 = vmul.f32 %v3889_v58, %v708_v15  ;;  %vm882_vm6 = vweird.f32 %v3889_v58  ;;  %v3891_v40 = vpop.eup %3890 }
 0x203   : > { %3892 = vrsqrt.f32 %v710_v57  ;;  %3600 = vmatmul.msk.f32.gmra.mxu0 %vm372_vm0, %v1124_v8  ;;  %vm883_vm9 = vmor %vm881_vm3, %vm882_vm6  ;;  %v906_v52 = vmul.f32 %v3891_v40, %v5309_v50  ;;  %vm901_vm11 = vweird.f32 %v710_v57  ;;  %vm912_vm15 = vweird.f32 %v3891_v40 }
 0x204   : > { %v877_v53 = vmul.f32 %v3889_v58, %v876_v19  ;;  %v874_v56 = vsel %vm873_vm5, %v3887_v0, %v870_v29  ;;  %vm913_vm1 = vmor %vm911_vm14, %vm912_vm15 }
 0x205   : > { %v1059_v62 = vmul.f32 %v874_v56, %v5185_v63  ;;  %v907_v45 = vmul.f32 %v3891_v40, %v906_v52  ;;  %v5361_v21 = vpop.f32.mrf.mxu2 }
 0x206   : > { %v878_v47 = vmul.f32 0.5, %v877_v53 }
 0x207   : > { %v1092_v35 = vmul.f32 %v5317_v54, %v1059_v62  ;;  %v908_v37 = vmul.f32 0.5, %v907_v45  ;;  %v5363_v11 = vpop.f32.mrf.mxu0 }
 0x208   : > { %v879_v1 = vsub.f32 1.5, %v878_v47 }
 0x209   : > { %v3893_v46 = vpop.eup %3892  ;;  %v1125_v63 = vadd.f32 %v5330_v59, %v1092_v35  ;;  %v909_v43 = vsub.f32 1.5, %v908_v37  ;;  %v5371_v35 = vpop.f32.mrf.mxu1 }
 0x20a   : > { %v880_v38 = vmul.f32 %v3889_v58, %v879_v1  ;;  %v896_v60 = vmul.f32 %v3893_v46, %v710_v57  ;;  %vm902_vm12 = vweird.f32 %v3893_v46 }
 0x20b   : > { %3601 = vmatmul.msk.f32.gmra.mxu0 %vm372_vm0, %v1125_v63  ;;  %vm903_vm13 = vmor %vm901_vm11, %vm902_vm12  ;;  %v910_v18 = vmul.f32 %v3891_v40, %v909_v43 }
 0x20c   : > { %v897_v41 = vmul.f32 %v3893_v46, %v896_v60  ;;  %v884_v14 = vsel %vm883_vm9, %v3889_v58, %v880_v38 }
 0x20d   : > { %v1060_v9 = vmul.f32 %v884_v14, %v5203_v42  ;;  %v1094_v42 = vmul.f32 %v5317_v54, %v1061_v61  ;;  %v914_v15 = vsel %vm913_vm1, %v3891_v40, %v910_v18  ;;  %v5366_v8 = vpop.f32.mrf.mxu2 }
 0x20e   : > { %v898_v31 = vmul.f32 0.5, %v897_v41  ;;  %v1063_v3 = vmul.f32 %v914_v15, %v5213_v36 }
 0x20f   : > { %v1093_v24 = vmul.f32 %v5317_v54, %v1060_v9  ;;  %v1127_v55 = vadd.f32 %v5330_v59, %v1094_v42  ;;  %v5369_v53 = vpop.f32.mrf.mxu0 }
 0x210   : > { %v899_v25 = vsub.f32 1.5, %v898_v31  ;;  %v1096_v50 = vmul.f32 %v5317_v54, %v1063_v3 }
 0x211   : > { %v1126_v23 = vadd.f32 %v5330_v59, %v1093_v24 }
 0x212   : > { %v900_v13 = vmul.f32 %v3893_v46, %v899_v25  ;;  %v1129_v20 = vadd.f32 %v5330_v59, %v1096_v50 }
 0x213   : > { %3602 = vmatmul.msk.f32.gmra.mxu0 %vm372_vm0, %v1126_v23 }
 0x214   : > { %v904_v26 = vsel %vm903_vm13, %v3893_v46, %v900_v13 }
 0x215   : > { %v1062_v0 = vmul.f32 %v904_v26, %v5223_v17  ;;  %v690_v17 = vmul.f32 %v654_v30, %v4545_v44  ;;  %v5373_v1 = vpop.f32.mrf.mxu2 }
 0x217   : > { %v1095_v27 = vmul.f32 %v5317_v54, %v1062_v0  ;;  %v722_v28 = vadd.f32 1e-05, %v690_v17  ;;  %v5381_v31 = vpop.f32.mrf.mxu0 }
 0x219   : > { %v1128_v22 = vadd.f32 %v5330_v59, %v1095_v27  ;;  %3894 = vrsqrt.f32 %v722_v28  ;;  %vm1021_vm4 = vweird.f32 %v722_v28  ;;  %v1444_v27 = vlaneseq }
 0x21b   : > { %3603 = vmatmul.msk.f32.gmra.mxu0 %vm372_vm0, %v1127_v55  ;;  %v5392_v55 = vpop.f32.mrf.mxu1 }
 0x21d   : > { %v5396_v15 = vpop.f32.mrf.mxu2 }
 0x21f   : > { %v3895_v36 = vpop.eup %3894 }
 0x220   : > { %v1016_v58 = vmul.f32 %v3895_v36, %v722_v28  ;;  %vm1022_vm5 = vweird.f32 %v3895_v36 }
 0x221   : > { %vm5383_vm6 = vmor %vm1021_vm4, %vm1022_vm5 }
 0x222   : > { %v1017_v10 = vmul.f32 %v3895_v36, %v1016_v58 }
 0x223   : > { %3604 = vmatmul.msk.f32.gmra.mxu0 %vm372_vm0, %v1128_v22 }
 0x224   : > { %v1018_v62 = vmul.f32 0.5, %v1017_v10 }
 0x226   : > { %v1019_v46 = vsub.f32 1.5, %v1018_v62 }
 0x228   : > { %v1020_v9 = vmul.f32 %v3895_v36, %v1019_v46 }
 0x22a   : > { %v1024_v13 = vsel %vm5383_vm6, %v3895_v36, %v1020_v9  ;;  %v7321_v9 = vmov 0 }
 0x22b   : > { %3605 = vmatmul.msk.f32.gmra.mxu0 %vm372_vm0, %v1129_v20  ;;  %v1074_v3 = vmul.f32 %v1024_v13, %v5220_v16  ;;  %v5409_v16 = vshrl.u32 %v1444_v27, 7 }
 0x22d   : > { %7319 = vst [vmem:[#allocation6_spill] sm:$0xff] %v5409_v16  ;;  %vm2269_vm12 = vcmp.ge.s32.totalorder %v5409_v16, 2  ;;  %vm2270_vm13 = vcmp.lt.s32.totalorder %v5409_v16, 4  ;;  %vm1447_vm1 = vcmp.lt.s32.totalorder %v5409_v16, 2 }
 0x22e   : > { %vm5439_vm5 = vmand %vm2269_vm12, %vm2270_vm13 }
 0x22f   : > { %v7322_v9 = vsel %vm5439_vm5, 4294967295, %v7321_v9 }
 0x230   : > { %7323 = vst [vmem:[#allocation8_spill] sm:$0xff] %v7322_v9 }
 0x231   : > { %v651_v34 = vpop.xlane.xlu0 %650 }
 0x232   : > { %v689_v12 = vmul.f32 %v651_v34, %v4545_v44  ;;  %v5411_v34 = vpop.f32.mrf.mxu0 }
 0x234   : > { %v721_v57 = vadd.f32 1e-05, %v689_v12 }
 0x236   : > { %3896 = vrsqrt.f32 %v721_v57  ;;  %vm1011_vm7 = vweird.f32 %v721_v57 }
 0x239   : > { %v624_v29 = vpop.xlane.xlu1 %623 }
 0x23a   : > { %v680_v19 = vmul.f32 %v624_v29, %v4545_v44 }
 0x23c   : > { %v3897_v56 = vpop.eup %3896  ;;  %v712_v39 = vadd.f32 1e-05, %v680_v19  ;;  %v5419_v19 = vld [vmem:[%s7118_s2 + $0x2a] ss:$0 sm:$0xff] }
 0x23d   : > { %v1006_v47 = vmul.f32 %v3897_v56, %v721_v57  ;;  %vm1012_vm3 = vweird.f32 %v3897_v56  ;;  %v1107_v57 = vmul.f32 %v5317_v54, %v1074_v3 }
 0x23e   : > { %3898 = vrsqrt.f32 %v712_v39  ;;  %vm1013_vm8 = vmor %vm1011_vm7, %vm1012_vm3  ;;  %vm921_vm10 = vweird.f32 %v712_v39 }
 0x23f   : > { %v1007_v40 = vmul.f32 %v3897_v56, %v1006_v47 }
 0x241   : > { %v1008_v63 = vmul.f32 0.5, %v1007_v40  ;;  %v657_v6 = vpop.xlane.xlu1 %656  ;;  %v627_v52 = vpop.xlane.xlu0 %626  ;;  %v1261_v40 = vadd.f32 %v5419_v19, %v5348_v32 }
 0x242   : > { %v691_v38 = vmul.f32 %v657_v6, %v4545_v44  ;;  %v681_v60 = vmul.f32 %v627_v52, %v4545_v44 }
 0x243   : > { %v1009_v41 = vsub.f32 1.5, %v1008_v63  ;;  %v1140_v63 = vadd.f32 %v5330_v59, %v1107_v57  ;;  %v1356_v13 = vmul.f32 0.70710677, %v1261_v40 }
 0x244   : > { %v3899_v14 = vpop.eup %3898  ;;  %v5377_v2 = vadd.f32 1e-05, %v691_v38  ;;  %v5379_v45 = vadd.f32 1e-05, %v681_v60 }
 0x245   : > { %v1010_v25 = vmul.f32 %v3897_v56, %v1009_v41  ;;  %v916_v23 = vmul.f32 %v3899_v14, %v712_v39  ;;  %vm922_vm9 = vweird.f32 %v3899_v14  ;;  %v1421_v39 = vpop.f32.mrf.mxu1 }
 0x246   : > { %3900 = vrsqrt.f32 %v5377_v2  ;;  %vm923_vm11 = vmor %vm921_vm10, %vm922_vm9  ;;  %vm1031_vm4 = vweird.f32 %v5377_v2  ;;  %vm931_vm6 = vweird.f32 %v5379_v45 }
 0x247   : > { %v1014_v61 = vsel %vm1013_vm8, %v3897_v56, %v1010_v25  ;;  %v917_v37 = vmul.f32 %v3899_v14, %v916_v23  ;;  %3902 = vrsqrt.f32 %v5379_v45 }
 0x248   : > { %v1073_v42 = vmul.f32 %v1014_v61, %v5257_v49 }
 0x249   : > { %v918_v43 = vmul.f32 0.5, %v917_v37  ;;  %v660_v26 = vpop.xlane.xlu2 %659 }
 0x24a   : > { %v692_v0 = vmul.f32 %v660_v26, %v4545_v44  ;;  %v1106_v18 = vmul.f32 %v5317_v54, %v1073_v42  ;;  %v1278_v26 = vpop.f32.mrf.mxu0 }
 0x24b   : > { %v919_v22 = vsub.f32 1.5, %v918_v43 }
 0x24c   : > { %v5399_v30 = vpop.eup %3900  ;;  %v5401_v17 = vadd.f32 1e-05, %v692_v0  ;;  %v1139_v49 = vadd.f32 %v5330_v59, %v1106_v18 }
 0x24d   : > { %v3903_v50 = vpop.eup %3902  ;;  %v920_v28 = vmul.f32 %v3899_v14, %v919_v22  ;;  %v1026_v20 = vmul.f32 %v5399_v30, %v5377_v2  ;;  %vm1032_vm14 = vweird.f32 %v5399_v30 }
 0x24e   : > { %v926_v36 = vmul.f32 %v3903_v50, %v5379_v45  ;;  %3904 = vrsqrt.f32 %v5401_v17  ;;  %3615 = vmatmul.msk.f32.vlgmr.msra.gmra.mxu3 %vm372_vm0, %v1139_v49  ;;  %vm932_vm15 = vweird.f32 %v3903_v50  ;;  %vm5443_vm3 = vmor %vm1031_vm4, %vm1032_vm14  ;;  %vm1041_vm9 = vweird.f32 %v5401_v17 }
 0x24f   : > { %v924_v12 = vsel %vm923_vm11, %v3899_v14, %v920_v28  ;;  %v1027_v58 = vmul.f32 %v5399_v30, %v1026_v20  ;;  %vm933_vm7 = vmor %vm931_vm6, %vm932_vm15 }
 0x250   : > { %v927_v10 = vmul.f32 %v3903_v50, %v926_v36  ;;  %v1064_v29 = vmul.f32 %v924_v12, %v5265_v51  ;;  %v1441_v51 = vpop.f32.mrf.mxu2 }
 0x251   : > { %v1028_v56 = vmul.f32 0.5, %v1027_v58 }
 0x252   : > { %v928_v62 = vmul.f32 0.5, %v927_v10  ;;  %v1097_v47 = vmul.f32 %v5317_v54, %v1064_v29  ;;  %v1281_v58 = vpop.f32.mrf.mxu0 }
 0x253   : > { %v1029_v46 = vsub.f32 1.5, %v1028_v56 }
 0x254   : > { %v3905_v6 = vpop.eup %3904  ;;  %v929_v52 = vsub.f32 1.5, %v928_v62  ;;  %v1391_v38 = vpop.permute.xlu0 %1390  ;;  %v1130_v60 = vadd.f32 %v5330_v59, %v1097_v47 }
 0x255   : > { %v1030_v41 = vmul.f32 %v5399_v30, %v1029_v46  ;;  %v1036_v32 = vmul.f32 %v3905_v6, %v5401_v17  ;;  %v5433_v14 = vadd.f32 %v1421_v39, %v1391_v38  ;;  %v5448_v2 = vadd.f32 %v1441_v51, %v1391_v38 }
 0x256   : > { %v930_v25 = vmul.f32 %v3903_v50, %v929_v52  ;;  %3606 = vmatmul.msk.f32.gmra.mxu0 %vm372_vm0, %v1130_v60  ;;  %3616 = vmatmul.msk.f32.gmra.mxu3 %vm372_vm0, %v1140_v63  ;;  %vm1042_vm8 = vweird.f32 %v3905_v6  ;;  %v1267_v17 = vadd.f32 %v5419_v19, %v5363_v11 }
 0x257   : > { %7320 = vst [vmem:[#allocation7_spill] sm:$0xff] %v5433_v14  ;;  %v1034_v23 = vsel %vm5443_vm3, %v5399_v30, %v1030_v41  ;;  %v1037_v61 = vmul.f32 %v3905_v6, %v1036_v32  ;;  %v1451_v37 = vsel %vm1447_vm1, %v5433_v14, 0.0  ;;  %v1452_v45 = vsel %vm1447_vm1, %v5448_v2, 0.0  ;;  %vm1043_vm10 = vmor %vm1041_vm9, %vm1042_vm8 }
 0x258   : > { %7326 = vst [vmem:[#allocation9_spill] sm:$0xff] %v5448_v2  ;;  %v934_v42 = vsel %vm933_vm7, %v3903_v50, %v930_v25  ;;  %3623 = vmatpush.msk.msrb.mxu3 %vm271_vm2, %v1451_v37  ;;  %v2274_v43 = vsel %vm5439_vm5, %v5433_v14, 0.0  ;;  %3656 = vmatpush.msk.msra.mxu1 %vm271_vm2, %v1452_v45  ;;  %v2275_v18 = vsel %vm5439_vm5, %v5448_v2, 0.0  ;;  %v1075_v22 = vmul.f32 %v1034_v23, %v5270_v33 }
 0x259   : > { %v1038_v0 = vmul.f32 0.5, %v1037_v61  ;;  %3689 = vmatpush.msk.msra.mxu2 %vm271_vm2, %v2274_v43  ;;  %v1065_v27 = vmul.f32 %v934_v42, %v5279_v48  ;;  %3722 = vmatpush.msk.msrb.mxu0 %vm271_vm2, %v2275_v18  ;;  %v1264_v50 = vadd.f32 %v5419_v19, %v5357_v7  ;;  %v1358_v10 = vmul.f32 0.70710677, %v1267_v17 }
 0x25a   : > { %3657 = vmatmul.msk.f32.vlgmr.msra.gmra.mxu1 %vm372_vm0, %v1356_v13  ;;  %3690 = vmatmul.msk.f32.vlgmr.msra.gmra.mxu2 %vm372_vm0, %v1356_v13  ;;  %v1108_v49 = vmul.f32 %v5317_v54, %v1075_v22 }
 0x25b   : > { %v1039_v3 = vsub.f32 1.5, %v1038_v0  ;;  %v1098_v30 = vmul.f32 %v5317_v54, %v1065_v27  ;;  %v1357_v36 = vmul.f32 0.70710677, %v1264_v50 }
 0x25c   : > { %v1141_v48 = vadd.f32 %v5330_v59, %v1108_v49 }
 0x25d   : > { %v1040_v28 = vmul.f32 %v3905_v6, %v1039_v3  ;;  %v1131_v33 = vadd.f32 %v5330_v59, %v1098_v30 }
 0x25e   : > { %3617 = vmatmul.msk.f32.gmra.mxu3 %vm372_vm0, %v1141_v48 }
 0x25f   : > { %v1044_v20 = vsel %vm1043_vm10, %v3905_v6, %v1040_v28  ;;  %3607 = vmatmul.msk.f32.gmra.mxu0 %vm372_vm0, %v1131_v33 }
 0x260   : > { %v1076_v12 = vmul.f32 %v1044_v20, %v5289_v4  ;;  %v1270_v4 = vadd.f32 %v5419_v19, %v5369_v53  ;;  %v1276_v53 = vadd.f32 %v5419_v19, %v5411_v34  ;;  %v1282_v34 = vadd.f32 %v5419_v19, %v1281_v58 }
 0x262   : > { %3658 = vmatmul.msk.f32.gmra.mxu1 %vm372_vm0, %v1357_v36  ;;  %v1109_v7 = vmul.f32 %v5317_v54, %v1076_v12  ;;  %3691 = vmatmul.msk.f32.gmra.mxu2 %vm372_vm0, %v1357_v36  ;;  %v1284_v54 = vpop.f32.mrf.mxu0  ;;  %v1359_v11 = vmul.f32 0.70710677, %v1270_v4  ;;  %v1361_v39 = vmul.f32 0.70710677, %v1276_v53  ;;  %v1363_v46 = vmul.f32 0.70710677, %v1282_v34 }
 0x263   : > { %v1285_v63 = vadd.f32 %v5419_v19, %v1284_v54 }
 0x264   : > { %v1142_v57 = vadd.f32 %v5330_v59, %v1109_v7  ;;  %v1273_v59 = vadd.f32 %v5419_v19, %v5381_v31  ;;  %v1279_v31 = vadd.f32 %v5419_v19, %v1278_v26 }
 0x265   : > { %v1364_v6 = vmul.f32 0.70710677, %v1285_v63 }
 0x266   : > { %3618 = vmatmul.msk.f32.gmra.mxu3 %vm372_vm0, %v1142_v57  ;;  %v1360_v56 = vmul.f32 0.70710677, %v1273_v59  ;;  %v1362_v47 = vmul.f32 0.70710677, %v1279_v31 }
 0x267   : > { %3723 = vmatmul.msk.f32.vlgmr.msrb.gmra.mxu0 %vm372_vm0, %v1356_v13 }
 0x26a   : > { %3659 = vmatmul.msk.f32.gmra.mxu1 %vm372_vm0, %v1358_v10  ;;  %3692 = vmatmul.msk.f32.gmra.mxu2 %vm372_vm0, %v1358_v10  ;;  %v1287_v29 = vpop.f32.mrf.mxu0 }
 0x26b   : > { %v1288_v38 = vadd.f32 %v5419_v19, %v1287_v29 }
 0x26d   : > { %v1365_v60 = vmul.f32 0.70710677, %v1288_v38 }
 0x26e   : > { %3624 = vmatmul.msk.f32.vlgmr.msrb.gmra.mxu3 %vm372_vm0, %v1356_v13 }
 0x26f   : > { %3724 = vmatmul.msk.f32.gmra.mxu0 %vm372_vm0, %v1357_v36 }
 0x272   : > { %3660 = vmatmul.msk.f32.gmra.mxu1 %vm372_vm0, %v1359_v11  ;;  %3693 = vmatmul.msk.f32.gmra.mxu2 %vm372_vm0, %v1359_v11  ;;  %v1290_v62 = vpop.f32.mrf.mxu0 }
 0x273   : > { %v1291_v32 = vadd.f32 %v5419_v19, %v1290_v62 }
 0x275   : > { %v1366_v24 = vmul.f32 0.70710677, %v1291_v32  ;;  %v1324_v32 = vadd.f32 %v5419_v19, %v5371_v35 }
 0x276   : > { %3625 = vmatmul.msk.f32.gmra.mxu3 %vm372_vm0, %v1357_v36 }
 0x277   : > { %3725 = vmatmul.msk.f32.gmra.mxu0 %vm372_vm0, %v1358_v10 }
 0x27a   : > { %3661 = vmatmul.msk.f32.gmra.mxu1 %vm372_vm0, %v1360_v56  ;;  %3694 = vmatmul.msk.f32.gmra.mxu2 %vm372_vm0, %v1360_v56  ;;  %v1293_v40 = vpop.f32.mrf.mxu0 }
 0x27b   : > { %v1294_v25 = vadd.f32 %v5419_v19, %v1293_v40 }
 0x27d   : > { %v1367_v61 = vmul.f32 0.70710677, %v1294_v25 }
 0x27e   : > { %3626 = vmatmul.msk.f32.gmra.mxu3 %vm372_vm0, %v1358_v10 }
 0x27f   : > { %3726 = vmatmul.msk.f32.gmra.mxu0 %vm372_vm0, %v1359_v11 }
 0x282   : > { %3662 = vmatmul.msk.f32.gmra.mxu1 %vm372_vm0, %v1361_v39  ;;  %3695 = vmatmul.msk.f32.gmra.mxu2 %vm372_vm0, %v1361_v39  ;;  %v1296_v51 = vpop.f32.mrf.mxu0 }
 0x283   : > { %v1297_v37 = vadd.f32 %v5419_v19, %v1296_v51 }
 0x285   : > { %v1368_v42 = vmul.f32 0.70710677, %v1297_v37  ;;  %v1377_v37 = vmul.f32 0.70710677, %v1324_v32 }
 0x286   : > { %3627 = vmatmul.msk.f32.gmra.mxu3 %vm372_vm0, %v1359_v11 }
 0x287   : > { %3727 = vmatmul.msk.f32.gmra.mxu0 %vm372_vm0, %v1360_v56 }
 0x28a   : > { %3663 = vmatmul.msk.f32.gmra.mxu1 %vm372_vm0, %v1362_v47  ;;  %3696 = vmatmul.msk.f32.gmra.mxu2 %vm372_vm0, %v1362_v47  ;;  %v1299_v52 = vpop.f32.mrf.mxu0 }
 0x28b   : > { %v1300_v45 = vadd.f32 %v5419_v19, %v1299_v52 }
 0x28d   : > { %v1369_v43 = vmul.f32 0.70710677, %v1300_v45 }
 0x28e   : > { %3628 = vmatmul.msk.f32.gmra.mxu3 %vm372_vm0, %v1360_v56 }
 0x28f   : > { %3728 = vmatmul.msk.f32.gmra.mxu0 %vm372_vm0, %v1361_v39 }
 0x292   : > { %3664 = vmatmul.msk.f32.gmra.mxu1 %vm372_vm0, %v1363_v46  ;;  %3697 = vmatmul.msk.f32.gmra.mxu2 %vm372_vm0, %v1363_v46  ;;  %v1302_v41 = vpop.f32.mrf.mxu0 }
 0x293   : > { %v1303_v0 = vadd.f32 %v5419_v19, %v1302_v41 }
 0x295   : > { %v1370_v18 = vmul.f32 0.70710677, %v1303_v0 }
 0x296   : > { %3629 = vmatmul.msk.f32.gmra.mxu3 %vm372_vm0, %v1361_v39 }
 0x297   : > { %3729 = vmatmul.msk.f32.gmra.mxu0 %vm372_vm0, %v1362_v47 }
 0x29a   : > { %3665 = vmatmul.msk.f32.gmra.mxu1 %vm372_vm0, %v1364_v6  ;;  %3698 = vmatmul.msk.f32.gmra.mxu2 %vm372_vm0, %v1364_v6  ;;  %v1305_v23 = vpop.f32.mrf.mxu0 }
 0x29b   : > { %v1306_v22 = vadd.f32 %v5419_v19, %v1305_v23 }
 0x29d   : > { %v1371_v3 = vmul.f32 0.70710677, %v1306_v22  ;;  %v1330_v22 = vadd.f32 %v5419_v19, %v5353_v5 }
 0x29e   : > { %3630 = vmatmul.msk.f32.gmra.mxu3 %vm372_vm0, %v1362_v47 }
 0x29f   : > { %3730 = vmatmul.msk.f32.gmra.mxu0 %vm372_vm0, %v1363_v46 }
 0x2a2   : > { %3666 = vmatmul.msk.f32.gmra.mxu1 %vm372_vm0, %v1365_v60  ;;  %3699 = vmatmul.msk.f32.gmra.mxu2 %vm372_vm0, %v1365_v60  ;;  %v1308_v13 = vpop.f32.mrf.mxu0 }
 0x2a3   : > { %v1309_v50 = vadd.f32 %v5419_v19, %v1308_v13 }
 0x2a5   : > { %v1372_v33 = vmul.f32 0.70710677, %v1309_v50 }
 0x2a6   : > { %3631 = vmatmul.msk.f32.gmra.mxu3 %vm372_vm0, %v1363_v46 }
 0x2a7   : > { %3731 = vmatmul.msk.f32.gmra.mxu0 %vm372_vm0, %v1364_v6 }
 0x2aa   : > { %3667 = vmatmul.msk.f32.gmra.mxu1 %vm372_vm0, %v1366_v24  ;;  %3700 = vmatmul.msk.f32.gmra.mxu2 %vm372_vm0, %v1366_v24  ;;  %v1311_v26 = vpop.f32.mrf.mxu0 }
 0x2ab   : > { %v1312_v20 = vadd.f32 %v5419_v19, %v1311_v26 }
 0x2ad   : > { %v1373_v58 = vmul.f32 0.70710677, %v1312_v20 }
 0x2ae   : > { %3632 = vmatmul.msk.f32.gmra.mxu3 %vm372_vm0, %v1364_v6 }
 0x2af   : > { %3732 = vmatmul.msk.f32.gmra.mxu0 %vm372_vm0, %v1365_v60 }
 0x2b2   : > { %3668 = vmatmul.msk.f32.gmra.mxu1 %vm372_vm0, %v1367_v61  ;;  %3701 = vmatmul.msk.f32.gmra.mxu2 %vm372_vm0, %v1367_v61  ;;  %v1314_v27 = vpop.f32.mrf.mxu0 }
 0x2b3   : > { %v1315_v57 = vadd.f32 %v5419_v19, %v1314_v27 }
 0x2b5   : > { %v1374_v59 = vmul.f32 0.70710677, %v1315_v57 }
 0x2b6   : > { %3633 = vmatmul.msk.f32.gmra.mxu3 %vm372_vm0, %v1365_v60 }
 0x2b7   : > { %3733 = vmatmul.msk.f32.gmra.mxu0 %vm372_vm0, %v1366_v24 }
 0x2ba   : > { %3669 = vmatmul.msk.f32.gmra.mxu1 %vm372_vm0, %v1368_v42  ;;  %3702 = vmatmul.msk.f32.gmra.mxu2 %vm372_vm0, %v1368_v42 }
 0x2be   : > { %3634 = vmatmul.msk.f32.gmra.mxu3 %vm372_vm0, %v1366_v24 }
 0x2bf   : > { %3734 = vmatmul.msk.f32.gmra.mxu0 %vm372_vm0, %v1367_v61 }
 0x2c2   : > { %3670 = vmatmul.msk.f32.gmra.mxu1 %vm372_vm0, %v1369_v43  ;;  %3703 = vmatmul.msk.f32.gmra.mxu2 %vm372_vm0, %v1369_v43 }
 0x2c6   : > { %3635 = vmatmul.msk.f32.gmra.mxu3 %vm372_vm0, %v1367_v61 }
 0x2c7   : > { %3735 = vmatmul.msk.f32.gmra.mxu0 %vm372_vm0, %v1368_v42 }
 0x2ca   : > { %3671 = vmatmul.msk.f32.gmra.mxu1 %vm372_vm0, %v1370_v18  ;;  %3704 = vmatmul.msk.f32.gmra.mxu2 %vm372_vm0, %v1370_v18 }
 0x2ce   : > { %3636 = vmatmul.msk.f32.gmra.mxu3 %vm372_vm0, %v1368_v42  ;;  %v1327_v42 = vadd.f32 %v5419_v19, %v5392_v55 }
 0x2cf   : > { %3736 = vmatmul.msk.f32.gmra.mxu0 %vm372_vm0, %v1369_v43 }
 0x2d0   : > { %v1378_v0 = vmul.f32 0.70710677, %v1327_v42 }
 0x2d1   : > { %v5562_v30 = vpop.f32.mrf.mxu3 }
 0x2d2   : > { %3672 = vmatmul.msk.f32.gmra.mxu1 %vm372_vm0, %v1371_v3  ;;  %3705 = vmatmul.msk.f32.gmra.mxu2 %vm372_vm0, %v1371_v3 }
 0x2d3   : > { %v1317_v49 = vpop.f32.mrf.mxu0 }
 0x2d4   : > { %v1318_v56 = vadd.f32 %v5419_v19, %v1317_v49 }
 0x2d6   : > { %3637 = vmatmul.msk.f32.gmra.mxu3 %vm372_vm0, %v1369_v43  ;;  %v1375_v47 = vmul.f32 0.70710677, %v1318_v56 }
 0x2d7   : > { %v5568_v28 = vpop.f32.mrf.mxu1  ;;  %3737 = vmatmul.msk.f32.gmra.mxu0 %vm372_vm0, %v1370_v18 }
 0x2d8   : > { %7327 = vst [vmem:[#allocation10_spill] sm:$0xff] %v5568_v28 }
 0x2d9   : > { %v5571_v48 = vpop.f32.mrf.mxu3 }
 0x2da   : > { %3673 = vmatmul.msk.f32.gmra.mxu1 %vm372_vm0, %v1372_v33  ;;  %3706 = vmatmul.msk.f32.gmra.mxu2 %vm372_vm0, %v1372_v33 }
 0x2dc   : > { %v1320_v36 = vpop.f32.mrf.mxu0 }
 0x2dd   : > { %v5576_v12 = vpop.f32.mrf.mxu2  ;;  %v1321_v46 = vadd.f32 %v5419_v19, %v1320_v36 }
 0x2de   : > { %3638 = vmatmul.msk.f32.gmra.mxu3 %vm372_vm0, %v1370_v18 }
 0x2df   : > { %v5579_v7 = vpop.f32.mrf.mxu1  ;;  %3738 = vmatmul.msk.f32.gmra.mxu0 %vm372_vm0, %v1371_v3  ;;  %v1376_v38 = vmul.f32 0.70710677, %v1321_v46 }
 0x2e0   : > { %7328 = vst [vmem:[#allocation11_spill] sm:$0xff] %v5579_v7 }
 0x2e1   : > { %v5582_v17 = vpop.f32.mrf.mxu3 }
 0x2e2   : > { %3674 = vmatmul.msk.f32.gmra.mxu1 %vm372_vm0, %v1373_v58  ;;  %3707 = vmatmul.msk.f32.gmra.mxu2 %vm372_vm0, %v1373_v58 }
 0x2e4   : > { %v5587_v10 = vpop.f32.mrf.mxu0 }
 0x2e5   : > { %v2510_v4 = vmax.f32 %v5576_v12, %v5587_v10  ;;  %v5591_v54 = vpop.f32.mrf.mxu2 }
 0x2e6   : > { %3639 = vmatmul.msk.f32.gmra.mxu3 %vm372_vm0, %v1371_v3 }
 0x2e7   : > { %v5593_v11 = vpop.f32.mrf.mxu1  ;;  %3739 = vmatmul.msk.f32.gmra.mxu0 %vm372_vm0, %v1372_v33  ;;  %2511 = vmax.xlane.f32.xlu0 %v2510_v4 }
 0x2e8   : > { %7329 = vst [vmem:[#allocation12_spill] sm:$0xff] %v5593_v11 }
 0x2e9   : > { %v5597_v29 = vpop.f32.mrf.mxu3 }
 0x2ea   : > { %3675 = vmatmul.msk.f32.gmra.mxu1 %vm372_vm0, %v1374_v59  ;;  %3708 = vmatmul.msk.f32.gmra.mxu2 %vm372_vm0, %v1374_v59 }
 0x2ec   : > { %v5602_v53 = vpop.f32.mrf.mxu0 }
 0x2ed   : > { %v2513_v62 = vmax.f32 %v5591_v54, %v5602_v53  ;;  %v5606_v39 = vpop.f32.mrf.mxu2 }
 0x2ee   : > { %3640 = vmatmul.msk.f32.gmra.mxu3 %vm372_vm0, %v1372_v33  ;;  %v1379_v33 = vmul.f32 0.70710677, %v1330_v22 }
 0x2ef   : > { %v5608_v31 = vpop.f32.mrf.mxu1  ;;  %3740 = vmatmul.msk.f32.gmra.mxu0 %vm372_vm0, %v1373_v58  ;;  %2514 = vmax.xlane.f32.xlu2 %v2513_v62 }
 0x2f0   : > { %7330 = vst [vmem:[#allocation13_spill] sm:$0xff] %v5608_v31 }
 0x2f1   : > { %v5612_v40 = vpop.f32.mrf.mxu3 }
 0x2f2   : > { %7331 = vst [vmem:[#allocation14_spill] sm:$0xff] %v5612_v40  ;;  %3676 = vmatmul.msk.f32.gmra.mxu1 %vm372_vm0, %v1375_v47  ;;  %3709 = vmatmul.msk.f32.gmra.mxu2 %vm372_vm0, %v1375_v47  ;;  %v1789_v34 = vmax.f32 %v5612_v40, %v5568_v28 }
 0x2f4   : > { %v5619_v51 = vpop.f32.mrf.mxu0  ;;  %1790 = vmax.xlane.f32.xlu0 %v1789_v34  ;;  %v1336_v34 = vadd.f32 %v5419_v19, %v5366_v8 }
 0x2f5   : > { %v2516_v63 = vmax.f32 %v5606_v39, %v5619_v51  ;;  %v5623_v6 = vpop.f32.mrf.mxu2 }
 0x2f6   : > { %3641 = vmatmul.msk.f32.gmra.mxu3 %vm372_vm0, %v1373_v58  ;;  %v1333_v58 = vadd.f32 %v5419_v19, %v5361_v21 }
 0x2f7   : > { %v5625_v52 = vpop.f32.mrf.mxu1  ;;  %3741 = vmatmul.msk.f32.gmra.mxu0 %vm372_vm0, %v1374_v59  ;;  %2517 = vmax.xlane.f32.xlu2 %v2516_v63 }
 0x2f8   : > { %7332 = vst [vmem:[#allocation15_spill] sm:$0xff] %v5625_v52  ;;  %v1380_v62 = vmul.f32 0.70710677, %v1333_v58 }
 0x2f9   : > { %v5629_v60 = vpop.f32.mrf.mxu3 }
 0x2fa   : > { %7333 = vst [vmem:[#allocation16_spill] sm:$0xff] %v5629_v60  ;;  %3677 = vmatmul.msk.f32.gmra.mxu1 %vm372_vm0, %v1376_v38  ;;  %3710 = vmatmul.msk.f32.gmra.mxu2 %vm372_vm0, %v1376_v38  ;;  %v1792_v41 = vmax.f32 %v5629_v60, %v5579_v7 }
 0x2fc   : > { %v5637_v24 = vpop.f32.mrf.mxu0  ;;  %1793 = vmax.xlane.f32.xlu1 %v1792_v41  ;;  %v1381_v41 = vmul.f32 0.70710677, %v1336_v34  ;;  %v1345_v34 = vadd.f32 %v5419_v19, %v5562_v30 }
 0x2fd   : > { %v2519_v25 = vmax.f32 %v5623_v6, %v5637_v24  ;;  %v5641_v23 = vpop.f32.mrf.mxu2 }
 0x2fe   : > { %3642 = vmatmul.msk.f32.gmra.mxu3 %vm372_vm0, %v1374_v59 }
 0x2ff   : > { %v5643_v61 = vpop.f32.mrf.mxu1  ;;  %3742 = vmatmul.msk.f32.gmra.mxu0 %vm372_vm0, %v1375_v47  ;;  %2520 = vmax.xlane.f32.xlu2 %v2519_v25 }
 0x300   : > { %7334 = vst [vmem:[#allocation17_spill] sm:$0xff] %v5643_v61 }
 0x301   : > { %v5647_v13 = vpop.f32.mrf.mxu3 }
 0x302   : > { %7335 = vst [vmem:[#allocation18_spill] sm:$0xff] %v5647_v13  ;;  %3678 = vmatmul.msk.f32.gmra.mxu1 %vm372_vm0, %v1377_v37  ;;  %3711 = vmatmul.msk.f32.gmra.mxu2 %vm372_vm0, %v1377_v37  ;;  %v1795_v35 = vmax.f32 %v5647_v13, %v5593_v11 }
 0x304   : > { %v5655_v45 = vpop.f32.mrf.mxu0  ;;  %1796 = vmax.xlane.f32.xlu1 %v1795_v35 }
 0x305   : > { %v5657_v43 = vpop.f32.mrf.mxu2  ;;  %v2522_v55 = vmax.f32 %v5641_v23, %v5655_v45 }
 0x306   : > { %3643 = vmatmul.msk.f32.gmra.mxu3 %vm372_vm0, %v1375_v47 }
 0x307   : > { %v5659_v26 = vpop.f32.mrf.mxu1  ;;  %3743 = vmatmul.msk.f32.gmra.mxu0 %vm372_vm0, %v1376_v38 }
 0x308   : > { %7336 = vst [vmem:[#allocation19_spill] sm:$0xff] %v5659_v26 }
 0x309   : > { %v5663_v18 = vpop.f32.mrf.mxu3 }
 0x30a   : > { %7337 = vst [vmem:[#allocation20_spill] sm:$0xff] %v5663_v18  ;;  %3679 = vmatmul.msk.f32.gmra.mxu1 %vm372_vm0, %v1378_v0  ;;  %3712 = vmatmul.msk.f32.gmra.mxu2 %vm372_vm0, %v1378_v0  ;;  %v1798_v27 = vmax.f32 %v5663_v18, %v5608_v31 }
 0x30c   : > { %v5673_v3 = vpop.f32.mrf.mxu0  ;;  %2523 = vmax.xlane.f32.xlu1 %v2522_v55  ;;  %1799 = vmax.xlane.f32.xlu2 %v1798_v27 }
 0x30d   : > { %v5675_v49 = vpop.f32.mrf.mxu2  ;;  %v2525_v5 = vmax.f32 %v5657_v43, %v5673_v3 }
 0x30e   : > { %3644 = vmatmul.msk.f32.gmra.mxu3 %vm372_vm0, %v1376_v38 }
 0x30f   : > { %v5677_v50 = vpop.f32.mrf.mxu1  ;;  %3744 = vmatmul.msk.f32.gmra.mxu0 %vm372_vm0, %v1377_v37 }
 0x310   : > { %7338 = vst [vmem:[#allocation21_spill] sm:$0xff] %v5677_v50 }
 0x311   : > { %v5681_v20 = vpop.f32.mrf.mxu3 }
 0x312   : > { %7339 = vst [vmem:[#allocation22_spill] sm:$0xff] %v5681_v20  ;;  %3680 = vmatmul.msk.f32.gmra.mxu1 %vm372_vm0, %v1379_v33  ;;  %3713 = vmatmul.msk.f32.gmra.mxu2 %vm372_vm0, %v1379_v33  ;;  %v1801_v36 = vmax.f32 %v5681_v20, %v5625_v52 }
 0x314   : > { %v5691_v57 = vpop.f32.mrf.mxu0  ;;  %2526 = vmax.xlane.f32.xlu2 %v2525_v5  ;;  %1802 = vmax.xlane.f32.xlu0 %v1801_v36  ;;  %v1342_v5 = vadd.f32 %v5419_v19, %v5396_v15 }
 0x315   : > { %v2528_v4 = vmax.f32 %v5675_v49, %v5691_v57  ;;  %v5695_v59 = vpop.f32.mrf.mxu2 }
 0x316   : > { %3645 = vmatmul.msk.f32.gmra.mxu3 %vm372_vm0, %v1377_v37  ;;  %v1339_v37 = vadd.f32 %v5419_v19, %v5373_v1 }
 0x317   : > { %v5697_v56 = vpop.f32.mrf.mxu1  ;;  %3745 = vmatmul.msk.f32.gmra.mxu0 %vm372_vm0, %v1378_v0  ;;  %2529 = vmax.xlane.f32.xlu1 %v2528_v4  ;;  %v1383_v4 = vmul.f32 0.70710677, %v1342_v5  ;;  %v1348_v5 = vadd.f32 %v5419_v19, %v5571_v48 }
 0x318   : > { %v1382_v55 = vmul.f32 0.70710677, %v1339_v37 }
 0x319   : > { %v5701_v47 = vpop.f32.mrf.mxu3  ;;  %v1385_v44 = vmul.f32 0.70710677, %v1348_v5 }
 0x31a   : > { %7340 = vst [vmem:[#allocation23_spill] sm:$0xff] %v5701_v47  ;;  %3681 = vmatmul.msk.f32.gmra.mxu1 %vm372_vm0, %v1380_v62  ;;  %3714 = vmatmul.msk.f32.gmra.mxu2 %vm372_vm0, %v1380_v62  ;;  %v1804_v21 = vmax.f32 %v5701_v47, %v5643_v61 }
 0x31c   : > { %v5709_v46 = vpop.f32.mrf.mxu0  ;;  %1805 = vmax.xlane.f32.xlu2 %v1804_v21 }
 0x31d   : > { %v5711_v63 = vpop.f32.mrf.mxu2  ;;  %v2531_v8 = vmax.f32 %v5695_v59, %v5709_v46 }
 0x31e   : > { %3646 = vmatmul.msk.f32.gmra.mxu3 %vm372_vm0, %v1378_v0 }
 0x31f   : > { %v5713_v38 = vpop.f32.mrf.mxu1  ;;  %3746 = vmatmul.msk.f32.gmra.mxu0 %vm372_vm0, %v1379_v33 }
 0x321   : > { %v5717_v32 = vpop.f32.mrf.mxu3 }
 0x322   : > { %7341 = vst [vmem:[#allocation24_spill] sm:$0xff] %v5717_v32  ;;  %3682 = vmatmul.msk.f32.gmra.mxu1 %vm372_vm0, %v1381_v41  ;;  %3715 = vmatmul.msk.f32.gmra.mxu2 %vm372_vm0, %v1381_v41  ;;  %v1807_v25 = vmax.f32 %v5717_v32, %v5659_v26 }
 0x324   : > { %v5727_v35 = vpop.f32.mrf.mxu0  ;;  %2532 = vmax.xlane.f32.xlu2 %v2531_v8  ;;  %1808 = vmax.xlane.f32.xlu1 %v1807_v25 }
 0x325   : > { %v5729_v42 = vpop.f32.mrf.mxu2  ;;  %v2534_v1 = vmax.f32 %v5711_v63, %v5727_v35 }
 0x326   : > { %3647 = vmatmul.msk.f32.gmra.mxu3 %vm372_vm0, %v1379_v33 }
 0x327   : > { %v5731_v0 = vpop.f32.mrf.mxu1  ;;  %3747 = vmatmul.msk.f32.gmra.mxu0 %vm372_vm0, %v1380_v62 }
 0x329   : > { %v5735_v27 = vpop.f32.mrf.mxu3 }
 0x32a   : > { %7342 = vst [vmem:[#allocation25_spill] sm:$0xff] %v5735_v27  ;;  %3683 = vmatmul.msk.f32.gmra.mxu1 %vm372_vm0, %v1382_v55  ;;  %3716 = vmatmul.msk.f32.gmra.mxu2 %vm372_vm0, %v1382_v55  ;;  %v1810_v22 = vmax.f32 %v5735_v27, %v5677_v50 }
 0x32c   : > { %v5745_v36 = vpop.f32.mrf.mxu0  ;;  %2535 = vmax.xlane.f32.xlu1 %v2534_v1  ;;  %1811 = vmax.xlane.f32.xlu0 %v1810_v22 }
 0x32d   : > { %v5747_v33 = vpop.f32.mrf.mxu2  ;;  %v2537_v30 = vmax.f32 %v5729_v42, %v5745_v36 }
 0x32e   : > { %3648 = vmatmul.msk.f32.gmra.mxu3 %vm372_vm0, %v1380_v62  ;;  %v1384_v62 = vmul.f32 0.70710677, %v1345_v34 }
 0x32f   : > { %v5749_v58 = vpop.f32.mrf.mxu1  ;;  %3748 = vmatmul.msk.f32.gmra.mxu0 %vm372_vm0, %v1381_v41 }
 0x331   : > { %v5753_v21 = vpop.f32.mrf.mxu3 }
 0x332   : > { %3684 = vmatmul.msk.f32.gmra.mxu1 %vm372_vm0, %v1383_v4  ;;  %3717 = vmatmul.msk.f32.gmra.mxu2 %vm372_vm0, %v1383_v4  ;;  %v1813_v15 = vmax.f32 %v5753_v21, %v5697_v56 }
 0x334   : > { %v5761_v8 = vpop.f32.mrf.mxu0  ;;  %1814 = vmax.xlane.f32.xlu2 %v1813_v15 }
 0x335   : > { %v5763_v25 = vpop.f32.mrf.mxu2  ;;  %v2540_v48 = vmax.f32 %v5747_v33, %v5761_v8 }
 0x336   : > { %3649 = vmatmul.msk.f32.gmra.mxu3 %vm372_vm0, %v1381_v41 }
 0x337   : > { %v5765_v37 = vpop.f32.mrf.mxu1  ;;  %3749 = vmatmul.msk.f32.gmra.mxu0 %vm372_vm0, %v1382_v55 }
 0x339   : > { %v5769_v1 = vpop.f32.mrf.mxu3 }
 0x33a   : > { %3685 = vmatmul.msk.f32.gmra.mxu1 %vm372_vm0, %v1384_v62  ;;  %3718 = vmatmul.msk.f32.gmra.mxu2 %vm372_vm0, %v1384_v62  ;;  %v1816_v22 = vmax.f32 %v5769_v1, %v5713_v38 }
 0x33c   : > { %v5779_v15 = vpop.f32.mrf.mxu0  ;;  %2538 = vmax.xlane.f32.xlu2 %v2537_v30  ;;  %1817 = vmax.xlane.f32.xlu1 %v1816_v22  ;;  %v1351_v22 = vadd.f32 %v5419_v19, %v5582_v17 }
 0x33d   : > { %v5781_v41 = vpop.f32.mrf.mxu2  ;;  %v2543_v17 = vmax.f32 %v5763_v25, %v5779_v15 }
 0x33e   : > { %3650 = vmatmul.msk.f32.gmra.mxu3 %vm372_vm0, %v1382_v55  ;;  %v1386_v2 = vmul.f32 0.70710677, %v1351_v22 }
 0x33f   : > { %v5783_v34 = vpop.f32.mrf.mxu1  ;;  %3750 = vmatmul.msk.f32.gmra.mxu0 %vm372_vm0, %v1383_v4 }
 0x341   : > { %v5787_v16 = vpop.f32.mrf.mxu3 }
 0x342   : > { %3686 = vmatmul.msk.f32.gmra.mxu1 %vm372_vm0, %v1385_v44  ;;  %3719 = vmatmul.msk.f32.gmra.mxu2 %vm372_vm0, %v1385_v44  ;;  %v1819_v30 = vmax.f32 %v5787_v16, %v5731_v0 }
 0x344   : > { %v5797_v9 = vpop.f32.mrf.mxu0  ;;  %2541 = vmax.xlane.f32.xlu1 %v2540_v48  ;;  %1820 = vmax.xlane.f32.xlu0 %v1819_v30  ;;  %v1354_v30 = vadd.f32 %v5419_v19, %v5597_v29 }
 0x345   : > { %v5799_v55 = vpop.f32.mrf.mxu2  ;;  %v2546_v19 = vmax.f32 %v5781_v41, %v5797_v9 }
 0x346   : > { %3651 = vmatmul.msk.f32.gmra.mxu3 %vm372_vm0, %v1383_v4  ;;  %v1387_v40 = vmul.f32 0.70710677, %v1354_v30 }
 0x347   : > { %v5801_v5 = vpop.f32.mrf.mxu1  ;;  %3751 = vmatmul.msk.f32.gmra.mxu0 %vm372_vm0, %v1384_v62 }
 0x349   : > { %v5805_v14 = vpop.f32.mrf.mxu3 }
 0x34a   : > { %3687 = vmatmul.msk.f32.gmra.mxu1 %vm372_vm0, %v1386_v2  ;;  %3720 = vmatmul.msk.f32.gmra.mxu2 %vm372_vm0, %v1386_v2  ;;  %v1822_v48 = vmax.f32 %v5805_v14, %v5749_v58 }
 0x34c   : > { %v5815_v28 = vpop.f32.mrf.mxu0  ;;  %2544 = vmax.xlane.f32.xlu0 %v2543_v17  ;;  %1823 = vmax.xlane.f32.xlu2 %v1822_v48 }
 0x34d   : > { %v5817_v4 = vpop.f32.mrf.mxu2  ;;  %v2549_v13 = vmax.f32 %v5799_v55, %v5815_v28 }
 0x34e   : > { %3652 = vmatmul.msk.f32.gmra.mxu3 %vm372_vm0, %v1384_v62 }
 0x34f   : > { %v5819_v22 = vpop.f32.mrf.mxu1  ;;  %3752 = vmatmul.msk.f32.gmra.mxu0 %vm372_vm0, %v1385_v44 }
 0x351   : > { %v5823_v7 = vpop.f32.mrf.mxu3 }
 0x352   : > { %3688 = vmatmul.msk.f32.gmra.mxu1 %vm372_vm0, %v1387_v40  ;;  %3721 = vmatmul.msk.f32.gmra.mxu2 %vm372_vm0, %v1387_v40  ;;  %v1825_v29 = vmax.f32 %v5823_v7, %v5765_v37 }
 0x354   : > { %v5831_v17 = vpop.f32.mrf.mxu0  ;;  %2547 = vmax.xlane.f32.xlu2 %v2546_v19  ;;  %1826 = vmax.xlane.f32.xlu1 %v1825_v29 }
 0x355   : > { %v5833_v48 = vpop.f32.mrf.mxu2  ;;  %v2552_v19 = vmax.f32 %v5817_v4, %v5831_v17 }
 0x356   : > { %3653 = vmatmul.msk.f32.gmra.mxu3 %vm372_vm0, %v1385_v44 }
 0x357   : > { %3753 = vmatmul.msk.f32.gmra.mxu0 %vm372_vm0, %v1386_v2  ;;  %v5837_v62 = vpop.f32.mrf.mxu1 }
 0x358   : > { %7343 = vst [vmem:[#allocation26_spill] sm:$0xff] %v5837_v62 }
 0x359   : > { %v5839_v11 = vpop.f32.mrf.mxu3 }
 0x35a   : > { %v2512_v30 = vpop.xlane.xlu0 %2511  ;;  %v1828_v29 = vmax.f32 %v5839_v11, %v5783_v34 }
 0x35b   : > { %v2606_v31 = vsub.f32 %v5576_v12, %v2512_v30  ;;  %v2607_v18 = vsub.f32 %v5587_v10, %v2512_v30 }
 0x35c   : > { %v5849_v52 = vpop.f32.mrf.mxu0  ;;  %2553 = vmax.xlane.f32.xlu2 %v2552_v19  ;;  %2550 = vmax.xlane.f32.xlu1 %v2549_v13 }
 0x35d   : > { %v2670_v44 = vmul.f32 1.442695, %v2606_v31  ;;  %v2672_v61 = vmul.f32 1.442695, %v2607_v18  ;;  %v5851_v47 = vpop.f32.mrf.mxu2  ;;  %1829 = vmax.xlane.f32.xlu0 %v1828_v29  ;;  %v2555_v30 = vmax.f32 %v5833_v48, %v5849_v52 }
 0x35e   : > { %7344 = vst [vmem:[#allocation27_spill] sm:$0xff] %v5851_v47  ;;  %3654 = vmatmul.msk.f32.gmra.mxu3 %vm372_vm0, %v1386_v2 }
 0x35f   : > { %3906 = vpow2.f32 %v2670_v44  ;;  %3754 = vmatmul.msk.f32.gmra.mxu0 %vm372_vm0, %v1387_v40  ;;  %v5857_v10 = vpop.f32.mrf.mxu1 }
 0x360   : > { %3908 = vpow2.f32 %v2672_v61  ;;  %7345 = vst [vmem:[#allocation28_spill] sm:$0xff] %v5857_v10 }
 0x361   : > { %v5855_v12 = vpop.f32.mrf.mxu3 }
 0x362   : > { %v1831_v31 = vmax.f32 %v5855_v12, %v5801_v5  ;;  %v2515_v13 = vpop.xlane.xlu2 %2514 }
 0x364   : > { %v5863_v18 = vpop.f32.mrf.mxu0  ;;  %2556 = vmax.xlane.f32.xlu1 %v2555_v30  ;;  %1832 = vmax.xlane.f32.xlu2 %v1831_v31 }
 0x365   : > { %7346 = vst [vmem:[#allocation29_spill] sm:$0xff] %v5863_v18  ;;  %v5865_v19 = vpop.eup %3906  ;;  %v5869_v2 = vpop.f32.mrf.mxu2  ;;  %v2558_v26 = vmax.f32 %v5851_v47, %v5863_v18  ;;  %v2609_v18 = vsub.f32 %v5602_v53, %v2515_v13 }
 0x366   : > { %7347 = vst [vmem:[#allocation30_spill] sm:$0xff] %v5865_v19  ;;  %v5867_v61 = vpop.eup %3908  ;;  %3655 = vmatmul.msk.f32.gmra.mxu3 %vm372_vm0, %v1387_v40 }
 0x367   : > { %7348 = vst [vmem:[#allocation31_spill] sm:$0xff] %v5867_v61  ;;  %v2798_v29 = vadd.f32 %v5867_v61, %v5865_v19  ;;  %v5882_v31 = vpop.f32.mrf.mxu1  ;;  %v2608_v19 = vsub.f32 %v5591_v54, %v2515_v13 }
 0x368   : > { %7349 = vst [vmem:[#allocation32_spill] sm:$0xff] %v5869_v2 }
 0x369   : > { %2799 = vadd.xlane.f32.xlu0 %v2798_v29  ;;  %v5874_v44 = vpop.f32.mrf.mxu3  ;;  %7351 = vst [vmem:[#allocation34_spill] sm:$0xff] %v5882_v31  ;;  %v2674_v50 = vmul.f32 1.442695, %v2608_v19 }
 0x36a   : > { %v1834_v30 = vmax.f32 %v5874_v44, %v5819_v22  ;;  %v2518_v61 = vpop.xlane.xlu2 %2517 }
 0x36b   : > { %3910 = vpow2.f32 %v2674_v50  ;;  %v2610_v54 = vsub.f32 %v5606_v39, %v2518_v61  ;;  %v2611_v53 = vsub.f32 %v5619_v51, %v2518_v61 }
 0x36c   : > { %v5878_v32 = vpop.f32.mrf.mxu0  ;;  %2559 = vmax.xlane.f32.xlu2 %v2558_v26  ;;  %1835 = vmax.xlane.f32.xlu1 %v1834_v30 }
 0x36d   : > { %7350 = vst [vmem:[#allocation33_spill] sm:$0xff] %v5878_v32  ;;  %v2561_v20 = vmax.f32 %v5869_v2, %v5878_v32  ;;  %v5888_v29 = vpop.f32.mrf.mxu2  ;;  %v2676_v32 = vmul.f32 1.442695, %v2609_v18  ;;  %v2680_v50 = vmul.f32 1.442695, %v2611_v53 }
 0x36e   : > { %7353 = vst [vmem:[#allocation36_spill] sm:$0xff] %v5888_v29 }
 0x36f   : > { %v5886_v40 = vpop.xlane.xlu1 %1793  ;;  %v5898_v30 = vpop.f32.mrf.mxu1  ;;  %3912 = vpow2.f32 %v2676_v32 }
 0x370   : > { %7352 = vst [vmem:[#allocation35_spill] sm:$0xff] %v5886_v40 }
 0x371   : > { %2562 = vmax.xlane.f32.xlu0 %v2561_v20  ;;  %v5892_v47 = vpop.f32.mrf.mxu3  ;;  %7356 = vst [vmem:[#allocation39_spill] sm:$0xff] %v5898_v30  ;;  %v5914_v39 = vpop.eup %3910 }
 0x372   : > { %7354 = vst [vmem:[#allocation37_spill] sm:$0xff] %v5892_v47  ;;  %v1837_v26 = vmax.f32 %v5892_v47, %v5837_v62  ;;  %v2521_v2 = vpop.xlane.xlu2 %2520 }
 0x373   : > { %7361 = vst [vmem:[#allocation44_spill] sm:$0xff] %v5914_v39  ;;  %v2612_v62 = vsub.f32 %v5623_v6, %v2521_v2  ;;  %v2613_v53 = vsub.f32 %v5637_v24, %v2521_v2 }
 0x374   : > { %v5894_v60 = vpop.f32.mrf.mxu0  ;;  %1838 = vmax.xlane.f32.xlu1 %v1837_v26  ;;  %v2678_v26 = vmul.f32 1.442695, %v2610_v54 }
 0x375   : > { %7355 = vst [vmem:[#allocation38_spill] sm:$0xff] %v5894_v60  ;;  %v5904_v20 = vpop.f32.mrf.mxu2  ;;  %v2564_v18 = vmax.f32 %v5888_v29, %v5894_v60  ;;  %v5918_v61 = vpop.eup %3912 }
 0x376   : > { %7358 = vst [vmem:[#allocation41_spill] sm:$0xff] %v5904_v20  ;;  %3914 = vpow2.f32 %v2678_v26  ;;  %v2682_v26 = vmul.f32 1.442695, %v2612_v62 }
 0x377   : > { %v5900_v40 = vpop.xlane.xlu1 %1796  ;;  %7363 = vst [vmem:[#allocation46_spill] sm:$0xff] %v5918_v61  ;;  %v5921_v47 = vpop.f32.mrf.mxu1  ;;  %3916 = vpow2.f32 %v2680_v50  ;;  %v2684_v50 = vmul.f32 1.442695, %v2613_v53 }
 0x378   : > { %7357 = vst [vmem:[#allocation40_spill] sm:$0xff] %v5900_v40  ;;  %3918 = vpow2.f32 %v2682_v26 }
 0x379   : > { %v5906_v13 = vpop.f32.mrf.mxu3  ;;  %7364 = vst [vmem:[#allocation47_spill] sm:$0xff] %v5921_v47 }
 0x37a   : > { %7359 = vst [vmem:[#allocation42_spill] sm:$0xff] %v5906_v13  ;;  %v1840_v19 = vmax.f32 %v5906_v13, %v5857_v10  ;;  %v2801_v10 = vadd.f32 %v5918_v61, %v5914_v39 }
 0x37c   : > { %v5908_v27 = vpop.f32.mrf.mxu0  ;;  %2565 = vmax.xlane.f32.xlu1 %v2564_v18  ;;  %1841 = vmax.xlane.f32.xlu0 %v1840_v19 }
 0x37d   : > { %7360 = vst [vmem:[#allocation43_spill] sm:$0xff] %v5908_v27  ;;  %v5934_v13 = vpop.f32.mrf.mxu2 }
 0x37e   : > { %7367 = vst [vmem:[#allocation50_spill] sm:$0xff] %v5934_v13 }
 0x37f   : > { %v2524_v32 = vpop.xlane.xlu1 %2523  ;;  %v5916_v51 = vpop.xlane.xlu2 %1799 }
 0x380   : > { %7362 = vst [vmem:[#allocation45_spill] sm:$0xff] %v5916_v51  ;;  %v2614_v60 = vsub.f32 %v5641_v23, %v2524_v32  ;;  %v2615_v54 = vsub.f32 %v5655_v45, %v2524_v32  ;;  %v5936_v45 = vpop.eup %3914  ;;  %v5942_v61 = vpop.f32.mrf.mxu1 }
 0x381   : > { %v5925_v18 = vpop.f32.mrf.mxu3  ;;  %7368 = vst [vmem:[#allocation51_spill] sm:$0xff] %v5936_v45  ;;  %v5938_v24 = vpop.eup %3916 }
 0x382   : > { %7365 = vst [vmem:[#allocation48_spill] sm:$0xff] %v5925_v18  ;;  %v1843_v6 = vmax.f32 %v5925_v18, %v5882_v31  ;;  %v2686_v29 = vmul.f32 1.442695, %v2614_v60  ;;  %v2688_v23 = vmul.f32 1.442695, %v2615_v54  ;;  %v2567_v60 = vmax.f32 %v5904_v20, %v5908_v27 }
 0x383   : > { %7369 = vst [vmem:[#allocation52_spill] sm:$0xff] %v5938_v24  ;;  %v2804_v62 = vadd.f32 %v5938_v24, %v5936_v45 }
 0x384   : > { %v5928_v19 = vpop.f32.mrf.mxu0  ;;  %2802 = vadd.xlane.f32.xlu0 %v2801_v10  ;;  %1844 = vmax.xlane.f32.xlu1 %v1843_v6  ;;  %3920 = vpow2.f32 %v2686_v29  ;;  %7371 = vst [vmem:[#allocation54_spill] sm:$0xff] %v5942_v61  ;;  %v5952_v29 = vpop.eup %3918 }
 0x385   : > { %7366 = vst [vmem:[#allocation49_spill] sm:$0xff] %v5928_v19  ;;  %3922 = vpow2.f32 %v2688_v23  ;;  %v5954_v53 = vpop.f32.mrf.mxu2 }
 0x386   : > { %3924 = vpow2.f32 %v2684_v50  ;;  %7373 = vst [vmem:[#allocation56_spill] sm:$0xff] %v5952_v29 }
 0x387   : > { %v2527_v32 = vpop.xlane.xlu2 %2526  ;;  %7374 = vst [vmem:[#allocation57_spill] sm:$0xff] %v5954_v53 }
 0x388   : > { %v2616_v39 = vsub.f32 %v5657_v43, %v2527_v32  ;;  %v5972_v45 = vpop.f32.mrf.mxu1 }
 0x389   : > { %v5940_v2 = vpop.f32.mrf.mxu3  ;;  %7379 = vst [vmem:[#allocation62_spill] sm:$0xff] %v5972_v45 }
 0x38a   : > { %7370 = vst [vmem:[#allocation53_spill] sm:$0xff] %v5940_v2  ;;  %v1846_v10 = vmax.f32 %v5940_v2, %v5898_v30  ;;  %v5956_v6 = vpop.eup %3920  ;;  %v2617_v30 = vsub.f32 %v5673_v3, %v2527_v32  ;;  %v2690_v2 = vmul.f32 1.442695, %v2616_v39 }
 0x38b   : > { %7375 = vst [vmem:[#allocation58_spill] sm:$0xff] %v5956_v6  ;;  %v5960_v23 = vpop.eup %3922 }
 0x38c   : > { %v5950_v54 = vpop.f32.mrf.mxu0  ;;  %2568 = vmax.xlane.f32.xlu0 %v2567_v60  ;;  %2805 = vadd.xlane.f32.xlu1 %v2804_v62  ;;  %7376 = vst [vmem:[#allocation59_spill] sm:$0xff] %v5960_v23  ;;  %v5962_v50 = vpop.eup %3924  ;;  %v2810_v60 = vadd.f32 %v5960_v23, %v5956_v6  ;;  %v2692_v31 = vmul.f32 1.442695, %v2617_v30  ;;  %3926 = vpow2.f32 %v2690_v2  ;;  %v2570_v2 = vmax.f32 %v5934_v13, %v5928_v19 }
 0x38d   : > { %7372 = vst [vmem:[#allocation55_spill] sm:$0xff] %v5950_v54  ;;  %1847 = vmax.xlane.f32.xlu2 %v1846_v10  ;;  %v2530_v62 = vpop.xlane.xlu1 %2529  ;;  %v2807_v10 = vadd.f32 %v5962_v50, %v5952_v29  ;;  %v5977_v32 = vpop.f32.mrf.mxu2  ;;  %v2573_v30 = vmax.f32 %v5954_v53, %v5950_v54 }
 0x38e   : > { %7377 = vst [vmem:[#allocation60_spill] sm:$0xff] %v5962_v50  ;;  %v2618_v3 = vsub.f32 %v5675_v49, %v2530_v62  ;;  %3928 = vpow2.f32 %v2692_v31  ;;  %v2619_v39 = vsub.f32 %v5691_v57, %v2530_v62 }
 0x38f   : > { %v5958_v26 = vpop.xlane.xlu2 %1805 }
 0x390   : > { %v2696_v62 = vmul.f32 1.442695, %v2619_v39 }
 0x391   : > { %v5966_v24 = vpop.f32.mrf.mxu3 }
 0x392   : > { %7378 = vst [vmem:[#allocation61_spill] sm:$0xff] %v5966_v24  ;;  %v5994_v57 = vpop.eup %3926 }
 0x393   : > { %7382 = vst [vmem:[#allocation65_spill] sm:$0xff] %v5994_v57 }
 0x394   : > { %2811 = vadd.xlane.f32.xlu1 %v2810_v60  ;;  %v5974_v18 = vpop.f32.mrf.mxu0  ;;  %v5998_v29 = vpop.eup %3928 }
 0x395   : > { %2808 = vadd.xlane.f32.xlu2 %v2807_v10  ;;  %v2694_v10 = vmul.f32 1.442695, %v2618_v3  ;;  %7384 = vst [vmem:[#allocation67_spill] sm:$0xff] %v5998_v29 }
 0x397   : > { %v2533_v43 = vpop.xlane.xlu2 %2532  ;;  %v5988_v49 = vpop.xlane.xlu1 %1808  ;;  %3930 = vpow2.f32 %v2694_v10 }
 0x398   : > { %v2620_v23 = vsub.f32 %v5695_v59, %v2533_v43  ;;  %v2621_v6 = vsub.f32 %v5709_v46, %v2533_v43  ;;  %v5992_v46 = vpop.xlane.xlu0 %1790  ;;  %v5996_v43 = vpop.f32.mrf.mxu1 }
 0x399   : > { %v5981_v50 = vpop.f32.mrf.mxu3  ;;  %7381 = vst [vmem:[#allocation64_spill] sm:$0xff] %v5992_v46 }
 0x39a   : > { %7380 = vst [vmem:[#allocation63_spill] sm:$0xff] %v5981_v50  ;;  %v1852_v60 = vmax.f32 %v5981_v50, %v5942_v61  ;;  %v2698_v59 = vmul.f32 1.442695, %v2620_v23  ;;  %v2700_v31 = vmul.f32 1.442695, %v2621_v6  ;;  %v6002_v61 = vpop.f32.mrf.mxu2  ;;  %v2813_v6 = vadd.f32 %v5998_v29, %v5994_v57 }
 0x39b   : > { %7383 = vst [vmem:[#allocation66_spill] sm:$0xff] %v5996_v43 }
 0x39c   : > { %2574 = vmax.xlane.f32.xlu1 %v2573_v30  ;;  %1853 = vmax.xlane.f32.xlu0 %v1852_v60  ;;  %v6000_v3 = vpop.f32.mrf.mxu0  ;;  %3932 = vpow2.f32 %v2698_v59  ;;  %v1849_v30 = vmax.f32 %v5966_v24, %v5921_v47 }
 0x39d   : > { %2571 = vmax.xlane.f32.xlu2 %v2570_v2  ;;  %3934 = vpow2.f32 %v2700_v31  ;;  %v6012_v60 = vpop.eup %3930 }
 0x39e   : > { %3936 = vpow2.f32 %v2696_v62  ;;  %7386 = vst [vmem:[#allocation69_spill] sm:$0xff] %v6012_v60 }
 0x39f   : > { %v2536_v2 = vpop.xlane.xlu1 %2535 }
 0x3a0   : > { %v6014_v10 = vpop.xlane.xlu0 %1802  ;;  %v6024_v29 = vpop.f32.mrf.mxu1  ;;  %v2622_v47 = vsub.f32 %v5711_v63, %v2536_v2 }
 0x3a1   : > { %v6004_v23 = vpop.f32.mrf.mxu3  ;;  %7390 = vst [vmem:[#allocation73_spill] sm:$0xff] %v6024_v29 }
 0x3a2   : > { %7385 = vst [vmem:[#allocation68_spill] sm:$0xff] %v6004_v23  ;;  %v1855_v39 = vmax.f32 %v6004_v23, %v5972_v45  ;;  %v6016_v59 = vpop.eup %3932  ;;  %v6036_v50 = vpop.f32.mrf.mxu2  ;;  %v2702_v23 = vmul.f32 1.442695, %v2622_v47 }
 0x3a3   : > { %7387 = vst [vmem:[#allocation70_spill] sm:$0xff] %v6016_v59  ;;  %v6020_v62 = vpop.eup %3934 }
 0x3a4   : > { %2814 = vadd.xlane.f32.xlu0 %v2813_v6  ;;  %1856 = vmax.xlane.f32.xlu1 %v1855_v39  ;;  %7388 = vst [vmem:[#allocation71_spill] sm:$0xff] %v6020_v62  ;;  %v6022_v46 = vpop.eup %3936  ;;  %v2623_v6 = vsub.f32 %v5727_v35, %v2536_v2  ;;  %v6028_v39 = vpop.f32.mrf.mxu0  ;;  %v2819_v57 = vadd.f32 %v6020_v62, %v6016_v59  ;;  %3938 = vpow2.f32 %v2702_v23 }
 0x3a5   : > { %1850 = vmax.xlane.f32.xlu2 %v1849_v30  ;;  %7389 = vst [vmem:[#allocation72_spill] sm:$0xff] %v6022_v46  ;;  %v2576_v30 = vmax.f32 %v5977_v32, %v5974_v18  ;;  %v2816_v45 = vadd.f32 %v6022_v46, %v6012_v60  ;;  %v2582_v47 = vmax.f32 %v6036_v50, %v6028_v39 }
 0x3a6   : > { %v2704_v63 = vmul.f32 1.442695, %v2623_v6  ;;  %v2579_v23 = vmax.f32 %v6002_v61, %v6000_v3 }
 0x3a7   : > { %v6018_v31 = vpop.xlane.xlu2 %1814 }
 0x3a8   : > { %v6040_v35 = vpop.xlane.xlu0 %1811  ;;  %3940 = vpow2.f32 %v2704_v63  ;;  %v6052_v6 = vpop.f32.mrf.mxu1 }
 0x3a9   : > { %v6030_v24 = vpop.f32.mrf.mxu3  ;;  %7393 = vst [vmem:[#allocation76_spill] sm:$0xff] %v6052_v6 }
 0x3aa   : > { %7391 = vst [vmem:[#allocation74_spill] sm:$0xff] %v6030_v24 }
 0x3ac   : > { %2577 = vmax.xlane.f32.xlu0 %v2576_v30  ;;  %2820 = vadd.xlane.f32.xlu1 %v2819_v57  ;;  %v1858_v57 = vmax.f32 %v6030_v24, %v5996_v43 }
 0x3ad   : > { %2817 = vadd.xlane.f32.xlu2 %v2816_v45  ;;  %v6054_v45 = vpop.f32.mrf.mxu0 }
 0x3af   : > { %v2539_v2 = vpop.xlane.xlu2 %2538  ;;  %v6042_v27 = vpop.xlane.xlu1 %1817 }
 0x3b0   : > { %v2624_v20 = vsub.f32 %v5729_v42, %v2539_v2  ;;  %v2625_v59 = vsub.f32 %v5745_v36, %v2539_v2  ;;  %v6058_v42 = vpop.f32.mrf.mxu2  ;;  %v6060_v36 = vpop.eup %3938 }
 0x3b1   : > { %v6045_v62 = vpop.f32.mrf.mxu3  ;;  %7394 = vst [vmem:[#allocation77_spill] sm:$0xff] %v6060_v36  ;;  %v6064_v60 = vpop.eup %3940 }
 0x3b2   : > { %7392 = vst [vmem:[#allocation75_spill] sm:$0xff] %v6045_v62  ;;  %v2706_v30 = vmul.f32 1.442695, %v2624_v20  ;;  %v2708_v63 = vmul.f32 1.442695, %v2625_v59  ;;  %v2822_v20 = vadd.f32 %v6064_v60, %v6060_v36 }
 0x3b3   : > { %7395 = vst [vmem:[#allocation78_spill] sm:$0xff] %v6064_v60 }
 0x3b4   : > { %2583 = vmax.xlane.f32.xlu1 %v2582_v47  ;;  %1859 = vmax.xlane.f32.xlu0 %v1858_v57  ;;  %3942 = vpow2.f32 %v2706_v30 }
 0x3b5   : > { %2580 = vmax.xlane.f32.xlu2 %v2579_v23  ;;  %3944 = vpow2.f32 %v2708_v63  ;;  %v1861_v23 = vmax.f32 %v6045_v62, %v6024_v29 }
 0x3b7   : > { %v2542_v2 = vpop.xlane.xlu1 %2541  ;;  %v6062_v46 = vpop.xlane.xlu0 %1820 }
 0x3b8   : > { %v2626_v43 = vsub.f32 %v5747_v33, %v2542_v2  ;;  %v2627_v24 = vsub.f32 %v5761_v8, %v2542_v2  ;;  %v6076_v33 = vpop.f32.mrf.mxu1  ;;  %v6078_v8 = vpop.f32.mrf.mxu0 }
 0x3b9   : > { %v6068_v57 = vpop.f32.mrf.mxu3  ;;  %v6086_v2 = vpop.f32.mrf.mxu2 }
 0x3ba   : > { %v2710_v19 = vmul.f32 1.442695, %v2626_v43  ;;  %v2712_v47 = vmul.f32 1.442695, %v2627_v24  ;;  %7396 = vst [vmem:[#allocation79_spill] sm:$0xff] %v6068_v57  ;;  %v1864_v59 = vmax.f32 %v6068_v57, %v6052_v6  ;;  %v6082_v30 = vpop.eup %3942 }
 0x3bb   : > { %7397 = vst [vmem:[#allocation80_spill] sm:$0xff] %v6082_v30  ;;  %v6084_v63 = vpop.eup %3944 }
 0x3bc   : > { %3946 = vpow2.f32 %v2710_v19  ;;  %2823 = vadd.xlane.f32.xlu0 %v2822_v20  ;;  %1865 = vmax.xlane.f32.xlu1 %v1864_v59  ;;  %7398 = vst [vmem:[#allocation81_spill] sm:$0xff] %v6084_v63  ;;  %v2825_v36 = vadd.f32 %v6084_v63, %v6082_v30 }
 0x3bd   : > { %3948 = vpow2.f32 %v2712_v47  ;;  %1862 = vmax.xlane.f32.xlu2 %v1861_v23  ;;  %v2585_v23 = vmax.f32 %v6058_v42, %v6054_v45 }
 0x3bf   : > { %v2545_v24 = vpop.xlane.xlu0 %2544  ;;  %v6080_v43 = vpop.xlane.xlu2 %1823 }
 0x3c0   : > { %v2628_v19 = vsub.f32 %v5763_v25, %v2545_v24  ;;  %v2629_v47 = vsub.f32 %v5779_v15, %v2545_v24  ;;  %v6102_v24 = vpop.f32.mrf.mxu1  ;;  %v6104_v40 = vpop.f32.mrf.mxu0 }
 0x3c1   : > { %v6092_v20 = vpop.f32.mrf.mxu3  ;;  %v6109_v63 = vpop.f32.mrf.mxu2 }
 0x3c2   : > { %v6089_v60 = vpop.eup %3946  ;;  %v2714_v62 = vmul.f32 1.442695, %v2628_v19  ;;  %v2716_v25 = vmul.f32 1.442695, %v2629_v47  ;;  %v2588_v47 = vmax.f32 %v6086_v2, %v6078_v8 }
 0x3c3   : > { %7399 = vst [vmem:[#allocation82_spill] sm:$0xff] %v6089_v60  ;;  %v6094_v59 = vpop.eup %3948 }
 0x3c4   : > { %7400 = vst [vmem:[#allocation83_spill] sm:$0xff] %v6094_v59  ;;  %v2828_v29 = vadd.f32 %v6094_v59, %v6089_v60  ;;  %2586 = vmax.xlane.f32.xlu0 %v2585_v23  ;;  %3950 = vpow2.f32 %v2714_v62 }
 0x3c5   : > { %2826 = vadd.xlane.f32.xlu2 %v2825_v36  ;;  %3952 = vpow2.f32 %v2716_v25  ;;  %v1867_v36 = vmax.f32 %v6092_v20, %v6076_v33 }
 0x3c6   : > { %2829 = vadd.xlane.f32.xlu1 %v2828_v29  ;;  %v2591_v29 = vmax.f32 %v6109_v63, %v6104_v40 }
 0x3c7   : > { %v2548_v13 = vpop.xlane.xlu2 %2547  ;;  %v1827_v15 = vpop.xlane.xlu1 %1826 }
 0x3c8   : > { %v2630_v54 = vsub.f32 %v5781_v41, %v2548_v13  ;;  %v2631_v19 = vsub.f32 %v5797_v9, %v2548_v13  ;;  %v6124_v60 = vpop.f32.mrf.mxu1  ;;  %v1909_v51 = vsub.f32 %v5823_v7, %v1827_v15 }
 0x3c9   : > { %v6107_v53 = vpop.f32.mrf.mxu3 }
 0x3ca   : > { %v2718_v62 = vmul.f32 1.442695, %v2630_v54  ;;  %v6118_v41 = vpop.eup %3950  ;;  %v2720_v23 = vmul.f32 1.442695, %v2631_v19  ;;  %v1910_v54 = vsub.f32 %v5765_v37, %v1827_v15  ;;  %v1997_v37 = vmul.f32 1.442695, %v1909_v51 }
 0x3cb   : > { %7401 = vst [vmem:[#allocation84_spill] sm:$0xff] %v6118_v41  ;;  %v6120_v30 = vpop.eup %3952 }
 0x3cc   : > { %1868 = vmax.xlane.f32.xlu0 %v1867_v36  ;;  %7402 = vst [vmem:[#allocation85_spill] sm:$0xff] %v6120_v30  ;;  %3954 = vpow2.f32 %v2718_v62  ;;  %v1870_v62 = vmax.f32 %v6107_v53, %v6102_v24 }
 0x3cd   : > { %2589 = vmax.xlane.f32.xlu2 %v2588_v47  ;;  %3956 = vpow2.f32 %v2720_v23  ;;  %v6140_v23 = vpop.f32.mrf.mxu2 }
 0x3ce   : > { %2592 = vmax.xlane.f32.xlu1 %v2591_v29 }
 0x3cf   : > { %v2551_v25 = vpop.xlane.xlu1 %2550  ;;  %v2554_v15 = vpop.xlane.xlu2 %2553 }
 0x3d0   : > { %v2632_v9 = vsub.f32 %v5799_v55, %v2551_v25  ;;  %v2633_v13 = vsub.f32 %v5815_v28, %v2551_v25  ;;  %v1830_v59 = vpop.xlane.xlu0 %1829  ;;  %v2831_v55 = vadd.f32 %v6120_v30, %v6118_v41  ;;  %v6137_v25 = vpop.f32.mrf.mxu0  ;;  %v2634_v6 = vsub.f32 %v5817_v4, %v2554_v15 }
 0x3d1   : > { %v6128_v29 = vpop.f32.mrf.mxu3  ;;  %v1911_v28 = vsub.f32 %v5839_v11, %v1830_v59  ;;  %v1912_v7 = vsub.f32 %v5783_v34, %v1830_v59  ;;  %v2635_v34 = vsub.f32 %v5831_v17, %v2554_v15  ;;  %v2594_v51 = vmax.f32 %v6140_v23, %v6137_v25  ;;  %v6173_v15 = vpop.f32.mrf.mxu1 }
 0x3d2   : > { %v2722_v36 = vmul.f32 1.442695, %v2632_v9  ;;  %v2724_v19 = vmul.f32 1.442695, %v2633_v13  ;;  %v1873_v47 = vmax.f32 %v6128_v29, %v6124_v60  ;;  %v1999_v9 = vmul.f32 1.442695, %v1910_v54  ;;  %v6142_v30 = vpop.eup %3954 }
 0x3d3   : > { %v2001_v11 = vmul.f32 1.442695, %v1911_v28  ;;  %v6144_v41 = vpop.eup %3956  ;;  %v2003_v57 = vmul.f32 1.442695, %v1912_v7  ;;  %v2728_v4 = vmul.f32 1.442695, %v2635_v34 }
 0x3d4   : > { %2832 = vadd.xlane.f32.xlu0 %v2831_v55  ;;  %3958 = vpow2.f32 %v2722_v36  ;;  %7403 = vst [vmem:[#allocation86_spill] sm:$0xff] %v6144_v41  ;;  %v2834_v54 = vadd.f32 %v6144_v41, %v6142_v30 }
 0x3d5   : > { %1871 = vmax.xlane.f32.xlu2 %v1870_v62  ;;  %3960 = vpow2.f32 %v2724_v19  ;;  %v2726_v19 = vmul.f32 1.442695, %v2634_v6 }
 0x3d6   : > { %1874 = vmax.xlane.f32.xlu1 %v1873_v47  ;;  %3962 = vpow2.f32 %v1997_v37  ;;  %v6168_v37 = vpop.f32.mrf.mxu2 }
 0x3d7   : > { %v2557_v13 = vpop.xlane.xlu1 %2556  ;;  %3964 = vpow2.f32 %v1999_v9 }
 0x3d8   : > { %3966 = vpow2.f32 %v2001_v11  ;;  %v6158_v47 = vpop.f32.mrf.mxu0  ;;  %v2636_v6 = vsub.f32 %v5833_v48, %v2557_v13  ;;  %v2637_v9 = vsub.f32 %v5849_v52, %v2557_v13  ;;  %v1833_v52 = vpop.xlane.xlu2 %1832 }
 0x3d9   : > { %3968 = vpow2.f32 %v2003_v57  ;;  %v6162_v28 = vpop.f32.mrf.mxu3 }
 0x3da   : > { %v6150_v59 = vpop.eup %3958  ;;  %3970 = vpow2.f32 %v2726_v19  ;;  %v2730_v19 = vmul.f32 1.442695, %v2636_v6  ;;  %v2732_v48 = vmul.f32 1.442695, %v2637_v9  ;;  %v1908_v6 = vsub.f32 %v5749_v58, %v6080_v43 }
 0x3db   : > { %v6154_v36 = vpop.eup %3960  ;;  %3972 = vpow2.f32 %v2728_v4  ;;  %v1913_v9 = vsub.f32 %v5855_v12, %v1833_v52 }
 0x3dc   : > { %2595 = vmax.xlane.f32.xlu0 %v2594_v51  ;;  %v2837_v17 = vadd.f32 %v6154_v36, %v6150_v59  ;;  %v6160_v55 = vpop.eup %3962  ;;  %v6176_v11 = vpop.xlane.xlu0 %2799  ;;  %v1876_v51 = vmax.f32 %v6162_v28, %v6173_v15  ;;  %3974 = vpow2.f32 %v2730_v19  ;;  %v1995_v58 = vmul.f32 1.442695, %v1908_v6 }
 0x3dd   : > { %2835 = vadd.xlane.f32.xlu2 %v2834_v54  ;;  %7404 = vst [vmem:[#allocation87_spill] sm:$0xff] %v6160_v55  ;;  %v6166_v7 = vpop.eup %3964  ;;  %3976 = vpow2.f32 %v2732_v48  ;;  %v2005_v19 = vmul.f32 1.442695, %v1913_v9 }
 0x3de   : > { %2838 = vadd.xlane.f32.xlu1 %v2837_v17  ;;  %7405 = vst [vmem:[#allocation88_spill] sm:$0xff] %v6166_v7  ;;  %v6171_v57 = vpop.eup %3966  ;;  %v2113_v54 = vadd.f32 %v6166_v7, %v6160_v55  ;;  %v1914_v7 = vsub.f32 %v5801_v5, %v1833_v52  ;;  %v2597_v55 = vmax.f32 %v6168_v37, %v6158_v47 }
 0x3df   : > { %v6164_v62 = vpop.xlane.xlu1 %1835  ;;  %7406 = vst [vmem:[#allocation89_spill] sm:$0xff] %v6171_v57  ;;  %v6178_v34 = vpop.eup %3968  ;;  %v1905_v52 = vsub.f32 %v5787_v16, %v6062_v46 }
 0x3e0   : > { %7407 = vst [vmem:[#allocation90_spill] sm:$0xff] %v6176_v11  ;;  %v2116_v17 = vadd.f32 %v6178_v34, %v6171_v57  ;;  %v6186_v4 = vpop.eup %3970  ;;  %v1907_v11 = vsub.f32 %v5805_v14, %v6080_v43  ;;  %v2007_v48 = vmul.f32 1.442695, %v1914_v7 }
 0x3e1   : > { %7408 = vst [vmem:[#allocation91_spill] sm:$0xff] %v6178_v34  ;;  %v6188_v13 = vpop.eup %3972  ;;  %v6218_v6 = vpop.f32.mrf.mxu3 }
 0x3e2   : > { %v2840_v34 = vadd.f32 %v6188_v13, %v6186_v4  ;;  %v1993_v14 = vmul.f32 1.442695, %v1907_v11  ;;  %v6210_v12 = vpop.eup %3974 }
 0x3e3   : > { %v6212_v5 = vpop.eup %3976 }
 0x3e4   : > { %1877 = vmax.xlane.f32.xlu0 %v1876_v51  ;;  %v6196_v51 = vpop.f32.mrf.mxu0  ;;  %3978 = vpow2.f32 %v1993_v14  ;;  %v2843_v9 = vadd.f32 %v6212_v5, %v6210_v12 }
 0x3e5   : > { %2114 = vadd.xlane.f32.xlu2 %v2113_v54  ;;  %v6199_v54 = vpop.f32.mrf.mxu2  ;;  %3980 = vpow2.f32 %v1995_v58  ;;  %v1989_v58 = vmul.f32 1.442695, %v1905_v52  ;;  %v1903_v52 = vsub.f32 %v5769_v1, %v6042_v27 }
 0x3e6   : > { %2117 = vadd.xlane.f32.xlu1 %v2116_v17  ;;  %v6204_v17 = vpop.xlane.xlu0 %2562  ;;  %v2600_v43 = vmax.f32 %v6199_v54, %v6196_v51  ;;  %3982 = vpow2.f32 %v2005_v19 }
 0x3e7   : > { %v6192_v41 = vpop.xlane.xlu1 %1838  ;;  %7410 = vst [vmem:[#allocation93_spill] sm:$0xff] %v6204_v17  ;;  %3984 = vpow2.f32 %v2007_v48 }
 0x3e8   : > { %7409 = vst [vmem:[#allocation92_spill] sm:$0xff] %v6192_v41  ;;  %3986 = vpow2.f32 %v1989_v58 }
 0x3ea   : > { %v6234_v57 = vpop.eup %3978 }
 0x3eb   : > { %7413 = vst [vmem:[#allocation96_spill] sm:$0xff] %v6234_v57  ;;  %v6238_v19 = vpop.eup %3980 }
 0x3ec   : > { %2841 = vadd.xlane.f32.xlu0 %v2840_v34  ;;  %v1906_v34 = vsub.f32 %v5731_v0, %v6062_v46  ;;  %v6224_v7 = vpop.f32.mrf.mxu0  ;;  %7414 = vst [vmem:[#allocation97_spill] sm:$0xff] %v6238_v19  ;;  %v6240_v48 = vpop.eup %3982 }
 0x3ed   : > { %2598 = vmax.xlane.f32.xlu2 %v2597_v55  ;;  %v6222_v55 = vpop.f32.mrf.mxu1  ;;  %7415 = vst [vmem:[#allocation98_spill] sm:$0xff] %v6240_v48  ;;  %v6244_v17 = vpop.eup %3984 }
 0x3ee   : > { %2601 = vmax.xlane.f32.xlu1 %v2600_v43  ;;  %v1879_v16 = vmax.f32 %v6218_v6, %v6222_v55  ;;  %v6232_v43 = vpop.f32.mrf.mxu2  ;;  %v1991_v0 = vmul.f32 1.442695, %v1906_v34  ;;  %7417 = vst [vmem:[#allocation100_spill] sm:$0xff] %v6244_v17  ;;  %v1904_v34 = vsub.f32 %v5713_v38, %v6042_v27  ;;  %v6264_v38 = vpop.eup %3986 }
 0x3ef   : > { %v6214_v11 = vpop.xlane.xlu1 %2565  ;;  %v6228_v14 = vpop.xlane.xlu0 %1841  ;;  %v2603_v46 = vmax.f32 %v6232_v43, %v6224_v7  ;;  %7420 = vst [vmem:[#allocation103_spill] sm:$0xff] %v6264_v38 }
 0x3f0   : > { %7411 = vst [vmem:[#allocation94_spill] sm:$0xff] %v6214_v11  ;;  %3988 = vpow2.f32 %v1991_v0  ;;  %v1987_v1 = vmul.f32 1.442695, %v1904_v34 }
 0x3f1   : > { %7412 = vst [vmem:[#allocation95_spill] sm:$0xff] %v6228_v14  ;;  %v2110_v14 = vadd.f32 %v6238_v19, %v6234_v57 }
 0x3f4   : > { %2844 = vadd.xlane.f32.xlu0 %v2843_v9  ;;  %v6248_v9 = vpop.xlane.xlu2 %2559 }
 0x3f5   : > { %1880 = vmax.xlane.f32.xlu2 %v1879_v16  ;;  %7418 = vst [vmem:[#allocation101_spill] sm:$0xff] %v6248_v9  ;;  %v6252_v16 = vpop.f32.mrf.mxu3  ;;  %v6258_v11 = vpop.f32.mrf.mxu1 }
 0x3f6   : > { %2604 = vmax.xlane.f32.xlu1 %v2603_v46  ;;  %v2119_v46 = vadd.f32 %v6244_v17, %v6240_v48  ;;  %v1882_v58 = vmax.f32 %v6252_v16, %v6258_v11  ;;  %v6266_v27 = vpop.eup %3988 }
 0x3f7   : > { %v6242_v41 = vpop.xlane.xlu1 %1844  ;;  %v6262_v9 = vpop.xlane.xlu0 %2802  ;;  %7421 = vst [vmem:[#allocation104_spill] sm:$0xff] %v6266_v27  ;;  %v2107_v34 = vadd.f32 %v6266_v27, %v6264_v38 }
 0x3f8   : > { %7416 = vst [vmem:[#allocation99_spill] sm:$0xff] %v6242_v41  ;;  %v1985_v41 = vmul.f32 1.442695, %v1903_v52  ;;  %v1901_v52 = vsub.f32 %v5753_v21, %v6018_v31 }
 0x3f9   : > { %7419 = vst [vmem:[#allocation102_spill] sm:$0xff] %v6262_v9 }
 0x3fa   : > { %3990 = vpow2.f32 %v1985_v41  ;;  %v1915_v41 = vsub.f32 %v5874_v44, %v6164_v62 }
 0x3fb   : > { %3992 = vpow2.f32 %v1987_v1 }
 0x3fc   : > { %2111 = vadd.xlane.f32.xlu0 %v2110_v14  ;;  %v1902_v14 = vsub.f32 %v5697_v56, %v6018_v31  ;;  %v1916_v31 = vsub.f32 %v5819_v22, %v6164_v62 }
 0x3fd   : > { %2120 = vadd.xlane.f32.xlu2 %v2119_v46  ;;  %v1981_v46 = vmul.f32 1.442695, %v1901_v52  ;;  %v2009_v52 = vmul.f32 1.442695, %v1915_v41 }
 0x3fe   : > { %1883 = vmax.xlane.f32.xlu1 %v1882_v58  ;;  %v1983_v17 = vmul.f32 1.442695, %v1902_v14  ;;  %v2011_v14 = vmul.f32 1.442695, %v1916_v31 }
 0x3ff   : > { %v6268_v0 = vpop.xlane.xlu1 %2805  ;;  %v6282_v48 = vpop.xlane.xlu0 %2568  ;;  %3994 = vpow2.f32 %v1981_v46 }
 0x400   : > { %7422 = vst [vmem:[#allocation105_spill] sm:$0xff] %v6268_v0  ;;  %v6272_v19 = vpop.xlane.xlu2 %1847  ;;  %v6278_v57 = vpop.eup %3990  ;;  %3996 = vpow2.f32 %v1983_v17 }
 0x401   : > { %7423 = vst [vmem:[#allocation106_spill] sm:$0xff] %v6272_v19  ;;  %v6280_v58 = vpop.eup %3992  ;;  %3998 = vpow2.f32 %v2009_v52 }
 0x402   : > { %7424 = vst [vmem:[#allocation107_spill] sm:$0xff] %v6278_v57  ;;  %v2104_v1 = vadd.f32 %v6280_v58, %v6278_v57  ;;  %4000 = vpow2.f32 %v2011_v14 }
 0x403   : > { %7425 = vst [vmem:[#allocation108_spill] sm:$0xff] %v6280_v58 }
 0x404   : > { %2108 = vadd.xlane.f32.xlu0 %v2107_v34 }
 0x405   : > { %v6294_v34 = vpop.eup %3994 }
 0x406   : > { %7427 = vst [vmem:[#allocation110_spill] sm:$0xff] %v6294_v34  ;;  %v6296_v27 = vpop.eup %3996 }
 0x407   : > { %v6284_v21 = vpop.xlane.xlu1 %2811  ;;  %7428 = vst [vmem:[#allocation111_spill] sm:$0xff] %v6296_v27  ;;  %v2101_v22 = vadd.f32 %v6296_v27, %v6294_v34  ;;  %v6306_v62 = vpop.eup %3998 }
 0x408   : > { %v6288_v56 = vpop.xlane.xlu2 %2808  ;;  %7430 = vst [vmem:[#allocation113_spill] sm:$0xff] %v6306_v62  ;;  %v6308_v17 = vpop.eup %4000 }
 0x409   : > { %7426 = vst [vmem:[#allocation109_spill] sm:$0xff] %v6288_v56  ;;  %v2122_v52 = vadd.f32 %v6308_v17, %v6306_v62 }
 0x40a   : > { %7431 = vst [vmem:[#allocation114_spill] sm:$0xff] %v6308_v17 }
 0x40c   : > { %2105 = vadd.xlane.f32.xlu0 %v2104_v1 }
 0x40f   : > { %v6298_v46 = vpop.xlane.xlu1 %2574  ;;  %v6300_v38 = vpop.xlane.xlu0 %1853 }
 0x410   : > { %7429 = vst [vmem:[#allocation112_spill] sm:$0xff] %v6300_v38  ;;  %v6302_v44 = vpop.xlane.xlu2 %2571 }
 0x414   : > { %2102 = vadd.xlane.f32.xlu0 %v2101_v22 }
 0x417   : > { %v6310_v41 = vpop.xlane.xlu0 %2814  ;;  %v6312_v31 = vpop.xlane.xlu1 %1856 }
 0x418   : > { %v6314_v1 = vpop.xlane.xlu2 %1850 }
 0x419   : > { %7432 = vst [vmem:[#allocation115_spill] sm:$0xff] %v6314_v1 }
 0x41c   : > { %2123 = vadd.xlane.f32.xlu0 %v2122_v52 }
 0x41f   : > { %v2578_v58 = vpop.xlane.xlu0 %2577  ;;  %v6318_v14 = vpop.xlane.xlu1 %2820 }
 0x420   : > { %v6320_v57 = vpop.xlane.xlu2 %2817  ;;  %v2650_v22 = vsub.f32 %v5977_v32, %v2578_v58  ;;  %v2651_v27 = vsub.f32 %v5974_v18, %v2578_v58 }
 0x422   : > { %v2758_v34 = vmul.f32 1.442695, %v2650_v22  ;;  %v2760_v19 = vmul.f32 1.442695, %v2651_v27 }
 0x424   : > { %4002 = vpow2.f32 %v2758_v34 }
 0x425   : > { %4004 = vpow2.f32 %v2760_v19 }
 0x427   : > { %v2584_v9 = vpop.xlane.xlu1 %2583  ;;  %v6324_v0 = vpop.xlane.xlu0 %1859 }
 0x428   : > { %v2581_v1 = vpop.xlane.xlu2 %2580  ;;  %v2654_v18 = vsub.f32 %v6036_v50, %v2584_v9  ;;  %v2655_v27 = vsub.f32 %v6028_v39, %v2584_v9 }
 0x429   : > { %v2652_v17 = vsub.f32 %v6002_v61, %v2581_v1  ;;  %v2653_v52 = vsub.f32 %v6000_v3, %v2581_v1 }
 0x42a   : > { %v6328_v62 = vpop.eup %4002  ;;  %v2766_v58 = vmul.f32 1.442695, %v2654_v18  ;;  %v2768_v34 = vmul.f32 1.442695, %v2655_v27 }
 0x42b   : > { %7433 = vst [vmem:[#allocation116_spill] sm:$0xff] %v6328_v62  ;;  %v6330_v56 = vpop.eup %4004  ;;  %v2762_v38 = vmul.f32 1.442695, %v2652_v17  ;;  %v2764_v32 = vmul.f32 1.442695, %v2653_v52 }
 0x42c   : > { %7434 = vst [vmem:[#allocation117_spill] sm:$0xff] %v6330_v56  ;;  %v2864_v19 = vadd.f32 %v6330_v56, %v6328_v62 }
 0x42d   : > { %4006 = vpow2.f32 %v2762_v38 }
 0x42e   : > { %4008 = vpow2.f32 %v2764_v32  ;;  %2865 = vadd.xlane.f32.xlu1 %v2864_v19 }
 0x42f   : > { %v6336_v61 = vpop.xlane.xlu0 %2823  ;;  %v6338_v3 = vpop.xlane.xlu1 %1865  ;;  %4010 = vpow2.f32 %v2766_v58 }
 0x430   : > { %v6340_v1 = vpop.xlane.xlu2 %1862  ;;  %4012 = vpow2.f32 %v2768_v34 }
 0x433   : > { %v6342_v17 = vpop.eup %4006 }
 0x434   : > { %7435 = vst [vmem:[#allocation118_spill] sm:$0xff] %v6342_v17  ;;  %v6344_v50 = vpop.eup %4008 }
 0x435   : > { %7436 = vst [vmem:[#allocation119_spill] sm:$0xff] %v6344_v50  ;;  %v2867_v39 = vadd.f32 %v6344_v50, %v6342_v17  ;;  %v6354_v18 = vpop.eup %4010 }
 0x436   : > { %7437 = vst [vmem:[#allocation120_spill] sm:$0xff] %v6354_v18  ;;  %v6356_v27 = vpop.eup %4012 }
 0x437   : > { %2868 = vadd.xlane.f32.xlu1 %v2867_v39  ;;  %v2587_v9 = vpop.xlane.xlu0 %2586  ;;  %7438 = vst [vmem:[#allocation121_spill] sm:$0xff] %v6356_v27  ;;  %v2870_v34 = vadd.f32 %v6356_v27, %v6354_v18 }
 0x438   : > { %v2656_v38 = vsub.f32 %v6058_v42, %v2587_v9  ;;  %v2657_v22 = vsub.f32 %v6054_v45, %v2587_v9  ;;  %v6350_v52 = vpop.xlane.xlu2 %2826 }
 0x439   : > { %v6352_v32 = vpop.xlane.xlu1 %2829 }
 0x43a   : > { %v2770_v19 = vmul.f32 1.442695, %v2656_v38  ;;  %v2772_v58 = vmul.f32 1.442695, %v2657_v22 }
 0x43c   : > { %4014 = vpow2.f32 %v2770_v19 }
 0x43d   : > { %4016 = vpow2.f32 %v2772_v58 }
 0x43f   : > { %2871 = vadd.xlane.f32.xlu1 %v2870_v34  ;;  %v1869_v39 = vpop.xlane.xlu0 %1868 }
 0x440   : > { %v2590_v42 = vpop.xlane.xlu2 %2589  ;;  %v1937_v45 = vsub.f32 %v6092_v20, %v1869_v39  ;;  %v1938_v9 = vsub.f32 %v6076_v33, %v1869_v39 }
 0x441   : > { %v2593_v56 = vpop.xlane.xlu1 %2592  ;;  %v2658_v62 = vsub.f32 %v6086_v2, %v2590_v42  ;;  %v2659_v50 = vsub.f32 %v6078_v8, %v2590_v42 }
 0x442   : > { %v6364_v17 = vpop.eup %4014  ;;  %v2053_v38 = vmul.f32 1.442695, %v1937_v45  ;;  %v2055_v27 = vmul.f32 1.442695, %v1938_v9  ;;  %v2660_v34 = vsub.f32 %v6109_v63, %v2593_v56  ;;  %v2661_v33 = vsub.f32 %v6104_v40, %v2593_v56 }
 0x443   : > { %7439 = vst [vmem:[#allocation122_spill] sm:$0xff] %v6364_v17  ;;  %v6366_v22 = vpop.eup %4016  ;;  %v2774_v19 = vmul.f32 1.442695, %v2658_v62  ;;  %v2776_v58 = vmul.f32 1.442695, %v2659_v50 }
 0x444   : > { %7440 = vst [vmem:[#allocation123_spill] sm:$0xff] %v6366_v22  ;;  %4018 = vpow2.f32 %v2053_v38  ;;  %v2873_v20 = vadd.f32 %v6366_v22, %v6364_v17  ;;  %v2778_v2 = vmul.f32 1.442695, %v2660_v34  ;;  %v2780_v62 = vmul.f32 1.442695, %v2661_v33 }
 0x445   : > { %4020 = vpow2.f32 %v2774_v19 }
 0x446   : > { %4022 = vpow2.f32 %v2776_v58 }
 0x447   : > { %4024 = vpow2.f32 %v2055_v27  ;;  %2874 = vadd.xlane.f32.xlu1 %v2873_v20  ;;  %v6372_v8 = vpop.xlane.xlu0 %2832 }
 0x448   : > { %v1872_v39 = vpop.xlane.xlu2 %1871  ;;  %4026 = vpow2.f32 %v2778_v2  ;;  %v7445_v2 = vld [vmem:[#allocation25_spill] sm:$0xff] }
 0x449   : > { %v1875_v42 = vpop.xlane.xlu1 %1874  ;;  %v1939_v45 = vsub.f32 %v6107_v53, %v1872_v39  ;;  %v1940_v9 = vsub.f32 %v6102_v24, %v1872_v39  ;;  %4028 = vpow2.f32 %v2780_v62  ;;  %v1899_v39 = vsub.f32 %v7445_v2, %v6040_v35 }
 0x44a   : > { %v6374_v50 = vpop.eup %4018 }
 0x44b   : > { %7441 = vst [vmem:[#allocation124_spill] sm:$0xff] %v6374_v50  ;;  %v6377_v63 = vpop.eup %4020  ;;  %v2057_v27 = vmul.f32 1.442695, %v1939_v45  ;;  %v2059_v58 = vmul.f32 1.442695, %v1940_v9 }
 0x44c   : > { %7442 = vst [vmem:[#allocation125_spill] sm:$0xff] %v6377_v63  ;;  %v6380_v38 = vpop.eup %4022 }
 0x44d   : > { %7443 = vst [vmem:[#allocation126_spill] sm:$0xff] %v6380_v38  ;;  %v6382_v40 = vpop.eup %4024  ;;  %v2876_v56 = vadd.f32 %v6380_v38, %v6377_v63  ;;  %4030 = vpow2.f32 %v2057_v27 }
 0x44e   : > { %7444 = vst [vmem:[#allocation127_spill] sm:$0xff] %v6382_v40  ;;  %v2155_v19 = vadd.f32 %v6382_v40, %v6374_v50  ;;  %v6392_v33 = vpop.eup %4026  ;;  %4032 = vpow2.f32 %v2059_v58 }
 0x44f   : > { %2877 = vadd.xlane.f32.xlu0 %v2876_v56  ;;  %v2596_v53 = vpop.xlane.xlu0 %2595  ;;  %v6398_v9 = vpop.eup %4028  ;;  %v7446_v56 = vld [vmem:[#allocation21_spill] sm:$0xff] }
 0x450   : > { %2156 = vadd.xlane.f32.xlu2 %v2155_v19  ;;  %v2662_v34 = vsub.f32 %v6140_v23, %v2596_v53  ;;  %v2663_v24 = vsub.f32 %v6137_v25, %v2596_v53  ;;  %v6390_v20 = vpop.xlane.xlu2 %2835  ;;  %v1900_v19 = vsub.f32 %v7446_v56, %v6040_v35  ;;  %v1941_v25 = vsub.f32 %v6128_v29, %v1875_v42  ;;  %v7450_v35 = vld [vmem:[#allocation22_spill] sm:$0xff] }
 0x451   : > { %v6396_v18 = vpop.xlane.xlu1 %2838  ;;  %v1942_v23 = vsub.f32 %v6124_v60, %v1875_v42  ;;  %v1977_v53 = vmul.f32 1.442695, %v1899_v39  ;;  %v2879_v27 = vadd.f32 %v6398_v9, %v6392_v33  ;;  %v1893_v58 = vsub.f32 %v7450_v35, %v6014_v10  ;;  %v7452_v42 = vld [vmem:[#allocation24_spill] sm:$0xff] }
 0x452   : > { %v2782_v62 = vmul.f32 1.442695, %v2662_v34  ;;  %v2784_v45 = vmul.f32 1.442695, %v2663_v24  ;;  %v7447_v34 = vld [vmem:[#allocation35_spill] sm:$0xff]  ;;  %v7448_v24 = vld [vmem:[#allocation16_spill] sm:$0xff]  ;;  %v1897_v39 = vsub.f32 %v7452_v42, %v5988_v49 }
 0x453   : > { %v1887_v2 = vsub.f32 %v7448_v24, %v7447_v34  ;;  %v1979_v40 = vmul.f32 1.442695, %v1900_v19  ;;  %v6408_v22 = vpop.eup %4030  ;;  %v2061_v56 = vmul.f32 1.442695, %v1941_v25  ;;  %v7453_v19 = vld [vmem:[#allocation19_spill] sm:$0xff] }
 0x454   : > { %4034 = vpow2.f32 %v2782_v62  ;;  %7449 = vst [vmem:[#allocation25_spill] sm:$0xff] %v6408_v22  ;;  %v6414_v60 = vpop.eup %4032  ;;  %v2063_v62 = vmul.f32 1.442695, %v1942_v23  ;;  %v1898_v24 = vsub.f32 %v7453_v19, %v5988_v49  ;;  %v1965_v35 = vmul.f32 1.442695, %v1893_v58  ;;  %v7454_v49 = vld [vmem:[#allocation23_spill] sm:$0xff] }
 0x455   : > { %4036 = vpow2.f32 %v2784_v45  ;;  %7451 = vst [vmem:[#allocation21_spill] sm:$0xff] %v6414_v60  ;;  %v1953_v25 = vmul.f32 1.442695, %v1887_v2  ;;  %v1973_v42 = vmul.f32 1.442695, %v1897_v39  ;;  %v2158_v2 = vadd.f32 %v6414_v60, %v6408_v22 }
 0x456   : > { %4038 = vpow2.f32 %v1977_v53  ;;  %v1895_v53 = vsub.f32 %v7454_v49, %v5958_v26  ;;  %v1975_v19 = vmul.f32 1.442695, %v1898_v24 }
 0x457   : > { %v1878_v50 = vpop.xlane.xlu0 %1877  ;;  %4040 = vpow2.f32 %v1979_v40 }
 0x458   : > { %2880 = vadd.xlane.f32.xlu2 %v2879_v27  ;;  %v6412_v29 = vpop.xlane.xlu2 %2114  ;;  %v1943_v27 = vsub.f32 %v6162_v28, %v1878_v50  ;;  %4042 = vpow2.f32 %v2061_v56  ;;  %v1944_v63 = vsub.f32 %v6173_v15, %v1878_v50  ;;  %v7455_v15 = vld [vmem:[#allocation17_spill] sm:$0xff] }
 0x459   : > { %v6422_v17 = vpop.xlane.xlu1 %2117  ;;  %4044 = vpow2.f32 %v2063_v62  ;;  %v1896_v50 = vsub.f32 %v7455_v15, %v5958_v26 }
 0x45a   : > { %v6418_v45 = vpop.eup %4034  ;;  %4046 = vpow2.f32 %v1953_v25  ;;  %v2065_v40 = vmul.f32 1.442695, %v1943_v27  ;;  %v2067_v56 = vmul.f32 1.442695, %v1944_v63  ;;  %v1969_v25 = vmul.f32 1.442695, %v1895_v53 }
 0x45b   : > { %v6424_v38 = vpop.eup %4036  ;;  %4048 = vpow2.f32 %v1965_v35 }
 0x45c   : > { %v2882_v23 = vadd.f32 %v6424_v38, %v6418_v45  ;;  %v6434_v58 = vpop.eup %4038  ;;  %4050 = vpow2.f32 %v1973_v42 }
 0x45d   : > { %v6438_v62 = vpop.eup %4040  ;;  %4052 = vpow2.f32 %v1975_v19 }
 0x45e   : > { %2883 = vadd.xlane.f32.xlu0 %v2882_v23  ;;  %7456 = vst [vmem:[#allocation35_spill] sm:$0xff] %v6438_v62  ;;  %v6442_v49 = vpop.eup %4042  ;;  %4054 = vpow2.f32 %v2065_v40 }
 0x45f   : > { %v2842_v28 = vpop.xlane.xlu0 %2841  ;;  %v6444_v60 = vpop.eup %4044  ;;  %4056 = vpow2.f32 %v2067_v56 }
 0x460   : > { %2159 = vadd.xlane.f32.xlu2 %v2158_v2  ;;  %v2599_v39 = vpop.xlane.xlu2 %2598  ;;  %7457 = vst [vmem:[#allocation16_spill] sm:$0xff] %v6444_v60  ;;  %v1971_v2 = vmul.f32 1.442695, %v1896_v50  ;;  %v2161_v19 = vadd.f32 %v6444_v60, %v6442_v49 }
 0x461   : > { %v2664_v24 = vsub.f32 %v6168_v37, %v2599_v39  ;;  %v2665_v23 = vsub.f32 %v6158_v47, %v2599_v39  ;;  %v2602_v27 = vpop.xlane.xlu1 %2601  ;;  %v2098_v37 = vadd.f32 %v6438_v62, %v6434_v58  ;;  %v6450_v47 = vpop.eup %4046 }
 0x462   : > { %v2666_v63 = vsub.f32 %v6199_v54, %v2602_v27  ;;  %v2667_v42 = vsub.f32 %v6196_v51, %v2602_v27  ;;  %v6452_v53 = vpop.eup %4048  ;;  %v7459_v51 = vld [vmem:[#allocation15_spill] sm:$0xff] }
 0x463   : > { %v2786_v35 = vmul.f32 1.442695, %v2664_v24  ;;  %v2788_v26 = vmul.f32 1.442695, %v2665_v23  ;;  %v6456_v40 = vpop.eup %4050  ;;  %v1894_v56 = vsub.f32 %v7459_v51, %v6014_v10 }
 0x464   : > { %v2790_v54 = vmul.f32 1.442695, %v2666_v63  ;;  %v6458_v50 = vpop.eup %4052  ;;  %v2792_v39 = vmul.f32 1.442695, %v2667_v42 }
 0x465   : > { %4058 = vpow2.f32 %v2786_v35  ;;  %7458 = vst [vmem:[#allocation22_spill] sm:$0xff] %v6458_v50  ;;  %v6462_v23 = vpop.eup %4054  ;;  %v1967_v42 = vmul.f32 1.442695, %v1894_v56  ;;  %v7463_v56 = vld [vmem:[#allocation76_spill] sm:$0xff] }
 0x466   : > { %4060 = vpow2.f32 %v2788_v26  ;;  %2099 = vadd.xlane.f32.xlu0 %v2098_v37  ;;  %v6464_v27 = vpop.eup %4056 }
 0x467   : > { %4062 = vpow2.f32 %v1969_v25  ;;  %v2845_v15 = vpop.xlane.xlu0 %2844  ;;  %7460 = vst [vmem:[#allocation24_spill] sm:$0xff] %v6464_v27 }
 0x468   : > { %4064 = vpow2.f32 %v1971_v2  ;;  %2162 = vadd.xlane.f32.xlu2 %v2161_v19  ;;  %v1881_v24 = vpop.xlane.xlu2 %1880  ;;  %v2095_v19 = vadd.f32 %v6458_v50, %v6456_v40  ;;  %v7465_v50 = vld [vmem:[#allocation20_spill] sm:$0xff] }
 0x469   : > { %4066 = vrcp.f32 %v2845_v15  ;;  %v2605_v35 = vpop.xlane.xlu1 %2604  ;;  %v1945_v25 = vsub.f32 %v6218_v6, %v1881_v24  ;;  %v1946_v37 = vsub.f32 %v6222_v55, %v1881_v24  ;;  %v7461_v15 = vld [vmem:[#allocation79_spill] sm:$0xff]  ;;  %v2164_v55 = vadd.f32 %v6464_v27, %v6462_v23 }
 0x46a   : > { %4068 = vrcp.f32 %v2842_v28  ;;  %v2668_v63 = vsub.f32 %v6232_v43, %v2605_v35  ;;  %v2669_v10 = vsub.f32 %v6224_v7, %v2605_v35  ;;  %v7464_v35 = vld [vmem:[#allocation45_spill] sm:$0xff] }
 0x46b   : > { %v6466_v26 = vpop.eup %4058  ;;  %4070 = vpow2.f32 %v2790_v54  ;;  %v1935_v54 = vsub.f32 %v7461_v15, %v6338_v3  ;;  %v1891_v15 = vsub.f32 %v7465_v50, %v7464_v35  ;;  %v2069_v62 = vmul.f32 1.442695, %v1945_v25  ;;  %v7467_v50 = vld [vmem:[#allocation57_spill] sm:$0xff] }
 0x46c   : > { %v6471_v2 = vpop.eup %4060  ;;  %4072 = vpow2.f32 %v2792_v39  ;;  %v2794_v51 = vmul.f32 1.442695, %v2668_v63  ;;  %v2796_v6 = vmul.f32 1.442695, %v2669_v10  ;;  %v1936_v39 = vsub.f32 %v7463_v56, %v6338_v3  ;;  %v7466_v63 = vld [vmem:[#allocation13_spill] sm:$0xff] }
 0x46d   : > { %v6476_v28 = vpop.eup %4062  ;;  %v2885_v43 = vadd.f32 %v6471_v2, %v6466_v26  ;;  %4074 = vrcp.f32 %v6396_v18  ;;  %v1892_v10 = vsub.f32 %v7466_v63, %v7464_v35  ;;  %v2071_v22 = vmul.f32 1.442695, %v1946_v37  ;;  %v7471_v63 = vld [vmem:[#allocation18_spill] sm:$0xff] }
 0x46e   : > { %v6482_v7 = vpop.eup %4064  ;;  %2096 = vadd.xlane.f32.xlu0 %v2095_v19  ;;  %4076 = vpow2.f32 %v2794_v51  ;;  %v2049_v56 = vmul.f32 1.442695, %v1935_v54  ;;  %v2648_v35 = vsub.f32 %v7467_v50, %v6298_v46  ;;  %v2051_v25 = vmul.f32 1.442695, %v1936_v39 }
 0x46f   : > { %7462 = vst [vmem:[#allocation19_spill] sm:$0xff] %v6482_v7  ;;  %v4067_v24 = vpop.eup %4066  ;;  %2886 = vadd.xlane.f32.xlu1 %v2885_v43  ;;  %4078 = vpow2.f32 %v2796_v6  ;;  %v1961_v37 = vmul.f32 1.442695, %v1891_v15  ;;  %v1963_v6 = vmul.f32 1.442695, %v1892_v10 }
 0x470   : > { %v4069_v60 = vpop.eup %4068  ;;  %2165 = vadd.xlane.f32.xlu2 %v2164_v55  ;;  %v2956_v3 = vmul.f32 %v4067_v24, %v6210_v12  ;;  %v2957_v18 = vmul.f32 %v4067_v24, %v6212_v5  ;;  %4080 = vpow2.f32 %v1967_v42  ;;  %v7468_v5 = vld [vmem:[#allocation55_spill] sm:$0xff]  ;;  %v2092_v42 = vadd.f32 %v6482_v7, %v6476_v28 }
 0x471   : > { %v6495_v19 = vpop.eup %4070  ;;  %4082 = vrcp.f32 %v6390_v20  ;;  %v1884_v51 = vpop.xlane.xlu1 %1883  ;;  %v2649_v43 = vsub.f32 %v7468_v5, %v6298_v46  ;;  %v2954_v54 = vmul.f32 %v4069_v60, %v6186_v4  ;;  %v2955_v39 = vmul.f32 %v4069_v60, %v6188_v13  ;;  %v7470_v4 = vld [vmem:[#allocation40_spill] sm:$0xff] }
 0x472   : > { %v6497_v27 = vpop.eup %4072  ;;  %2990 = vmatpush.xpose.msra.mxu3 %v2956_v3  ;;  %3010 = vmatpush.xpose.msrb.mxu1 %v2957_v18  ;;  %4084 = vpow2.f32 %v2069_v62  ;;  %v1947_v20 = vsub.f32 %v6252_v16, %v1884_v51  ;;  %v2754_v15 = vmul.f32 1.442695, %v2648_v35  ;;  %v1948_v46 = vsub.f32 %v6258_v11, %v1884_v51  ;;  %v7472_v16 = vld [vmem:[#allocation12_spill] sm:$0xff]  ;;  %v6533_v5 = vpop.xlane.xlu0 %2111 }
 0x473   : > { %v4075_v12 = vpop.eup %4074  ;;  %4086 = vpow2.f32 %v2071_v22  ;;  %v2888_v62 = vadd.f32 %v6497_v27, %v6495_v19  ;;  %v1889_v10 = vsub.f32 %v7471_v63, %v7470_v4  ;;  %v1890_v3 = vsub.f32 %v7472_v16, %v7470_v4 }
 0x474   : > { %v6507_v55 = vpop.eup %4076  ;;  %4088 = vpow2.f32 %v2049_v56  ;;  %v2756_v11 = vmul.f32 1.442695, %v2649_v43  ;;  %v2952_v18 = vmul.f32 %v4075_v12, %v6150_v59  ;;  %v2073_v50 = vmul.f32 1.442695, %v1947_v20 }
 0x475   : > { %v6513_v24 = vpop.eup %4078  ;;  %4090 = vpow2.f32 %v2051_v25  ;;  %v2953_v35 = vmul.f32 %v4075_v12, %v6154_v36  ;;  %v1957_v59 = vmul.f32 1.442695, %v1889_v10  ;;  %v1959_v43 = vmul.f32 1.442695, %v1890_v3  ;;  %v7477_v36 = vld [vmem:[#allocation49_spill] sm:$0xff]  ;;  %v7482_v3 = vld [vmem:[#allocation11_spill] sm:$0xff] }
 0x476   : > { %2093 = vadd.xlane.f32.xlu0 %v2092_v42  ;;  %2991 = vmatpush.xpose.msra.mxu3 %v2954_v54  ;;  %v6516_v22 = vpop.eup %4080  ;;  %4092 = vrcp.f32 %v6372_v8  ;;  %v2891_v13 = vadd.f32 %v6513_v24, %v6507_v55  ;;  %v7474_v8 = vld [vmem:[#allocation50_spill] sm:$0xff]  ;;  %v2075_v42 = vmul.f32 1.442695, %v1948_v46  ;;  %v2647_v12 = vsub.f32 %v7477_v36, %v6302_v44 }
 0x477   : > { %7469 = vst [vmem:[#allocation23_spill] sm:$0xff] %v6516_v22  ;;  %3011 = vmatpush.xpose.msrb.mxu1 %v2955_v39  ;;  %2889 = vadd.xlane.f32.xlu1 %v2888_v62  ;;  %v4083_v60 = vpop.eup %4082  ;;  %4094 = vpow2.f32 %v1961_v37  ;;  %v2646_v51 = vsub.f32 %v7474_v8, %v6302_v44  ;;  %v2089_v54 = vadd.f32 %v6516_v22, %v6452_v53  ;;  %v7478_v62 = vld [vmem:[#allocation75_spill] sm:$0xff]  ;;  %v7479_v46 = vld [vmem:[#allocation86_spill] sm:$0xff]  ;;  %v7480_v44 = vld [vmem:[#allocation73_spill] sm:$0xff] }
 0x478   : > { %v6526_v56 = vpop.eup %4084  ;;  %4096 = vpow2.f32 %v1963_v6  ;;  %2892 = vadd.xlane.f32.xlu2 %v2891_v13  ;;  %v2950_v20 = vmul.f32 %v4083_v60, %v6142_v30  ;;  %v2951_v4 = vmul.f32 %v4083_v60, %v7479_v46  ;;  %v1934_v16 = vsub.f32 %v7480_v44, %v6340_v1  ;;  %v7487_v46 = vld [vmem:[#allocation82_spill] sm:$0xff] }
 0x479   : > { %v6529_v25 = vpop.eup %4086  ;;  %4098 = vpow2.f32 %v2754_v15  ;;  %v1933_v15 = vsub.f32 %v7478_v62, %v6340_v1  ;;  %v2750_v10 = vmul.f32 1.442695, %v2646_v51  ;;  %v1888_v13 = vsub.f32 %v7482_v3, %v7447_v34  ;;  %v7483_v1 = vld [vmem:[#allocation84_spill] sm:$0xff]  ;;  %v7484_v51 = vld [vmem:[#allocation85_spill] sm:$0xff] }
 0x47a   : > { %7473 = vst [vmem:[#allocation17_spill] sm:$0xff] %v6529_v25  ;;  %2992 = vmatpush.xpose.msra.mxu3 %v2952_v18  ;;  %v6535_v37 = vpop.eup %4088  ;;  %4100 = vrcp.f32 %v6352_v32  ;;  %v2167_v32 = vadd.f32 %v6529_v25, %v6526_v56  ;;  %v2752_v18 = vmul.f32 1.442695, %v2647_v12 }
 0x47b   : > { %7475 = vst [vmem:[#allocation15_spill] sm:$0xff] %v6535_v37  ;;  %3012 = vmatpush.xpose.msrb.mxu1 %v2953_v35  ;;  %v6538_v6 = vpop.eup %4090  ;;  %4102 = vpow2.f32 %v2756_v11  ;;  %v2045_v8 = vmul.f32 1.442695, %v1933_v15 }
 0x47c   : > { %7476 = vst [vmem:[#allocation79_spill] sm:$0xff] %v6538_v6  ;;  %v4093_v39 = vpop.eup %4092  ;;  %4104 = vpow2.f32 %v2073_v50  ;;  %v2152_v60 = vadd.f32 %v6538_v6, %v6535_v37 }
 0x47d   : > { %v6550_v63 = vpop.eup %4094  ;;  %4106 = vpow2.f32 %v2075_v42  ;;  %v2948_v50 = vmul.f32 %v4093_v39, %v7483_v1  ;;  %v2949_v42 = vmul.f32 %v4093_v39, %v7484_v51  ;;  %v6576_v39 = vpop.xlane.xlu0 %2108  ;;  %v7493_v51 = vld [vmem:[#allocation36_spill] sm:$0xff] }
 0x47e   : > { %2090 = vadd.xlane.f32.xlu0 %v2089_v54  ;;  %2993 = vmatpush.xpose.msra.mxu3 %v2950_v20  ;;  %v6554_v30 = vpop.eup %4096  ;;  %4108 = vrcp.f32 %v6350_v52  ;;  %v7485_v52 = vld [vmem:[#allocation41_spill] sm:$0xff]  ;;  %v2047_v54 = vmul.f32 1.442695, %v1934_v16 }
 0x47f   : > { %7481 = vst [vmem:[#allocation76_spill] sm:$0xff] %v6554_v30  ;;  %3013 = vmatpush.xpose.msrb.mxu1 %v2951_v4  ;;  %2168 = vadd.xlane.f32.xlu1 %v2167_v32  ;;  %v6561_v11 = vpop.eup %4098  ;;  %4110 = vpow2.f32 %v1957_v59  ;;  %v2644_v36 = vsub.f32 %v7485_v52, %v6282_v48  ;;  %v1955_v59 = vmul.f32 1.442695, %v1888_v13  ;;  %v2086_v15 = vadd.f32 %v6554_v30, %v6550_v63  ;;  %v7494_v52 = vld [vmem:[#allocation95_spill] sm:$0xff] }
 0x480   : > { %v4101_v35 = vpop.eup %4100  ;;  %4112 = vpow2.f32 %v1959_v43  ;;  %2153 = vadd.xlane.f32.xlu2 %v2152_v60  ;;  %v7486_v43 = vld [vmem:[#allocation43_spill] sm:$0xff]  ;;  %v7490_v60 = vld [vmem:[#allocation66_spill] sm:$0xff] }
 0x481   : > { %v6565_v34 = vpop.eup %4102  ;;  %4114 = vpow2.f32 %v2750_v10  ;;  %v2645_v62 = vsub.f32 %v7486_v43, %v6282_v48  ;;  %v2946_v4 = vmul.f32 %v4101_v35, %v7487_v46  ;;  %v7488_v10 = vld [vmem:[#allocation74_spill] sm:$0xff]  ;;  %v2746_v48 = vmul.f32 1.442695, %v2644_v36  ;;  %v7496_v43 = vld [vmem:[#allocation80_spill] sm:$0xff] }
 0x482   : > { %2994 = vmatpush.xpose.msra.mxu3 %v2948_v50  ;;  %v6569_v20 = vpop.eup %4104  ;;  %4116 = vrcp.f32 %v6336_v61  ;;  %v1931_v44 = vsub.f32 %v7488_v10, %v6324_v0  ;;  %v7489_v61 = vld [vmem:[#allocation83_spill] sm:$0xff]  ;;  %v2861_v3 = vadd.f32 %v6565_v34, %v6561_v11  ;;  %v7495_v36 = vld [vmem:[#allocation42_spill] sm:$0xff] }
 0x483   : > { %3014 = vmatpush.xpose.msrb.mxu1 %v2949_v42  ;;  %v6572_v12 = vpop.eup %4106  ;;  %4118 = vpow2.f32 %v2752_v18  ;;  %v2947_v16 = vmul.f32 %v4101_v35, %v7489_v61  ;;  %v1932_v18 = vsub.f32 %v7490_v60, %v6324_v0  ;;  %v1919_v0 = vsub.f32 %v7495_v36, %v7494_v52 }
 0x484   : > { %v4109_v32 = vpop.eup %4108  ;;  %4120 = vpow2.f32 %v2045_v8  ;;  %v2170_v50 = vadd.f32 %v6572_v12, %v6569_v20  ;;  %v7492_v8 = vld [vmem:[#allocation94_spill] sm:$0xff] }
 0x485   : > { %v6586_v13 = vpop.eup %4110  ;;  %4122 = vpow2.f32 %v2047_v54  ;;  %v2642_v42 = vsub.f32 %v7493_v51, %v7492_v8  ;;  %v2748_v54 = vmul.f32 1.442695, %v2645_v62  ;;  %v2043_v60 = vmul.f32 1.442695, %v1932_v18  ;;  %v7500_v62 = vld [vmem:[#allocation38_spill] sm:$0xff] }
 0x486   : > { %2087 = vadd.xlane.f32.xlu0 %v2086_v15  ;;  %2995 = vmatpush.xpose.msra.mxu3 %v2946_v4  ;;  %v6590_v1 = vpop.eup %4112  ;;  %4124 = vrcp.f32 %v6318_v14  ;;  %v2944_v15 = vmul.f32 %v4109_v32, %v7496_v43  ;;  %v2041_v4 = vmul.f32 1.442695, %v1931_v44  ;;  %v7497_v14 = vld [vmem:[#allocation81_spill] sm:$0xff]  ;;  %v2643_v36 = vsub.f32 %v7500_v62, %v7492_v8  ;;  %v7503_v43 = vld [vmem:[#allocation68_spill] sm:$0xff] }
 0x487   : > { %7491 = vst [vmem:[#allocation45_spill] sm:$0xff] %v6590_v1  ;;  %3015 = vmatpush.xpose.msrb.mxu1 %v2947_v16  ;;  %2862 = vadd.xlane.f32.xlu1 %v2861_v3  ;;  %v6595_v35 = vpop.eup %4114  ;;  %4126 = vpow2.f32 %v1955_v59  ;;  %v2945_v10 = vmul.f32 %v4109_v32, %v7497_v14  ;;  %v7498_v16 = vld [vmem:[#allocation28_spill] sm:$0xff]  ;;  %v2083_v59 = vadd.f32 %v6590_v1, %v6586_v13  ;;  %v2742_v44 = vmul.f32 1.442695, %v2642_v42  ;;  %v7504_v14 = vld [vmem:[#allocation78_spill] sm:$0xff]  ;;  %v6624_v42 = vpop.xlane.xlu0 %2105 }
 0x488   : > { %v4117_v46 = vpop.eup %4116  ;;  %2171 = vadd.xlane.f32.xlu2 %v2170_v50  ;;  %v1920_v3 = vsub.f32 %v7498_v16, %v7494_v52  ;;  %4128 = vpow2.f32 %v2746_v48  ;;  %v2017_v50 = vmul.f32 1.442695, %v1919_v0  ;;  %v7502_v52 = vld [vmem:[#allocation77_spill] sm:$0xff]  ;;  %v7505_v16 = vld [vmem:[#allocation62_spill] sm:$0xff] }
 0x489   : > { %v6603_v61 = vpop.eup %4118  ;;  %4130 = vrcp.f32 %v6320_v57  ;;  %v2942_v48 = vmul.f32 %v4117_v46, %v7502_v52  ;;  %v2943_v8 = vmul.f32 %v4117_v46, %v7504_v14  ;;  %v1930_v62 = vsub.f32 %v7505_v16, %v6312_v31  ;;  %v7510_v14 = vld [vmem:[#allocation32_spill] sm:$0xff] }
 0x48a   : > { %2996 = vmatpush.xpose.msra.mxu3 %v2944_v15  ;;  %v6607_v51 = vpop.eup %4120  ;;  %4132 = vpow2.f32 %v2748_v54  ;;  %v1929_v15 = vsub.f32 %v7503_v43, %v6312_v31  ;;  %v2858_v57 = vadd.f32 %v6603_v61, %v6595_v35 }
 0x48b   : > { %7499 = vst [vmem:[#allocation20_spill] sm:$0xff] %v6607_v51  ;;  %3016 = vmatpush.xpose.msrb.mxu1 %v2945_v10  ;;  %v6614_v32 = vpop.eup %4122  ;;  %4134 = vpow2.f32 %v2041_v4  ;;  %v2019_v10 = vmul.f32 1.442695, %v1920_v3  ;;  %v2744_v4 = vmul.f32 1.442695, %v2643_v36  ;;  %v7507_v3 = vld [vmem:[#allocation70_spill] sm:$0xff] }
 0x48c   : > { %7501 = vst [vmem:[#allocation13_spill] sm:$0xff] %v6614_v32  ;;  %v4125_v18 = vpop.eup %4124  ;;  %4136 = vpow2.f32 %v2043_v60  ;;  %v2149_v54 = vadd.f32 %v6614_v32, %v6607_v51  ;;  %v2037_v52 = vmul.f32 1.442695, %v1929_v15  ;;  %v7514_v15 = vld [vmem:[#allocation69_spill] sm:$0xff] }
 0x48d   : > { %v6626_v0 = vpop.eup %4126  ;;  %4138 = vrcp.f32 %v6310_v41  ;;  %v2940_v31 = vmul.f32 %v4125_v18, %v7507_v3  ;;  %v7509_v41 = vld [vmem:[#allocation93_spill] sm:$0xff] }
 0x48e   : > { %2084 = vadd.xlane.f32.xlu0 %v2083_v59  ;;  %2997 = vmatpush.xpose.msra.mxu3 %v2942_v48  ;;  %7506 = vst [vmem:[#allocation57_spill] sm:$0xff] %v6626_v0  ;;  %v6631_v46 = vpop.eup %4128  ;;  %4140 = vpow2.f32 %v2742_v44  ;;  %v7508_v59 = vld [vmem:[#allocation71_spill] sm:$0xff]  ;;  %v7513_v44 = vld [vmem:[#allocation33_spill] sm:$0xff] }
 0x48f   : > { %3017 = vmatpush.xpose.msrb.mxu1 %v2943_v8  ;;  %2859 = vadd.xlane.f32.xlu1 %v2858_v57  ;;  %v4131_v60 = vpop.eup %4130  ;;  %4142 = vpow2.f32 %v2017_v50  ;;  %v2941_v48 = vmul.f32 %v4125_v18, %v7508_v59  ;;  %v2640_v8 = vsub.f32 %v7510_v14, %v7509_v41  ;;  %v2039_v57 = vmul.f32 1.442695, %v1930_v62  ;;  %v7516_v62 = vld [vmem:[#allocation63_spill] sm:$0xff]  ;;  %v7517_v59 = vld [vmem:[#allocation72_spill] sm:$0xff]  ;;  %v7528_v32 = vld [vmem:[#allocation105_spill] sm:$0xff] }
 0x490   : > { %2150 = vadd.xlane.f32.xlu2 %v2149_v54  ;;  %v6635_v43 = vpop.eup %4132  ;;  %4144 = vpow2.f32 %v2019_v10  ;;  %v2641_v50 = vsub.f32 %v7513_v44, %v7509_v41  ;;  %v2080_v18 = vadd.f32 %v6626_v0, %v6450_v47  ;;  %v2938_v54 = vmul.f32 %v4131_v60, %v7514_v15  ;;  %v7515_v10 = vld [vmem:[#allocation112_spill] sm:$0xff]  ;;  %v7520_v15 = vld [vmem:[#allocation109_spill] sm:$0xff] }
 0x491   : > { %v6639_v16 = vpop.eup %4134  ;;  %4146 = vrcp.f32 %v6284_v21  ;;  %v2939_v14 = vmul.f32 %v4131_v60, %v7517_v59  ;;  %v2855_v21 = vadd.f32 %v6635_v43, %v6631_v46  ;;  %v2738_v1 = vmul.f32 1.442695, %v2640_v8  ;;  %v6665_v59 = vpop.xlane.xlu0 %2102  ;;  %v7522_v8 = vld [vmem:[#allocation65_spill] sm:$0xff] }
 0x492   : > { %2998 = vmatpush.xpose.msra.mxu3 %v2940_v31  ;;  %7511 = vst [vmem:[#allocation55_spill] sm:$0xff] %v6639_v16  ;;  %v6642_v36 = vpop.eup %4136  ;;  %4148 = vpow2.f32 %v2744_v4  ;;  %v1927_v31 = vsub.f32 %v7516_v62, %v7515_v10  ;;  %v7518_v4 = vld [vmem:[#allocation54_spill] sm:$0xff]  ;;  %v2740_v62 = vmul.f32 1.442695, %v2641_v50  ;;  %v7527_v50 = vld [vmem:[#allocation29_spill] sm:$0xff] }
 0x493   : > { %3018 = vmatpush.xpose.msrb.mxu1 %v2941_v48  ;;  %7512 = vst [vmem:[#allocation40_spill] sm:$0xff] %v6642_v36  ;;  %v4139_v3 = vpop.eup %4138  ;;  %4150 = vpow2.f32 %v2037_v52  ;;  %v1928_v41 = vsub.f32 %v7518_v4, %v7515_v10  ;;  %v2146_v60 = vadd.f32 %v6642_v36, %v6639_v16 }
 0x494   : > { %v6654_v48 = vpop.eup %4140  ;;  %4152 = vpow2.f32 %v2039_v57  ;;  %v2936_v0 = vmul.f32 %v4139_v3, %v7522_v8  ;;  %v2033_v57 = vmul.f32 1.442695, %v1927_v31 }
 0x495   : > { %v6658_v44 = vpop.eup %4142  ;;  %4154 = vrcp.f32 %v7520_v15  ;;  %v7524_v15 = vld [vmem:[#allocation101_spill] sm:$0xff]  ;;  %v2035_v30 = vmul.f32 1.442695, %v1928_v41 }
 0x496   : > { %2081 = vadd.xlane.f32.xlu0 %v2080_v18  ;;  %2999 = vmatpush.xpose.msra.mxu3 %v2938_v54  ;;  %7519 = vst [vmem:[#allocation18_spill] sm:$0xff] %v6658_v44  ;;  %v6663_v52 = vpop.eup %4144  ;;  %v7523_v18 = vld [vmem:[#allocation67_spill] sm:$0xff]  ;;  %4156 = vpow2.f32 %v2738_v1  ;;  %v2639_v22 = vsub.f32 %v7527_v50, %v7524_v15  ;;  %v7532_v1 = vld [vmem:[#allocation58_spill] sm:$0xff] }
 0x497   : > { %3019 = vmatpush.xpose.msrb.mxu1 %v2939_v14  ;;  %2856 = vadd.xlane.f32.xlu1 %v2855_v21  ;;  %7521 = vst [vmem:[#allocation12_spill] sm:$0xff] %v6663_v52  ;;  %v4147_v10 = vpop.eup %4146  ;;  %v2937_v54 = vmul.f32 %v4139_v3, %v7523_v18  ;;  %v7525_v14 = vld [vmem:[#allocation27_spill] sm:$0xff]  ;;  %4158 = vrcp.f32 %v7528_v32  ;;  %v2128_v18 = vadd.f32 %v6663_v52, %v6658_v44 }
 0x498   : > { %2147 = vadd.xlane.f32.xlu2 %v2146_v60  ;;  %v6669_v4 = vpop.eup %4148  ;;  %v2638_v21 = vsub.f32 %v7525_v14, %v7524_v15  ;;  %4160 = vpow2.f32 %v2740_v62  ;;  %v7530_v3 = vld [vmem:[#allocation115_spill] sm:$0xff]  ;;  %v7531_v60 = vld [vmem:[#allocation61_spill] sm:$0xff]  ;;  %v2934_v41 = vmul.f32 %v4147_v10, %v7532_v1  ;;  %v2736_v50 = vmul.f32 1.442695, %v2639_v22 }
 0x499   : > { %v6673_v36 = vpop.eup %4150  ;;  %v1925_v8 = vsub.f32 %v7531_v60, %v7530_v3  ;;  %4162 = vpow2.f32 %v2033_v57  ;;  %v7533_v14 = vld [vmem:[#allocation59_spill] sm:$0xff]  ;;  %v2852_v15 = vadd.f32 %v6669_v4, %v6654_v48  ;;  %v7535_v60 = vld [vmem:[#allocation102_spill] sm:$0xff] }
 0x49a   : > { %3000 = vmatpush.xpose.msra.mxu3 %v2936_v0  ;;  %7526 = vst [vmem:[#allocation50_spill] sm:$0xff] %v6673_v36  ;;  %v6678_v31 = vpop.eup %4152  ;;  %v2935_v7 = vmul.f32 %v4147_v10, %v7533_v14  ;;  %v2734_v32 = vmul.f32 1.442695, %v2638_v21  ;;  %4164 = vpow2.f32 %v2035_v30  ;;  %v7536_v14 = vld [vmem:[#allocation56_spill] sm:$0xff]  ;;  %v7537_v30 = vld [vmem:[#allocation90_spill] sm:$0xff]  ;;  %v7539_v22 = vld [vmem:[#allocation99_spill] sm:$0xff] }
 0x49b   : > { %3020 = vmatpush.xpose.msrb.mxu1 %v2937_v54  ;;  %7529 = vst [vmem:[#allocation49_spill] sm:$0xff] %v6678_v31  ;;  %v4155_v0 = vpop.eup %4154  ;;  %v7534_v54 = vld [vmem:[#allocation47_spill] sm:$0xff]  ;;  %4166 = vrcp.f32 %v7535_v60  ;;  %v2143_v57 = vadd.f32 %v6678_v31, %v6673_v36  ;;  %v2029_v10 = vmul.f32 1.442695, %v1925_v8  ;;  %v2124_v60 = vpop.xlane.xlu0 %2123  ;;  %v7542_v8 = vld [vmem:[#allocation34_spill] sm:$0xff] }
 0x49c   : > { %v1926_v62 = vsub.f32 %v7534_v54, %v7530_v3  ;;  %v6693_v1 = vpop.eup %4156  ;;  %v2932_v52 = vmul.f32 %v4155_v0, %v7536_v14  ;;  %4168 = vrcp.f32 %v7537_v30  ;;  %v7538_v3 = vld [vmem:[#allocation60_spill] sm:$0xff]  ;;  %v1922_v14 = vsub.f32 %v7542_v8, %v7539_v22  ;;  %v7548_v36 = vld [vmem:[#allocation39_spill] sm:$0xff] }
 0x49d   : > { %v4159_v21 = vpop.eup %4158  ;;  %4170 = vpow2.f32 %v2734_v32  ;;  %v7546_v32 = vld [vmem:[#allocation51_spill] sm:$0xff] }
 0x49e   : > { %2129 = vadd.xlane.f32.xlu0 %v2128_v18  ;;  %3001 = vmatpush.xpose.msra.mxu3 %v2934_v41  ;;  %v2933_v18 = vmul.f32 %v4155_v0, %v7538_v3  ;;  %v6698_v41 = vpop.eup %4160  ;;  %v2031_v54 = vmul.f32 1.442695, %v1926_v62  ;;  %4172 = vpow2.f32 %v2736_v50  ;;  %v7545_v0 = vld [vmem:[#allocation53_spill] sm:$0xff]  ;;  %v2930_v31 = vmul.f32 %v4159_v21, %v7546_v32  ;;  %v7547_v62 = vld [vmem:[#allocation52_spill] sm:$0xff] }
 0x49f   : > { %3021 = vmatpush.xpose.msrb.mxu1 %v2935_v7  ;;  %2853 = vadd.xlane.f32.xlu1 %v2852_v15  ;;  %v7540_v7 = vld [vmem:[#allocation48_spill] sm:$0xff]  ;;  %v6702_v44 = vpop.eup %4162  ;;  %4174 = vpow2.f32 %v2029_v10  ;;  %v2023_v16 = vmul.f32 1.442695, %v1922_v14  ;;  %v7553_v14 = vld [vmem:[#allocation14_spill] sm:$0xff] }
 0x4a0   : > { %2144 = vadd.xlane.f32.xlu2 %v2143_v57  ;;  %v1921_v15 = vsub.f32 %v7540_v7, %v7539_v22  ;;  %7541 = vst [vmem:[#allocation75_spill] sm:$0xff] %v6702_v44  ;;  %v6706_v30 = vpop.eup %4164  ;;  %v7544_v57 = vld [vmem:[#allocation106_spill] sm:$0xff]  ;;  %4176 = vrcp.f32 %v2124_v60  ;;  %v2931_v7 = vmul.f32 %v4159_v21, %v7547_v62 }
 0x4a1   : > { %7543 = vst [vmem:[#allocation86_spill] sm:$0xff] %v6706_v30  ;;  %v1923_v3 = vsub.f32 %v7545_v0, %v7544_v57  ;;  %v4167_v6 = vpop.eup %4166  ;;  %v1924_v22 = vsub.f32 %v7548_v36, %v7544_v57  ;;  %4178 = vpow2.f32 %v2031_v54  ;;  %v2140_v10 = vadd.f32 %v6706_v30, %v6702_v44  ;;  %v7549_v0 = vld [vmem:[#allocation44_spill] sm:$0xff]  ;;  %v7550_v36 = vld [vmem:[#allocation46_spill] sm:$0xff] }
 0x4a2   : > { %3002 = vmatpush.xpose.msra.mxu3 %v2932_v52  ;;  %v2849_v52 = vadd.f32 %v6698_v41, %v6693_v1  ;;  %v2021_v50 = vmul.f32 1.442695, %v1921_v15  ;;  %v4169_v8 = vpop.eup %4168  ;;  %v2928_v32 = vmul.f32 %v4167_v6, %v7549_v0  ;;  %v2929_v15 = vmul.f32 %v4167_v6, %v7550_v36  ;;  %v7554_v30 = vld [vmem:[#allocation92_spill] sm:$0xff] }
 0x4a3   : > { %3022 = vmatpush.xpose.msrb.mxu1 %v2933_v18  ;;  %v2121_v18 = vpop.xlane.xlu2 %2120  ;;  %v6718_v60 = vpop.eup %4170  ;;  %v2025_v21 = vmul.f32 1.442695, %v1923_v3  ;;  %v7555_v3 = vld [vmem:[#allocation37_spill] sm:$0xff] }
 0x4a4   : > { %v6721_v62 = vpop.eup %4172  ;;  %4180 = vrcp.f32 %v2121_v18  ;;  %v1917_v44 = vsub.f32 %v7555_v3, %v7554_v30  ;;  %v7557_v18 = vld [vmem:[#allocation26_spill] sm:$0xff] }
 0x4a5   : > { %v6724_v54 = vpop.eup %4174  ;;  %4182 = vpow2.f32 %v2021_v50  ;;  %v1918_v6 = vsub.f32 %v7557_v18, %v7554_v30  ;;  %v7559_v50 = vld [vmem:[#allocation31_spill] sm:$0xff] }
 0x4a6   : > { %3003 = vmatpush.xpose.msra.mxu3 %v2930_v31  ;;  %7551 = vst [vmem:[#allocation73_spill] sm:$0xff] %v6724_v54  ;;  %v7552_v31 = vld [vmem:[#allocation64_spill] sm:$0xff]  ;;  %4184 = vpow2.f32 %v2023_v16 }
 0x4a7   : > { %3023 = vmatpush.xpose.msrb.mxu1 %v2931_v7  ;;  %2850 = vadd.xlane.f32.xlu1 %v2849_v52  ;;  %v1885_v57 = vsub.f32 %v7553_v14, %v7552_v31  ;;  %v2027_v7 = vmul.f32 1.442695, %v1924_v22  ;;  %v6728_v52 = vpop.eup %4176  ;;  %4186 = vpow2.f32 %v2025_v21  ;;  %v2927_v22 = vmul.f32 %v4169_v8, %v7559_v50  ;;  %v7560_v14 = vld [vmem:[#allocation10_spill] sm:$0xff]  ;;  %v7562_v21 = vld [vmem:[#allocation7_spill] sm:$0xff] }
 0x4a8   : > { %2141 = vadd.xlane.f32.xlu2 %v2140_v10  ;;  %v6732_v0 = vpop.eup %4178  ;;  %v7558_v10 = vld [vmem:[#allocation30_spill] sm:$0xff]  ;;  %4188 = vrcp.f32 %v6422_v17  ;;  %v1886_v3 = vsub.f32 %v7560_v14, %v7552_v31  ;;  %v6748_v18 = vrot.slane %v7562_v21, 4  ;;  %v2013_v17 = vmul.f32 1.442695, %v1917_v44 }
 0x4a9   : > { %7556 = vst [vmem:[#allocation11_spill] sm:$0xff] %v6732_v0  ;;  %v2926_v36 = vmul.f32 %v4169_v8, %v7558_v10  ;;  %v1949_v16 = vmul.f32 1.442695, %v1885_v57  ;;  %4190 = vpow2.f32 %v2027_v7  ;;  %v2137_v8 = vadd.f32 %v6732_v0, %v6724_v54  ;;  %v261_v31 = vld [vmem:[%s7119_s3 + $0x20] sm:$0xf]  ;;  %v7564_v7 = vld [vmem:[#allocation9_spill] sm:$0xff] }
 0x4aa   : > { %3004 = vmatpush.xpose.msra.mxu3 %v2928_v32  ;;  %v2846_v32 = vadd.f32 %v6721_v62, %v6718_v60  ;;  %v6745_v30 = vpop.eup %4180  ;;  %v6758_v10 = vrot.slane %v7564_v7, 4  ;;  %4192 = vrcp.f32 %v6412_v29 }
 0x4ab   : > { %3024 = vmatpush.xpose.msrb.mxu1 %v2929_v15  ;;  %v7561_v15 = vld [vmem:[#allocation113_spill] sm:$0xff]  ;;  %v6755_v57 = vpop.eup %4182  ;;  %4194 = vpow2.f32 %v1949_v16 }
 0x4ac   : > { %v2235_v51 = vmul.f32 %v6728_v52, %v7561_v15  ;;  %7563 = vst [vmem:[#allocation84_spill] sm:$0xff] %v6755_v57  ;;  %v6760_v50 = vpop.eup %4184  ;;  %4196 = vpow2.f32 %v2013_v17  ;;  %v7570_v16 = vld [vmem:[#allocation89_spill] sm:$0xff] }
 0x4ad   : > { %7565 = vst [vmem:[#allocation85_spill] sm:$0xff] %v6760_v50  ;;  %v264_v17 = vld [vmem:[%s7119_s3 + $0x38] sm:$0xf] }
 0x4ae   : > { %3005 = vmatpush.xpose.msra.mxu3 %v2926_v36  ;;  %v2015_v36 = vmul.f32 1.442695, %v1918_v6  ;;  %v7568_v6 = vld [vmem:[#allocation98_spill] sm:$0xff] }
 0x4af   : > { %3025 = vmatpush.xpose.msrb.mxu1 %v2927_v22  ;;  %2847 = vadd.xlane.f32.xlu1 %v2846_v32  ;;  %v6766_v22 = vpop.eup %4186  ;;  %v1951_v32 = vmul.f32 1.442695, %v1886_v3  ;;  %v2131_v3 = vadd.f32 %v6760_v50, %v6755_v57 }
 0x4b0   : > { %2138 = vadd.xlane.f32.xlu2 %v2137_v8  ;;  %7567 = vst [vmem:[#allocation41_spill] sm:$0xff] %v6766_v22  ;;  %v6773_v14 = vpop.eup %4188  ;;  %4198 = vpow2.f32 %v2015_v36  ;;  %v7573_v36 = vld [vmem:[#allocation87_spill] sm:$0xff] }
 0x4b1   : > { %3755 = vmatmul.msk.f32.vlgmr.msra.gmra.mxu3 %vm5439_vm5, %v6748_v18  ;;  %v6775_v29 = vpop.eup %4190  ;;  %4200 = vrcp.f32 %v6533_v5  ;;  %v2231_v15 = vmul.f32 %v6773_v14, %v7570_v16 }
 0x4b2   : > { %3756 = vmatmul.msk.f32.vlgmr.msrb.gmra.mxu1 %vm5439_vm5, %v6758_v10  ;;  %3273 = vperm.xlu0 %3831, %v261_v31   ;;  %7569 = vst [vmem:[#allocation43_spill] sm:$0xff] %v6775_v29  ;;  %4202 = vpow2.f32 %v1951_v32  ;;  %v6782_v21 = vpop.eup %4192  ;;  %v2134_v8 = vadd.f32 %v6775_v29, %v6766_v22 }
 0x4b3   : > { %3070 = vmatpush.xpose.msra.mxu1 %v2235_v51  ;;  %v2233_v51 = vmul.f32 %v6745_v30, %v7568_v6  ;;  %v6789_v31 = vpop.eup %4194  ;;  %4204 = vrcp.f32 %v6576_v39  ;;  %v2229_v32 = vmul.f32 %v6782_v21, %v7573_v36  ;;  %v7576_v39 = vld [vmem:[#allocation96_spill] sm:$0xff]  ;;  %v7578_v36 = vld [vmem:[#allocation103_spill] sm:$0xff] }
 0x4b4   : > { %v6791_v5 = vpop.eup %4196  ;;  %4206 = vrcp.f32 %v6624_v42 }
 0x4b5   : > { %7571 = vst [vmem:[#allocation82_spill] sm:$0xff] %v6791_v5  ;;  %4208 = vrcp.f32 %v6665_v59  ;;  %v7582_v59 = vld [vmem:[#allocation110_spill] sm:$0xff] }
 0x4b6   : > { %v6794_v7 = vpop.eup %4198 }
 0x4b7   : > { %3071 = vmatpush.xpose.msra.mxu1 %v2233_v51  ;;  %2132 = vadd.xlane.f32.xlu1 %v2131_v3  ;;  %7572 = vst [vmem:[#allocation74_spill] sm:$0xff] %v6794_v7  ;;  %v6798_v6 = vpop.eup %4200  ;;  %v6802_v3 = vpop.xlane.xlu1 %2865  ;;  %v2125_v16 = vadd.f32 %v6794_v7, %v6791_v5 }
 0x4b8   : > { %2135 = vadd.xlane.f32.xlu2 %v2134_v8  ;;  %7574 = vst [vmem:[#allocation83_spill] sm:$0xff] %v6798_v6  ;;  %v6800_v51 = vpop.eup %4202 }
 0x4b9   : > { %7575 = vst [vmem:[#allocation66_spill] sm:$0xff] %v6800_v51  ;;  %v6809_v8 = vpop.eup %4204 }
 0x4ba   : > { %3429 = vperm.xlu0 %3831, %v264_v17   ;;  %7577 = vst [vmem:[#allocation94_spill] sm:$0xff] %v6809_v8  ;;  %v2077_v17 = vadd.f32 %v6800_v51, %v6789_v31  ;;  %v6816_v42 = vpop.eup %4206 }
 0x4bb   : > { %3072 = vmatpush.xpose.msra.mxu1 %v2231_v15  ;;  %v2227_v15 = vmul.f32 %v6798_v6, %v7576_v39  ;;  %7579 = vst [vmem:[#allocation36_spill] sm:$0xff] %v6816_v42  ;;  %v7580_v39 = vld [vmem:[#allocation107_spill] sm:$0xff]  ;;  %v6824_v29 = vpop.eup %4208 }
 0x4bc   : > { %7581 = vst [vmem:[#allocation95_spill] sm:$0xff] %v6824_v29 }
 0x4bf   : > { %3073 = vmatpush.xpose.msra.mxu1 %v2229_v32  ;;  %2126 = vadd.xlane.f32.xlu1 %v2125_v16  ;;  %v2225_v32 = vmul.f32 %v6809_v8, %v7578_v36  ;;  %v6820_v7 = vpop.xlane.xlu1 %2868  ;;  %v2223_v16 = vmul.f32 %v6816_v42, %v7580_v39 }
 0x4c0   : > { %2078 = vadd.xlane.f32.xlu2 %v2077_v17  ;;  %v2221_v17 = vmul.f32 %v6824_v29, %v7582_v59  ;;  %v263_v59 = vld [vmem:[%s7119_s3 + $0x30] sm:$0xf] }
 0x4c3   : > { %3074 = vmatpush.xpose.msra.mxu1 %v2227_v15  ;;  %v6818_v50 = vpop.xlane.xlu2 %2156  ;;  %v6826_v15 = vpop.xlane.xlu0 %2877 }
 0x4c7   : > { %3075 = vmatpush.xpose.msra.mxu1 %v2225_v32  ;;  %v6830_v36 = vpop.xlane.xlu1 %2871  ;;  %v260_v32 = vld [vmem:[%s7119_s3 + $0x18] sm:$0xf] }
 0x4cb   : > { %3076 = vmatpush.xpose.msra.mxu1 %v2223_v16  ;;  %v2881_v5 = vpop.xlane.xlu2 %2880 }
 0x4cf   : > { %3077 = vmatpush.xpose.msra.mxu1 %v2221_v17  ;;  %v6837_v57 = vpop.xlane.xlu1 %2874 }
 0x4d1   : > { %v2884_v51 = vpop.xlane.xlu0 %2883 }
 0x4d3   : > { %v6832_v0 = vpop.xlane.xlu2 %2159 }
 0x4d8   : > { %3152 = vperm.xlu2 %3830, %v260_v32  }
 0x4d9   : > { %v2100_v39 = vpop.xlane.xlu0 %2099 }
 0x4da   : > { %4210 = vrcp.f32 %v2100_v39 }
 0x4db   : > { %v6839_v16 = vpop.xlane.xlu2 %2162 }
 0x4e0   : > { %v6844_v17 = vpop.eup %4210  ;;  %3287 = vperm.xlu2 %3830, %v263_v59  }
 0x4e1   : > { %7583 = vst [vmem:[#allocation42_spill] sm:$0xff] %v6844_v17  ;;  %v2097_v22 = vpop.xlane.xlu0 %2096  ;;  %v2219_v54 = vmul.f32 %v6844_v17, %v6434_v58 }
 0x4e2   : > { %4212 = vrcp.f32 %v2097_v22  ;;  %v2887_v29 = vpop.xlane.xlu1 %2886 }
 0x4e3   : > { %v6848_v32 = vpop.xlane.xlu2 %2165  ;;  %3078 = vmatpush.xpose.msra.mxu1 %v2219_v54 }
 0x4e8   : > { %v6850_v37 = vpop.eup %4212 }
 0x4e9   : > { %v2094_v39 = vpop.xlane.xlu0 %2093  ;;  %v2217_v42 = vmul.f32 %v6850_v37, %v6456_v40 }
 0x4ea   : > { %4214 = vrcp.f32 %v2094_v39  ;;  %v2890_v8 = vpop.xlane.xlu1 %2889 }
 0x4eb   : > { %3079 = vmatpush.xpose.msra.mxu1 %v2217_v42  ;;  %v2893_v25 = vpop.xlane.xlu2 %2892 }
 0x4ec   : > { %4216 = vrcp.f32 %v2893_v25 }
 0x4ed   : > { %4218 = vrcp.f32 %v2890_v8 }
 0x4f0   : > { %v6854_v59 = vpop.eup %4214 }
 0x4f1   : > { %7584 = vst [vmem:[#allocation80_spill] sm:$0xff] %v6854_v59  ;;  %v2091_v58 = vpop.xlane.xlu0 %2090  ;;  %v2215_v22 = vmul.f32 %v6854_v59, %v6476_v28 }
 0x4f2   : > { %4220 = vrcp.f32 %v2091_v58  ;;  %v6858_v54 = vpop.xlane.xlu1 %2168  ;;  %v4217_v17 = vpop.eup %4216 }
 0x4f3   : > { %4222 = vrcp.f32 %v2887_v29  ;;  %3080 = vmatpush.xpose.msra.mxu1 %v2215_v22  ;;  %v6860_v6 = vpop.xlane.xlu2 %2153  ;;  %v2988_v40 = vmul.f32 %v4217_v17, %v6507_v55  ;;  %v2989_v42 = vmul.f32 %v4217_v17, %v6513_v24  ;;  %v4219_v25 = vpop.eup %4218 }
 0x4f4   : > { %4224 = vrcp.f32 %v2884_v51  ;;  %v2986_v28 = vmul.f32 %v4219_v25, %v6495_v19  ;;  %v2987_v39 = vmul.f32 %v4219_v25, %v6497_v27 }
 0x4f5   : > { %3030 = vmatpush.xpose.msrb.mxu2 %v2988_v40  ;;  %3050 = vmatpush.xpose.msrb.mxu3 %v2989_v42 }
 0x4f8   : > { %v6864_v8 = vpop.eup %4220 }
 0x4f9   : > { %v4223_v58 = vpop.eup %4222  ;;  %v2088_v59 = vpop.xlane.xlu0 %2087  ;;  %v2213_v29 = vmul.f32 %v6864_v8, %v6452_v53  ;;  %3031 = vmatpush.xpose.msrb.mxu2 %v2986_v28  ;;  %3051 = vmatpush.xpose.msrb.mxu3 %v2987_v39  ;;  %v7586_v28 = vld [vmem:[#allocation126_spill] sm:$0xff] }
 0x4fa   : > { %4226 = vrcp.f32 %v2088_v59  ;;  %v2863_v55 = vpop.xlane.xlu1 %2862  ;;  %v2984_v51 = vmul.f32 %v4223_v58, %v6466_v26  ;;  %v2985_v17 = vmul.f32 %v4223_v58, %v6471_v2  ;;  %v4225_v19 = vpop.eup %4224 }
 0x4fb   : > { %4228 = vrcp.f32 %v2881_v5  ;;  %3081 = vmatpush.xpose.msra.mxu1 %v2213_v29  ;;  %v6870_v24 = vpop.xlane.xlu2 %2171  ;;  %v2982_v53 = vmul.f32 %v4225_v19, %v6418_v45  ;;  %v2983_v59 = vmul.f32 %v4225_v19, %v6424_v38 }
 0x4fc   : > { %4230 = vrcp.f32 %v6826_v15 }
 0x4fd   : > { %3032 = vmatpush.xpose.msrb.mxu2 %v2984_v51  ;;  %3052 = vmatpush.xpose.msrb.mxu3 %v2985_v17  ;;  %v7588_v17 = vld [vmem:[#allocation123_spill] sm:$0xff] }
 0x500   : > { %v6875_v27 = vpop.eup %4226 }
 0x501   : > { %v4229_v22 = vpop.eup %4228  ;;  %v2085_v5 = vpop.xlane.xlu0 %2084  ;;  %v2211_v40 = vmul.f32 %v6875_v27, %v6550_v63  ;;  %3033 = vmatpush.xpose.msrb.mxu2 %v2982_v53  ;;  %3053 = vmatpush.xpose.msrb.mxu3 %v2983_v59  ;;  %v7585_v63 = vld [vmem:[#allocation125_spill] sm:$0xff] }
 0x502   : > { %4232 = vrcp.f32 %v2085_v5  ;;  %v2860_v26 = vpop.xlane.xlu1 %2859  ;;  %v2980_v15 = vmul.f32 %v4229_v22, %v6392_v33  ;;  %v2981_v45 = vmul.f32 %v4229_v22, %v6398_v9  ;;  %v4231_v42 = vpop.eup %4230  ;;  %v7590_v5 = vld [vmem:[#allocation121_spill] sm:$0xff] }
 0x503   : > { %4234 = vrcp.f32 %v6837_v57  ;;  %3082 = vmatpush.xpose.msra.mxu1 %v2211_v40  ;;  %v6882_v2 = vpop.xlane.xlu2 %2150  ;;  %v2978_v25 = vmul.f32 %v4231_v42, %v7585_v63  ;;  %v2979_v39 = vmul.f32 %v4231_v42, %v7586_v28  ;;  %v7591_v63 = vld [vmem:[#allocation118_spill] sm:$0xff] }
 0x504   : > { %4236 = vrcp.f32 %v6830_v36  ;;  %v7587_v36 = vld [vmem:[#allocation122_spill] sm:$0xff] }
 0x505   : > { %3034 = vmatpush.xpose.msrb.mxu2 %v2980_v15  ;;  %3054 = vmatpush.xpose.msrb.mxu3 %v2981_v45 }
 0x508   : > { %v6887_v38 = vpop.eup %4232 }
 0x509   : > { %v4235_v58 = vpop.eup %4234  ;;  %v2082_v57 = vpop.xlane.xlu0 %2081  ;;  %v2209_v29 = vmul.f32 %v6887_v38, %v6586_v13  ;;  %3035 = vmatpush.xpose.msrb.mxu2 %v2978_v25  ;;  %3055 = vmatpush.xpose.msrb.mxu3 %v2979_v39  ;;  %v7589_v13 = vld [vmem:[#allocation120_spill] sm:$0xff] }
 0x50a   : > { %4238 = vrcp.f32 %v2082_v57  ;;  %v2857_v33 = vpop.xlane.xlu1 %2856  ;;  %v2976_v51 = vmul.f32 %v4235_v58, %v7587_v36  ;;  %v2977_v19 = vmul.f32 %v4235_v58, %v7588_v17  ;;  %v4237_v53 = vpop.eup %4236  ;;  %v7593_v58 = vld [vmem:[#allocation116_spill] sm:$0xff] }
 0x50b   : > { %4240 = vrcp.f32 %v6820_v7  ;;  %3083 = vmatpush.xpose.msra.mxu1 %v2209_v29  ;;  %v6894_v9 = vpop.xlane.xlu2 %2147  ;;  %v2974_v22 = vmul.f32 %v4237_v53, %v7589_v13  ;;  %v2975_v40 = vmul.f32 %v4237_v53, %v7590_v5  ;;  %v7594_v29 = vld [vmem:[#allocation117_spill] sm:$0xff] }
 0x50c   : > { %4242 = vrcp.f32 %v6802_v3  ;;  %v7592_v3 = vld [vmem:[#allocation119_spill] sm:$0xff] }
 0x50d   : > { %3036 = vmatpush.xpose.msrb.mxu2 %v2976_v51  ;;  %3056 = vmatpush.xpose.msrb.mxu3 %v2977_v19  ;;  %4244 = vrcp.f32 %v2863_v55 }
 0x50e   : > { %4246 = vrcp.f32 %v2860_v26 }
 0x50f   : > { %4248 = vrcp.f32 %v2857_v33 }
 0x510   : > { %v6899_v59 = vpop.eup %4238 }
 0x511   : > { %v4241_v15 = vpop.eup %4240  ;;  %v2207_v7 = vmul.f32 %v6899_v59, %v6450_v47  ;;  %3037 = vmatpush.xpose.msrb.mxu2 %v2974_v22  ;;  %3057 = vmatpush.xpose.msrb.mxu3 %v2975_v40 }
 0x512   : > { %v2854_v45 = vpop.xlane.xlu1 %2853  ;;  %v2972_v25 = vmul.f32 %v4241_v15, %v7591_v63  ;;  %v2973_v28 = vmul.f32 %v4241_v15, %v7592_v3  ;;  %v4243_v39 = vpop.eup %4242 }
 0x513   : > { %3084 = vmatpush.xpose.msra.mxu1 %v2207_v7  ;;  %v6905_v42 = vpop.xlane.xlu2 %2144  ;;  %v2970_v57 = vmul.f32 %v4243_v39, %v7593_v58  ;;  %v2971_v36 = vmul.f32 %v4243_v39, %v7594_v29  ;;  %v4245_v47 = vpop.eup %4244  ;;  %4250 = vrcp.f32 %v2854_v45  ;;  %v7602_v29 = vld [vmem:[#allocation25_spill] sm:$0xff] }
 0x514   : > { %v2968_v17 = vmul.f32 %v4245_v47, %v6561_v11  ;;  %v2969_v19 = vmul.f32 %v4245_v47, %v6565_v34  ;;  %v4247_v53 = vpop.eup %4246 }
 0x515   : > { %3038 = vmatpush.xpose.msrb.mxu2 %v2972_v25  ;;  %3058 = vmatpush.xpose.msrb.mxu3 %v2973_v28  ;;  %v2966_v26 = vmul.f32 %v4247_v53, %v6595_v35  ;;  %v2967_v13 = vmul.f32 %v4247_v53, %v6603_v61  ;;  %v4249_v22 = vpop.eup %4248 }
 0x516   : > { %v2964_v40 = vmul.f32 %v4249_v22, %v6631_v46  ;;  %v2965_v11 = vmul.f32 %v4249_v22, %v6635_v43  ;;  %v7608_v22 = vld [vmem:[#allocation108_spill] sm:$0xff] }
 0x519   : > { %3039 = vmatpush.xpose.msrb.mxu2 %v2970_v57  ;;  %3059 = vmatpush.xpose.msrb.mxu3 %v2971_v36  ;;  %v4251_v34 = vpop.eup %4250 }
 0x51a   : > { %v2851_v51 = vpop.xlane.xlu1 %2850  ;;  %v2962_v35 = vmul.f32 %v4251_v34, %v6654_v48  ;;  %v2963_v61 = vmul.f32 %v4251_v34, %v6669_v4 }
 0x51b   : > { %v6911_v55 = vpop.xlane.xlu2 %2141  ;;  %4252 = vrcp.f32 %v2851_v51 }
 0x51d   : > { %3040 = vmatpush.xpose.msrb.mxu2 %v2968_v17  ;;  %3060 = vmatpush.xpose.msrb.mxu3 %v2969_v19  ;;  %v7606_v17 = vld [vmem:[#allocation124_spill] sm:$0xff] }
 0x521   : > { %3041 = vmatpush.xpose.msrb.mxu2 %v2966_v26  ;;  %3061 = vmatpush.xpose.msrb.mxu3 %v2967_v13  ;;  %v4253_v15 = vpop.eup %4252  ;;  %v7607_v26 = vld [vmem:[#allocation24_spill] sm:$0xff] }
 0x522   : > { %v2848_v5 = vpop.xlane.xlu1 %2847  ;;  %v2960_v46 = vmul.f32 %v4253_v15, %v6693_v1  ;;  %v2961_v43 = vmul.f32 %v4253_v15, %v6698_v41  ;;  %v7596_v41 = vld [vmem:[#allocation100_spill] sm:$0xff]  ;;  %v7612_v15 = vld [vmem:[#allocation111_spill] sm:$0xff] }
 0x523   : > { %v6917_v33 = vpop.xlane.xlu2 %2138  ;;  %4254 = vrcp.f32 %v2848_v5  ;;  %v7609_v5 = vld [vmem:[#allocation36_spill] sm:$0xff] }
 0x524   : > { %4256 = vrcp.f32 %v6870_v24  ;;  %v7595_v24 = vld [vmem:[#allocation114_spill] sm:$0xff] }
 0x525   : > { %3042 = vmatpush.xpose.msrb.mxu2 %v2964_v40  ;;  %3062 = vmatpush.xpose.msrb.mxu3 %v2965_v11  ;;  %4258 = vrcp.f32 %v6858_v54  ;;  %v2236_v25 = vmul.f32 %v6728_v52, %v7595_v24  ;;  %v7597_v52 = vld [vmem:[#allocation91_spill] sm:$0xff]  ;;  %v2224_v40 = vmul.f32 %v7609_v5, %v7608_v22  ;;  %v7634_v5 = vld [vmem:[#allocation84_spill] sm:$0xff] }
 0x526   : > { %4260 = vrcp.f32 %v6848_v32  ;;  %v7610_v11 = vld [vmem:[#allocation15_spill] sm:$0xff] }
 0x527   : > { %4262 = vrcp.f32 %v6839_v16  ;;  %v2232_v16 = vmul.f32 %v6773_v14, %v7597_v52  ;;  %v7616_v24 = vld [vmem:[#allocation35_spill] sm:$0xff]  ;;  %v7621_v52 = vld [vmem:[#allocation50_spill] sm:$0xff] }
 0x529   : > { %3043 = vmatpush.xpose.msrb.mxu2 %v2962_v35  ;;  %3063 = vmatpush.xpose.msrb.mxu3 %v2963_v61  ;;  %v4255_v45 = vpop.eup %4254  ;;  %v7611_v35 = vld [vmem:[#allocation16_spill] sm:$0xff] }
 0x52a   : > { %v4257_v63 = vpop.eup %4256  ;;  %v2958_v48 = vmul.f32 %v4255_v45, %v6718_v60  ;;  %v2959_v4 = vmul.f32 %v4255_v45, %v6721_v62  ;;  %v7614_v45 = vld [vmem:[#allocation20_spill] sm:$0xff] }
 0x52b   : > { %v6925_v7 = vpop.xlane.xlu2 %2135  ;;  %v2267_v54 = vmul.f32 %v4257_v63, %v6569_v20  ;;  %v4259_v3 = vpop.eup %4258  ;;  %v2234_v20 = vmul.f32 %v6745_v30, %v7596_v41  ;;  %v7598_v30 = vld [vmem:[#allocation88_spill] sm:$0xff]  ;;  %v2268_v14 = vmul.f32 %v4257_v63, %v6572_v12  ;;  %v7619_v41 = vld [vmem:[#allocation127_spill] sm:$0xff] }
 0x52c   : > { %v2265_v60 = vmul.f32 %v4259_v3, %v6526_v56  ;;  %v4261_v62 = vpop.eup %4260  ;;  %v2230_v44 = vmul.f32 %v6782_v21, %v7598_v30  ;;  %v7604_v12 = vld [vmem:[#allocation104_spill] sm:$0xff]  ;;  %v7623_v30 = vld [vmem:[#allocation19_spill] sm:$0xff] }
 0x52d   : > { %3044 = vmatpush.xpose.msrb.mxu2 %v2960_v46  ;;  %3064 = vmatpush.xpose.msrb.mxu3 %v2961_v43  ;;  %v2263_v32 = vmul.f32 %v4261_v62, %v6462_v23  ;;  %v4263_v28 = vpop.eup %4262  ;;  %v2264_v13 = vmul.f32 %v4261_v62, %v7607_v26  ;;  %v7613_v46 = vld [vmem:[#allocation95_spill] sm:$0xff]  ;;  %v7632_v26 = vld [vmem:[#allocation49_spill] sm:$0xff] }
 0x52e   : > { %v2262_v61 = vmul.f32 %v4263_v28, %v7611_v35  ;;  %v2222_v43 = vmul.f32 %v7613_v46, %v7612_v15 }
 0x531   : > { %3045 = vmatpush.xpose.msrb.mxu2 %v2958_v48  ;;  %3065 = vmatpush.xpose.msrb.mxu3 %v2959_v4  ;;  %v7615_v48 = vld [vmem:[#allocation21_spill] sm:$0xff] }
 0x533   : > { %v2079_v1 = vpop.xlane.xlu2 %2078 }
 0x534   : > { %4264 = vrcp.f32 %v2079_v1  ;;  %3757 = vmatmul.msk.f32.vlgmr.msrb.gmra.mxu2 %vm5439_vm5, %v6748_v18  ;;  %3758 = vmatmul.msk.f32.vlgmr.msrb.gmra.mxu3 %vm5439_vm5, %v6758_v10 }
 0x535   : > { %3090 = vmatpush.xpose.msra.mxu2 %v2236_v25  ;;  %3110 = vmatpush.xpose.msra.mxu3 %v2267_v54  ;;  %4266 = vrcp.f32 %v6832_v0  ;;  %v2261_v0 = vmul.f32 %v4263_v28, %v6442_v49  ;;  %v7603_v49 = vld [vmem:[#allocation17_spill] sm:$0xff]  ;;  %v7617_v25 = vld [vmem:[#allocation42_spill] sm:$0xff] }
 0x536   : > { %4268 = vrcp.f32 %v6818_v50  ;;  %v7600_v50 = vld [vmem:[#allocation97_spill] sm:$0xff]  ;;  %v2266_v47 = vmul.f32 %v4259_v3, %v7603_v49  ;;  %v2220_v54 = vmul.f32 %v7617_v25, %v7616_v24  ;;  %v7618_v3 = vld [vmem:[#allocation55_spill] sm:$0xff]  ;;  %v7629_v49 = vld [vmem:[#allocation40_spill] sm:$0xff] }
 0x537   : > { %4270 = vrcp.f32 %v6860_v6  ;;  %v7605_v6 = vld [vmem:[#allocation94_spill] sm:$0xff] }
 0x538   : > { %4272 = vrcp.f32 %v6882_v2  ;;  %v2226_v51 = vmul.f32 %v7605_v6, %v7604_v12  ;;  %v7630_v6 = vld [vmem:[#allocation76_spill] sm:$0xff] }
 0x539   : > { %3091 = vmatpush.xpose.msra.mxu2 %v2234_v20  ;;  %3111 = vmatpush.xpose.msra.mxu3 %v2265_v60  ;;  %4274 = vrcp.f32 %v6894_v9  ;;  %v7620_v60 = vld [vmem:[#allocation22_spill] sm:$0xff] }
 0x53a   : > { %v6949_v39 = vpop.eup %4264  ;;  %4276 = vrcp.f32 %v6905_v42  ;;  %v2218_v62 = vmul.f32 %v6850_v37, %v7620_v60  ;;  %v2130_v37 = vpop.xlane.xlu0 %2129 }
 0x53b   : > { %v2205_v56 = vmul.f32 %v6949_v39, %v6789_v31  ;;  %v4267_v58 = vpop.eup %4266  ;;  %v7601_v31 = vld [vmem:[#allocation83_spill] sm:$0xff]  ;;  %4278 = vrcp.f32 %v6911_v55 }
 0x53c   : > { %v2228_v57 = vmul.f32 %v7601_v31, %v7600_v50  ;;  %v2259_v21 = vmul.f32 %v4267_v58, %v7602_v29  ;;  %v4269_v36 = vpop.eup %4268  ;;  %v2260_v4 = vmul.f32 %v4267_v58, %v7615_v48  ;;  %4280 = vrcp.f32 %v6917_v33  ;;  %v7625_v58 = vld [vmem:[#allocation75_spill] sm:$0xff]  ;;  %v7626_v50 = vld [vmem:[#allocation13_spill] sm:$0xff] }
 0x53d   : > { %3092 = vmatpush.xpose.msra.mxu2 %v2232_v16  ;;  %3112 = vmatpush.xpose.msra.mxu3 %v2263_v32  ;;  %v2257_v19 = vmul.f32 %v4269_v36, %v7606_v17  ;;  %v4271_v53 = vpop.eup %4270  ;;  %v2258_v20 = vmul.f32 %v4269_v36, %v7619_v41  ;;  %v7622_v32 = vld [vmem:[#allocation79_spill] sm:$0xff]  ;;  %4282 = vrcp.f32 %v6925_v7  ;;  %v7631_v17 = vld [vmem:[#allocation41_spill] sm:$0xff]  ;;  %v3007_v41 = vpop.f32.mrf.mxu3 }
 0x53e   : > { %3085 = vmatpush.xpose.msra.mxu1 %v2205_v56  ;;  %v2255_v34 = vmul.f32 %v4271_v53, %v7610_v11  ;;  %v4273_v2 = vpop.eup %4272  ;;  %v2256_v28 = vmul.f32 %v4271_v53, %v7622_v32  ;;  %v2133_v56 = vpop.xlane.xlu1 %2132 }
 0x53f   : > { %v2253_v63 = vmul.f32 %v4273_v2, %v7614_v45  ;;  %v4275_v9 = vpop.eup %4274  ;;  %v2254_v31 = vmul.f32 %v4273_v2, %v7626_v50  ;;  %4284 = vrcp.f32 %v2133_v56 }
 0x540   : > { %v2251_v1 = vmul.f32 %v4275_v9, %v7618_v3  ;;  %v4277_v42 = vpop.eup %4276  ;;  %4286 = vrcp.f32 %v2130_v37  ;;  %v7644_v3 = vld [vmem:[#allocation74_spill] sm:$0xff] }
 0x541   : > { %3093 = vmatpush.xpose.msra.mxu2 %v2230_v44  ;;  %3113 = vmatpush.xpose.msra.mxu3 %v2261_v0  ;;  %v2249_v16 = vmul.f32 %v4277_v42, %v7621_v52  ;;  %v4279_v55 = vpop.eup %4278  ;;  %v7624_v44 = vld [vmem:[#allocation80_spill] sm:$0xff] }
 0x542   : > { %3130 = vmatpush.xpose.msrb.mxu1 %v2268_v14  ;;  %v2216_v0 = vmul.f32 %v7624_v44, %v7623_v30  ;;  %v2247_v33 = vmul.f32 %v4279_v55, %v7625_v58  ;;  %v4281_v14 = vpop.eup %4280 }
 0x543   : > { %3759 = vmatmul.msk.f32.vlgmr.msra.gmra.mxu1 %vm1447_vm1, %v6748_v18  ;;  %v4283_v7 = vpop.eup %4282 }
 0x545   : > { %3094 = vmatpush.xpose.msra.mxu2 %v2228_v57  ;;  %3114 = vmatpush.xpose.msra.mxu3 %v2259_v21  ;;  %v7627_v57 = vld [vmem:[#allocation23_spill] sm:$0xff]  ;;  %v7628_v21 = vld [vmem:[#allocation73_spill] sm:$0xff]  ;;  %v4285_v53 = vpop.eup %4284 }
 0x546   : > { %3131 = vmatpush.xpose.msrb.mxu1 %v2266_v47  ;;  %v2214_v29 = vmul.f32 %v6864_v8, %v7627_v57  ;;  %v2245_v36 = vmul.f32 %v4281_v14, %v7628_v21  ;;  %v2252_v47 = vmul.f32 %v4275_v9, %v7629_v49  ;;  %v2127_v12 = vpop.xlane.xlu1 %2126  ;;  %v7633_v8 = vld [vmem:[#allocation45_spill] sm:$0xff]  ;;  %v4287_v11 = vpop.eup %4286  ;;  %v7640_v9 = vld [vmem:[#allocation82_spill] sm:$0xff]  ;;  %v3206_v21 = vld.sshfl [vmem:[#allocation1 + $0x8] sm:$0xff pattern:$0x75316420] }
 0x547   : > { %4288 = vrcp.f32 %v2127_v12  ;;  %v2210_v22 = vmul.f32 %v6887_v38, %v7633_v8  ;;  %v7639_v38 = vld [vmem:[#allocation66_spill] sm:$0xff] }
 0x549   : > { %3095 = vmatpush.xpose.msra.mxu2 %v2226_v51  ;;  %3115 = vmatpush.xpose.msra.mxu3 %v2257_v19  ;;  %v2212_v51 = vmul.f32 %v6875_v27, %v7630_v6  ;;  %v2243_v19 = vmul.f32 %v4283_v7, %v7631_v17  ;;  %v7636_v27 = vld [vmem:[#allocation57_spill] sm:$0xff] }
 0x54a   : > { %3132 = vmatpush.xpose.msrb.mxu1 %v2264_v13  ;;  %v2250_v13 = vmul.f32 %v4277_v42, %v7632_v26  ;;  %v2208_v35 = vmul.f32 %v6899_v59, %v7636_v27  ;;  %v7642_v59 = vld [vmem:[#allocation85_spill] sm:$0xff]  ;;  %v262_v42 = vld [vmem:[%s7119_s3 + $0x28] sm:$0xf] }
 0x54b   : > { %v2242_v25 = vmul.f32 %v4285_v53, %v7642_v59  ;;  %3280 = vperm.xlu1 %3832, %v262_v42   ;;  %v7645_v26 = vld [vmem:[#allocation5_spill] sm:$0xff] }
 0x54d   : > { %3096 = vmatpush.xpose.msra.mxu2 %v2224_v40  ;;  %3116 = vmatpush.xpose.msra.mxu3 %v2255_v34  ;;  %v2241_v40 = vmul.f32 %v4285_v53, %v7634_v5  ;;  %v7635_v34 = vld [vmem:[#allocation86_spill] sm:$0xff]  ;;  %v4289_v46 = vpop.eup %4288 }
 0x54e   : > { %3133 = vmatpush.xpose.msrb.mxu1 %v2262_v61  ;;  %v2248_v2 = vmul.f32 %v4279_v55, %v7635_v34  ;;  %v7637_v61 = vld [vmem:[#allocation18_spill] sm:$0xff]  ;;  %v2237_v48 = vmul.f32 %v4289_v46, %v7640_v9 }
 0x54f   : > { %v2239_v15 = vmul.f32 %v4287_v11, %v7637_v61 }
 0x551   : > { %3097 = vmatpush.xpose.msra.mxu2 %v2222_v43  ;;  %3117 = vmatpush.xpose.msra.mxu3 %v2253_v63  ;;  %v7638_v43 = vld [vmem:[#allocation11_spill] sm:$0xff]  ;;  %v2206_v63 = vmul.f32 %v6949_v39, %v7639_v38 }
 0x552   : > { %3134 = vmatpush.xpose.msrb.mxu1 %v2260_v4  ;;  %v2246_v45 = vmul.f32 %v4281_v14, %v7638_v43  ;;  %v7641_v4 = vld [vmem:[#allocation43_spill] sm:$0xff] }
 0x553   : > { %v2244_v24 = vmul.f32 %v4283_v7, %v7641_v4 }
 0x555   : > { %3098 = vmatpush.xpose.msra.mxu2 %v2220_v54  ;;  %3118 = vmatpush.xpose.msra.mxu3 %v2251_v1  ;;  %v7643_v54 = vld [vmem:[#allocation12_spill] sm:$0xff]  ;;  %v2238_v1 = vmul.f32 %v4289_v46, %v7644_v3 }
 0x556   : > { %3135 = vmatpush.xpose.msrb.mxu1 %v2258_v20  ;;  %v2240_v39 = vmul.f32 %v4287_v11, %v7643_v54 }
 0x559   : > { %3099 = vmatpush.xpose.msra.mxu2 %v2218_v62  ;;  %3119 = vmatpush.xpose.msra.mxu3 %v2249_v16 }
 0x55a   : > { %3136 = vmatpush.xpose.msrb.mxu1 %v2256_v28  ;;  %v251_v28 = vld [vmem:[%s7118_s2 + $0x10] sm:$0xf] }
 0x55d   : > { %3100 = vmatpush.xpose.msra.mxu2 %v2216_v0  ;;  %3120 = vmatpush.xpose.msra.mxu3 %v2247_v33  ;;  %v3153_v0 = vpop.permute.xlu2 %3152  ;;  %v3205_v33 = vld.sshfl [vmem:[#allocation1] sm:$0xff pattern:$0x75316420] }
 0x55e   : > { %3137 = vmatpush.xpose.msrb.mxu1 %v2254_v31 }
 0x561   : > { %3101 = vmatpush.xpose.msra.mxu2 %v2214_v29  ;;  %3121 = vmatpush.xpose.msra.mxu3 %v2245_v36 }
 0x562   : > { %3138 = vmatpush.xpose.msrb.mxu1 %v2252_v47 }
 0x565   : > { %3102 = vmatpush.xpose.msra.mxu2 %v2212_v51  ;;  %3122 = vmatpush.xpose.msra.mxu3 %v2243_v19 }
 0x566   : > { %3139 = vmatpush.xpose.msrb.mxu1 %v2250_v13 }
 0x569   : > { %3103 = vmatpush.xpose.msra.mxu2 %v2210_v22  ;;  %3123 = vmatpush.xpose.msra.mxu3 %v2241_v40 }
 0x56a   : > { %3140 = vmatpush.xpose.msrb.mxu1 %v2248_v2 }
 0x56d   : > { %3104 = vmatpush.xpose.msra.mxu2 %v2208_v35  ;;  %3124 = vmatpush.xpose.msra.mxu3 %v2239_v15 }
 0x56e   : > { %3141 = vmatpush.xpose.msrb.mxu1 %v2246_v45 }
 0x571   : > { %3105 = vmatpush.xpose.msra.mxu2 %v2206_v63  ;;  %3125 = vmatpush.xpose.msra.mxu3 %v2237_v48 }
 0x572   : > { %3142 = vmatpush.xpose.msrb.mxu1 %v2244_v24 }
 0x574   : > { %3760 = vmatmul.msk.f32.vlgmr.msra.gmra.mxu2 %vm1447_vm1, %v6758_v10  ;;  %3761 = vmatmul.msk.f32.vlgmr.msra.gmra.mxu3 %vm1447_vm1, %v6748_v18  ;;  %v3027_v18 = vpop.f32.mrf.mxu1 }
 0x575   : > { %v3028_v52 = vadd.f32 %v3027_v18, %v3007_v41 }
 0x576   : > { %3143 = vmatpush.xpose.msrb.mxu1 %v2242_v25 }
 0x57a   : > { %3144 = vmatpush.xpose.msrb.mxu1 %v2240_v39 }
 0x57e   : > { %3145 = vmatpush.xpose.msrb.mxu1 %v2238_v1 }
 0x581   : > { %3762 = vmatmul.msk.f32.vlgmr.msrb.gmra.mxu1 %vm1447_vm1, %v6758_v10 }
 0x5b7   : > { %v3047_v20 = vpop.f32.mrf.mxu2  ;;  %v3067_v60 = vpop.f32.mrf.mxu3 }
 0x5b8   : > { %v3068_v10 = vadd.f32 %v3067_v60, %v3047_v20 }
 0x5c0   : > { %v3087_v62 = vpop.f32.mrf.mxu1 }
 0x5c1   : > { %v3088_v16 = vadd.f32 %v3087_v62, %v3028_v52 }
 0x5f7   : > { %v3107_v55 = vpop.f32.mrf.mxu2  ;;  %v3127_v23 = vpop.f32.mrf.mxu3 }
 0x5f8   : > { %v3108_v32 = vadd.f32 %v3107_v55, %v3088_v16  ;;  %v3128_v56 = vadd.f32 %v3127_v23, %v3068_v10  ;;  %v3274_v23 = vpop.permute.xlu0 %3273 }
 0x5fa   : > { %3763 = vmatpush.msk.msrb.mxu2 %vm271_vm2, %v3108_v32 }
 0x5fb   : > { %3764 = vmatmul.msk.f32.vlgmr.msrb.gmra.mxu2 %vm372_vm0, %v251_v28 }
 0x5fe   : > { %v3147_v30 = vpop.f32.mrf.mxu1 }
 0x5ff   : > { %v3148_v44 = vadd.f32 %v3147_v30, %v3128_v56  ;;  %v3281_v56 = vpop.permute.xlu1 %3280 }
 0x601   : > { %3765 = vmatpush.msk.msra.mxu2 %vm271_vm2, %v3148_v44 }
 0x603   : > { %3766 = vmatmul.msk.f32.vlgmr.msra.gmra.mxu2 %vm372_vm0, %v251_v28 }
 0x67e   : > { %v3181_v58 = vpop.f32.mrf.mxu2 }
 0x67f   : > { %v3182_v14 = vadd.f32 %v3181_v58, %v3153_v0  ;;  %v252_v58 = vld [vmem:[%s7118_s2 + $0x18] sm:$0xf] }
 0x681   : > { %v7038_v50 = vadd.f32 %v3205_v33, %v3182_v14 }
 0x683   : > { %v3211_v31 = vsel %vm271_vm2, %v7038_v50, 0.0 }
 0x684   : > { %v3212_v37 = vrot.slane %v3211_v31, 4 }
 0x686   : > { %v3213_v57 = vadd.f32 %v3212_v37, %v3211_v31  ;;  %v3201_v29 = vpop.f32.mrf.mxu2 }
 0x687   : > { %v3202_v36 = vadd.f32 %v3201_v29, %v3153_v0  ;;  %v3288_v29 = vpop.permute.xlu2 %3287 }
 0x688   : > { %v3214_v7 = vrot.slane %v3213_v57, 2 }
 0x689   : > { %v7042_v49 = vadd.f32 %v3206_v21, %v3202_v36 }
 0x68a   : > { %v3215_v47 = vadd.f32 %v3214_v7, %v3213_v57 }
 0x68b   : > { %v3218_v12 = vsel %vm271_vm2, %v7042_v49, 0.0 }
 0x68c   : > { %v3216_v6 = vrot.slane %v3215_v47, 1  ;;  %v3219_v51 = vrot.slane %v3218_v12, 4 }
 0x68e   : > { %v3220_v17 = vadd.f32 %v3219_v51, %v3218_v12  ;;  %v3217_v19 = vadd.f32 %v3216_v6, %v3215_v47 }
 0x690   : > { %v3221_v53 = vrot.slane %v3220_v17, 2  ;;  %v3225_v13 = vmul.f32 %v3217_v19, %v7645_v26 }
 0x692   : > { %v3222_v8 = vadd.f32 %v3221_v53, %v3220_v17  ;;  %v3227_v22 = vsub.f32 %v7038_v50, %v3225_v13 }
 0x694   : > { %v3223_v5 = vrot.slane %v3222_v8, 1  ;;  %v3229_v40 = vmul.f32 %v3227_v22, %v3227_v22 }
 0x696   : > { %v3224_v11 = vadd.f32 %v3223_v5, %v3222_v8  ;;  %v3231_v34 = vsel %vm271_vm2, %v3229_v40, 0.0 }
 0x697   : > { %v3232_v2 = vrot.slane %v3231_v34, 4 }
 0x698   : > { %v3226_v27 = vmul.f32 %v3224_v11, %v7645_v26 }
 0x699   : > { %v3233_v35 = vadd.f32 %v3232_v2, %v3231_v34 }
 0x69a   : > { %v3228_v61 = vsub.f32 %v7042_v49, %v3226_v27 }
 0x69b   : > { %v3234_v15 = vrot.slane %v3233_v35, 2 }
 0x69c   : > { %v3230_v46 = vmul.f32 %v3228_v61, %v3228_v61 }
 0x69d   : > { %v3235_v43 = vadd.f32 %v3234_v15, %v3233_v35 }
 0x69e   : > { %v3238_v45 = vsel %vm271_vm2, %v3230_v46, 0.0 }
 0x69f   : > { %v3236_v38 = vrot.slane %v3235_v43, 1  ;;  %v3239_v63 = vrot.slane %v3238_v45, 4 }
 0x6a1   : > { %v3237_v9 = vadd.f32 %v3236_v38, %v3235_v43  ;;  %v3240_v48 = vadd.f32 %v3239_v63, %v3238_v45 }
 0x6a3   : > { %v3241_v4 = vrot.slane %v3240_v48, 2  ;;  %v3245_v24 = vmul.f32 %v3237_v9, %v7645_v26 }
 0x6a5   : > { %v3242_v59 = vadd.f32 %v3241_v4, %v3240_v48  ;;  %v3247_v25 = vadd.f32 1e-05, %v3245_v24 }
 0x6a7   : > { %v3243_v54 = vrot.slane %v3242_v59, 1  ;;  %4290 = vrsqrt.f32 %v3247_v25  ;;  %vm3255_vm12 = vweird.f32 %v3247_v25 }
 0x6a9   : > { %v3244_v39 = vadd.f32 %v3243_v54, %v3242_v59 }
 0x6ab   : > { %v3246_v3 = vmul.f32 %v3244_v39, %v7645_v26 }
 0x6ad   : > { %v4291_v1 = vpop.eup %4290  ;;  %v3248_v42 = vadd.f32 1e-05, %v3246_v3 }
 0x6ae   : > { %v3250_v41 = vmul.f32 %v4291_v1, %v3247_v25  ;;  %vm3256_vm11 = vweird.f32 %v4291_v1 }
 0x6af   : > { %4292 = vrsqrt.f32 %v3248_v42  ;;  %vm3257_vm13 = vmor %vm3255_vm12, %vm3256_vm11  ;;  %vm3265_vm15 = vweird.f32 %v3248_v42 }
 0x6b0   : > { %v3251_v18 = vmul.f32 %v4291_v1, %v3250_v41 }
 0x6b2   : > { %v3252_v20 = vmul.f32 0.5, %v3251_v18 }
 0x6b4   : > { %v3253_v60 = vsub.f32 1.5, %v3252_v20 }
 0x6b5   : > { %v4293_v62 = vpop.eup %4292 }
 0x6b6   : > { %v3254_v52 = vmul.f32 %v4291_v1, %v3253_v60  ;;  %v3260_v16 = vmul.f32 %v4293_v62, %v3248_v42  ;;  %vm3266_vm14 = vweird.f32 %v4293_v62 }
 0x6b7   : > { %vm3267_vm1 = vmor %vm3265_vm15, %vm3266_vm14 }
 0x6b8   : > { %v3258_v55 = vsel %vm3257_vm13, %v4291_v1, %v3254_v52  ;;  %v3261_v32 = vmul.f32 %v4293_v62, %v3260_v16 }
 0x6b9   : > { %v3269_v28 = vmul.f32 %v3258_v55, %v3227_v22 }
 0x6ba   : > { %v3262_v10 = vmul.f32 0.5, %v3261_v32 }
 0x6bb   : > { %v3276_v30 = vmul.f32 %v3274_v23, %v3269_v28 }
 0x6bc   : > { %v3263_v44 = vsub.f32 1.5, %v3262_v10 }
 0x6bd   : > { %v3283_v0 = vadd.f32 %v3281_v56, %v3276_v30 }
 0x6be   : > { %v3264_v33 = vmul.f32 %v4293_v62, %v3263_v44 }
 0x6bf   : > { %3767 = vmatpush.msk.msrb.mxu2 %vm271_vm2, %v3283_v0 }
 0x6c0   : > { %v3268_v14 = vsel %vm3267_vm1, %v4293_v62, %v3264_v33  ;;  %3768 = vmatmul.msk.f32.vlgmr.msrb.gmra.mxu2 %vm372_vm0, %v252_v58 }
 0x6c1   : > { %v3270_v31 = vmul.f32 %v3268_v14, %v3228_v61 }
 0x6c3   : > { %v3277_v37 = vmul.f32 %v3274_v23, %v3270_v31 }
 0x6c5   : > { %v3284_v57 = vadd.f32 %v3281_v56, %v3277_v37 }
 0x6c7   : > { %3769 = vmatpush.msk.msra.mxu2 %vm271_vm2, %v3284_v57 }
 0x6c8   : > { %3770 = vmatmul.msk.f32.vlgmr.msra.gmra.mxu2 %vm372_vm0, %v252_v58 }
 0x743   : > { %v3316_v21 = vpop.f32.mrf.mxu2 }
 0x744   : > { %v7061_v36 = vadd.f32 %v3316_v21, %v3288_v29 }
 0x746   : > { %v3341_v7 = vmul.f32 0.70710677, %v7061_v36 }
 0x748   : > { %v3343_v47 = vmul.f32 %v3341_v7, %v3341_v7 }
 0x74a   : > { %v3344_v12 = vmin.f32 %v3343_v47, 16.0 }
 0x74b   : > { %v3336_v6 = vpop.f32.mrf.mxu2 }
 0x74c   : > { %v3345_v51 = vmul.f32 2.1237322e-06, %v3344_v12  ;;  %v3356_v17 = vmul.f32 3.8918573e-05, %v3344_v12  ;;  %v7064_v19 = vadd.f32 %v3336_v6, %v3288_v29 }
 0x74e   : > { %v3346_v53 = vadd.f32 0.00028619796, %v3345_v51  ;;  %v3357_v26 = vadd.f32 0.001143296, %v3356_v17  ;;  %v7067_v13 = vmul.f32 0.70710677, %v7064_v19 }
 0x750   : > { %v3347_v8 = vmul.f32 %v3346_v53, %v3344_v12  ;;  %v3358_v22 = vmul.f32 %v3357_v26, %v3344_v12  ;;  %v3383_v5 = vmul.f32 %v7067_v13, %v7067_v13  ;;  %v3339_v26 = vmul.f32 0.5, %v7061_v36 }
 0x752   : > { %v3359_v40 = vadd.f32 0.014752088, %v3358_v22  ;;  %v3348_v11 = vadd.f32 0.0036580483, %v3347_v8  ;;  %v3384_v34 = vmin.f32 %v3383_v5, 16.0 }
 0x754   : > { %v3360_v2 = vmul.f32 %v3359_v40, %v3344_v12  ;;  %v3385_v27 = vmul.f32 2.1237322e-06, %v3384_v34  ;;  %v3396_v35 = vmul.f32 3.8918573e-05, %v3384_v34  ;;  %v3349_v15 = vmul.f32 %v3348_v11, %v3344_v12  ;;  %v253_v40 = vld [vmem:[%s7118_s2 + $0x20] sm:$0xf] }
 0x756   : > { %v3361_v61 = vadd.f32 0.112945676, %v3360_v2  ;;  %v3386_v46 = vadd.f32 0.00028619796, %v3385_v27  ;;  %v3397_v43 = vadd.f32 0.001143296, %v3396_v35 }
 0x757   : > { %v3350_v48 = vadd.f32 0.05243302, %v3349_v15  ;;  %v3340_v35 = vmul.f32 0.5, %v7064_v19 }
 0x758   : > { %v3362_v45 = vmul.f32 %v3361_v61, %v3344_v12  ;;  %v3387_v38 = vmul.f32 %v3386_v46, %v3384_v34  ;;  %v3398_v63 = vmul.f32 %v3397_v43, %v3384_v34 }
 0x759   : > { %v3351_v39 = vmul.f32 %v3350_v48, %v3344_v12 }
 0x75a   : > { %v3363_v9 = vadd.f32 0.4994258, %v3362_v45  ;;  %v3399_v4 = vadd.f32 0.014752088, %v3398_v63  ;;  %v3388_v59 = vadd.f32 0.0036580483, %v3387_v38 }
 0x75b   : > { %v3352_v41 = vadd.f32 0.18741608, %v3351_v39 }
 0x75c   : > { %v3364_v24 = vmul.f32 %v3363_v9, %v3344_v12  ;;  %v3400_v25 = vmul.f32 %v3399_v4, %v3384_v34  ;;  %v3389_v1 = vmul.f32 %v3388_v59, %v3384_v34 }
 0x75d   : > { %v3353_v52 = vmul.f32 %v3352_v41, %v3344_v12 }
 0x75e   : > { %v3365_v54 = vadd.f32 1.0, %v3364_v24  ;;  %v3401_v3 = vadd.f32 0.112945676, %v3400_v25  ;;  %v3390_v20 = vadd.f32 0.05243302, %v3389_v1 }
 0x75f   : > { %v3354_v10 = vadd.f32 1.1283791, %v3353_v52 }
 0x760   : > { %4294 = vrcp.f32 %v3365_v54  ;;  %v3402_v42 = vmul.f32 %v3401_v3, %v3384_v34  ;;  %v3391_v32 = vmul.f32 %v3390_v20, %v3384_v34  ;;  %v3377_v23 = vand.u32 2147483648, %v3365_v54 }
 0x761   : > { %v3375_v30 = vand.u32 2147483647, %v3365_v54  ;;  %vm3371_vm5 = vweird.f32 %v3365_v54  ;;  %v3355_v14 = vmul.f32 %v3354_v10, %v3341_v7 }
 0x762   : > { %v3403_v18 = vadd.f32 0.4994258, %v3402_v42  ;;  %v3392_v44 = vadd.f32 0.18741608, %v3391_v32  ;;  %v3378_v58 = vor.u32 1.1754944e-38, %v3377_v23 }
 0x763   : > { %vm3376_vm6 = vcmp.eq.f32.partialorder %v3375_v30, 8.507059e+37 }
 0x764   : > { %v3404_v60 = vmul.f32 %v3403_v18, %v3384_v34  ;;  %v3393_v57 = vmul.f32 %v3392_v44, %v3384_v34 }
 0x766   : > { %v4295_v62 = vpop.eup %4294  ;;  %v3405_v55 = vadd.f32 1.0, %v3404_v60  ;;  %v3394_v51 = vadd.f32 1.1283791, %v3393_v57 }
 0x767   : > { %v3367_v16 = vmul.f32 %v4295_v62, %v3365_v54  ;;  %vm3372_vm4 = vweird.f32 %v4295_v62 }
 0x768   : > { %4296 = vrcp.f32 %v3405_v55  ;;  %vm3373_vm3 = vmor %vm3371_vm5, %vm3372_vm4  ;;  %v3417_v6 = vand.u32 2147483648, %v3405_v55  ;;  %v3415_v53 = vand.u32 2147483647, %v3405_v55  ;;  %vm3411_vm8 = vweird.f32 %v3405_v55 }
 0x769   : > { %v3368_v28 = vsub.f32 1.0, %v3367_v16  ;;  %v3395_v11 = vmul.f32 %v3394_v51, %v7067_v13  ;;  %v3430_v13 = vpop.permute.xlu0 %3429 }
 0x76a   : > { %v3418_v7 = vor.u32 1.1754944e-38, %v3417_v6  ;;  %vm3416_vm10 = vcmp.eq.f32.partialorder %v3415_v53, 8.507059e+37 }
 0x76b   : > { %v3369_v56 = vmul.f32 %v4295_v62, %v3368_v28 }
 0x76d   : > { %v3370_v0 = vadd.f32 %v4295_v62, %v3369_v56 }
 0x76e   : > { %v4297_v33 = vpop.eup %4296 }
 0x76f   : > { %v3374_v31 = vsel %vm3373_vm3, %v4295_v62, %v3370_v0  ;;  %v3407_v29 = vmul.f32 %v4297_v33, %v3405_v55  ;;  %vm3412_vm7 = vweird.f32 %v4297_v33 }
 0x770   : > { %v3379_v37 = vsel %vm3376_vm6, %v3378_v58, %v3374_v31  ;;  %vm3413_vm9 = vmor %vm3411_vm8, %vm3412_vm7 }
 0x771   : > { %v3380_v21 = vmul.f32 %v3379_v37, %v3355_v14  ;;  %v3408_v47 = vsub.f32 1.0, %v3407_v29 }
 0x773   : > { %v3771_v12 = vclamps-f32 %v3380_v21, 1.0  ;;  %v3409_v17 = vmul.f32 %v4297_v33, %v3408_v47 }
 0x775   : > { %v3423_v8 = vadd.f32 1.0, %v3771_v12  ;;  %v3410_v22 = vadd.f32 %v4297_v33, %v3409_v17 }
 0x777   : > { %v3425_v5 = vmul.f32 %v3423_v8, %v3339_v26  ;;  %v3414_v34 = vsel %vm3413_vm9, %v4297_v33, %v3410_v22 }
 0x778   : > { %v3419_v2 = vsel %vm3416_vm10, %v3418_v7, %v3414_v34 }
 0x779   : > { %3773 = vmatpush.msk.msrb.mxu2 %vm271_vm2, %v3425_v5  ;;  %v3420_v36 = vmul.f32 %v3419_v2, %v3395_v11 }
 0x77a   : > { %3774 = vmatmul.msk.f32.vlgmr.msrb.gmra.mxu2 %vm372_vm0, %v253_v40 }
 0x77b   : > { %v3772_v27 = vclamps-f32 %v3420_v36, 1.0 }
 0x77d   : > { %v3424_v61 = vadd.f32 1.0, %v3772_v27 }
 0x77f   : > { %v3426_v15 = vmul.f32 %v3424_v61, %v3340_v35 }
 0x781   : > { %3775 = vmatpush.msk.msra.mxu2 %vm271_vm2, %v3426_v15 }
 0x782   : > { %3776 = vmatmul.msk.f32.vlgmr.msra.gmra.mxu2 %vm372_vm0, %v253_v40 }
 0x7fd   : > { %v3458_v46 = vpop.f32.mrf.mxu2 }
 0x7fe   : > { %v3459_v45 = vadd.f32 %v3458_v46, %v3430_v13 }
 0x800   : > { %v3481_v63 = vadd.f32 %v3459_v45, %v7038_v50 }
 0x805   : > { %v3478_v43 = vpop.f32.mrf.mxu2 }
 0x806   : > { %v3479_v38 = vadd.f32 %v3478_v43, %v3430_v13 }
 0x808   : > { %v3482_v19 = vadd.f32 %v3479_v38, %v7042_v49 }
 0x80a   : > { %v3485_v9 = vrot.slane %v3482_v19, 4 }
 0x80c   : > { %v3486_v48 = vsel %vm271_vm2, %v3481_v63, %v3485_v9 }
 0x80d   : > { %3488 = vst [vmem:[%s205_s27] sm:$0xff] %v3486_v48 }
 0x80e   : > { %4327 = shalt.err (!%p4324_p3)
}
 0x80f   : > { %3788 = dma.vmem_to_hbm [thread:$0]  (%p4430_p5), %s3504_s28, 128, %s3506_s29, %s3490_s19  }
 0x810 PF: > { %p3794_p4 = scmp.ge.s32.totalorder %s4362_s18, 2  ;;  %s3517_s11 = sand.u32 1, %s4350_s15  }
 0x811   : > { %s3518_s12 = scalar_lea.sflag [#allocation3], %s3517_s11 }
 0x812   : > { %p3791_p7 = pnand %p3794_p4, %p4434_p6 }
 0x814   : > { %p3792_p8 = pneg %p3791_p7 }
 0x816   : > { %4345 = dma.done.wait (%p3792_p8), %s3518_s12, 128  }
 0x817   : > { %4347 = vsyncadd (%p3792_p8), %s3518_s12, 4294967168  ;;  %p14_p9 = scmp.ge.s32.totalorder %s4417_s21, 4   ;;  %s7646_s15 = smov %s4354_s16 }
 0x818   : > { %s7647_s16 = smov %s4358_s17  ;;  %s7648_s17 = smov %s4428_s24 }
 0x819   : > { %s7649_s18 = smov %s4417_s21  ;;  %16 = sbr.rel (!%p14_p9) target bundleno = 3 (0x3), region = 74 }
 0x81e   :  { %3524 = vsyncpa [#allocation3], 1 }
 0x81f   :  { %3526 = vsyncpa [#allocation3 + $0x1], 1 }

</bundles_post_ra>
